<compile_context>
chip_gen: v6e
topology: v6e:2x2x1
jax: 0.10.0
libtpu: 0.0.40
codegen_flags: <defaults>
</compile_context>

<pallas_src>
import functools

import jax
import jax.numpy as jnp
from jax import lax
from jax.experimental import pallas as pl
from jax.experimental.pallas import tpu as pltpu


# ------------------------------- fused kernel ------------------------------- #

def _fused_inverted_residual_kernel(*refs, stride, H, W, Ho, Wo,
                                    has_expand, use_shortcut):
    if has_expand:
        (xph_ref, w_exp_ref, s_exp_ref, b_exp_ref,
         w_dw_ref, s_dw_ref, b_dw_ref,
         w_proj_ref, s_proj_ref, b_proj_ref, o_ref) = refs
    else:
        (xph_ref, w_dw_ref, s_dw_ref, b_dw_ref,
         w_proj_ref, s_proj_ref, b_proj_ref, o_ref) = refs

    s = stride
    xph = xph_ref[...]                               # (1, s*s, Hps, Wps, Cin)
    _, P, Hps, Wps, Cin = xph.shape
    xph = xph.reshape(P, Hps, Wps, Cin)

    # ---- expand 1x1 conv + folded BN + ReLU6 (one large-M bf16 MXU matmul) ----
    if has_expand:
        x2d = xph.reshape(P * Hps * Wps, Cin).astype(jnp.bfloat16)
        h2d = jnp.dot(x2d, w_exp_ref[...], preferred_element_type=jnp.float32)
        h2d = jnp.clip(h2d * s_exp_ref[...] + b_exp_ref[...], 0.0, 6.0)
        hid = h2d.reshape(P, Hps, Wps, -1)
    else:
        hid = xph.astype(jnp.float32)
    Chid = hid.shape[-1]

    # ---- re-zero the 1-px padded border of the hidden activation ----
    # The depthwise conv must see zero padding; the expand maps padded zeros to
    # relu6(bn_bias) != 0, so mask the border of each spatial phase.
    phase = []
    for a in range(s):
        for b in range(s):
            hp = hid[a * s + b]                      # (Hps, Wps, Chid)
            if has_expand:
                ri = lax.broadcasted_iota(jnp.int32, (Hps, Wps, 1), 0) * s + a
                ci = lax.broadcasted_iota(jnp.int32, (Hps, Wps, 1), 1) * s + b
                valid = (ri >= 1) & (ri <= H) & (ci >= 1) & (ci <= W)
                hp = jnp.where(valid, hp, 0.0)
            phase.append(hp)

    # ---- depthwise 3x3 (pad=1, stride) + folded BN + ReLU6 ----
    # Each tap is a unit-stride slice of the in-VMEM phase it belongs to.
    w_dw = w_dw_ref[...]                             # (3, 3, Chid), f32
    acc = jnp.zeros((Ho, Wo, Chid), jnp.float32)
    for kh in range(3):
        for kw in range(3):
            hp = phase[(kh % s) * s + (kw % s)]
            patch = hp[kh // s:kh // s + Ho, kw // s:kw // s + Wo, :]
            acc = acc + patch * w_dw[kh, kw].reshape(1, 1, Chid)
    y = jnp.clip(acc * s_dw_ref[...].reshape(1, 1, Chid)
                 + b_dw_ref[...].reshape(1, 1, Chid), 0.0, 6.0)

    # ---- projection 1x1 conv + folded BN (+ residual shortcut) ----
    y2d = y.reshape(Ho * Wo, Chid).astype(jnp.bfloat16)
    o2d = jnp.dot(y2d, w_proj_ref[...], preferred_element_type=jnp.float32)
    o2d = o2d * s_proj_ref[...] + b_proj_ref[...]
    out = o2d.reshape(Ho, Wo, -1)
    if use_shortcut:
        # stride == 1 here, so phase 0 *is* the zero-padded input tile.
        out = out + xph[0, 1:H + 1, 1:W + 1, :].astype(jnp.float32)
    o_ref[...] = out.reshape(1, Ho, Wo, -1).astype(o_ref.dtype)


# --------------------------------- wrappers --------------------------------- #

def inverted_residual_nhwc(x_nhwc, params, *, stride, expand_ratio):
    """Fused InvertedResidual forward on an NHWC activation (preferred layout)."""
    assert stride in (1, 2), "MobileNetV2 only uses stride 1 or 2"
    x = x_nhwc.astype(jnp.float32)
    N, H, W, Cin = x.shape
    Cout = params["cout"]
    Chid = params["hidden"]
    has_expand = expand_ratio != 1
    use_shortcut = (stride == 1) and (Cin == Cout)

    Ho = (H + 2 - 3) // stride + 1
    Wo = (W + 2 - 3) // stride + 1
    s = stride
    if s != 1:
        assert (H + 2) % s == 0 and (W + 2) % s == 0, "H, W must be even for stride 2"

    # Host-side zero pad + phase decomposition of the *small* Cin input. All
    # stride handling is done here so the kernel never needs strided loads.
    xp = jnp.pad(x, ((0, 0), (1, 1), (1, 1), (0, 0)))
    if s == 1:
        xph = xp[:, None]                                      # (N, 1, Hp, Wp, Cin)
    else:
        xph = jnp.stack([xp[:, a::s, b::s, :]
                         for a in range(s) for b in range(s)], axis=1)
    _, P, Hps, Wps, _ = xph.shape

    const2 = lambda n: (0, 0)
    const3 = lambda n: (0, 0, 0)

    in_specs = [pl.BlockSpec((1, P, Hps, Wps, Cin), lambda n: (n, 0, 0, 0, 0))]
    args = [xph]
    if has_expand:
        in_specs += [pl.BlockSpec((Cin, Chid), const2),
                     pl.BlockSpec((1, Chid), const2),
                     pl.BlockSpec((1, Chid), const2)]
        args += [params["w_exp"], params["s_exp"], params["b_exp"]]
    in_specs += [pl.BlockSpec((3, 3, Chid), const3),
                 pl.BlockSpec((1, Chid), const2),
                 pl.BlockSpec((1, Chid), const2),
                 pl.BlockSpec((Chid, Cout), const2),
                 pl.BlockSpec((1, Cout), const2),
                 pl.BlockSpec((1, Cout), const2)]
    args += [params["w_dw"], params["s_dw"], params["b_dw"],
             params["w_proj"], params["s_proj"], params["b_proj"]]

    kernel = functools.partial(
        _fused_inverted_residual_kernel,
        stride=s, H=H, W=W, Ho=Ho, Wo=Wo,
        has_expand=has_expand, use_shortcut=use_shortcut)

    return pl.pallas_call(
        kernel,
        out_shape=jax.ShapeDtypeStruct((N, Ho, Wo, Cout), x.dtype),
        grid=(N,),
        in_specs=in_specs,
        out_specs=pl.BlockSpec((1, Ho, Wo, Cout), lambda n: (n, 0, 0, 0)),
        compiler_params=pltpu.CompilerParams(dimension_semantics=("parallel",)),
    )(*args)


def inverted_residual(x_nchw, params, *, stride, expand_ratio):
    """PyTorch-facing wrapper (NCHW in / NCHW out). A chained network should
    stay in NHWC and call inverted_residual_nhwc directly to avoid the two
    HBM transposes per block."""
    x = jnp.transpose(x_nchw, (0, 2, 3, 1))
    y = inverted_residual_nhwc(x, params, stride=stride, expand_ratio=expand_ratio)
    return jnp.transpose(y, (0, 3, 1, 2))


# ----------------------------- parameter helpers ---------------------------- #

def _fold_bn(kg, kb, km, kv, c, eps=1e-5):
    gamma = 1.0 + 0.1 * jax.random.normal(kg, (c,))
    beta = 0.1 * jax.random.normal(kb, (c,))
    mean = 0.1 * jax.random.normal(km, (c,))
    var = jnp.abs(jax.random.normal(kv, (c,))) + 0.5
    scale = gamma / jnp.sqrt(var + eps)
    bias = beta - mean * scale
    return (scale.reshape(1, c).astype(jnp.float32),
            bias.reshape(1, c).astype(jnp.float32))


def init_inverted_residual_params(key, in_channel, out_channel, expand_ratio):
    hidden = in_channel * expand_ratio
    ks = jax.random.split(key, 15)
    p = {"cin": in_channel, "cout": out_channel, "hidden": hidden}
    i = 0
    if expand_ratio != 1:
        # PyTorch Conv2d weight is OIHW: (hidden, in, 1, 1) -> matmul (in, hidden)
        w = 0.2 * jax.random.normal(ks[i], (hidden, in_channel, 1, 1)); i += 1
        p["w_exp"] = jnp.transpose(w[:, :, 0, 0], (1, 0)).astype(jnp.bfloat16)
        p["s_exp"], p["b_exp"] = _fold_bn(ks[i], ks[i + 1], ks[i + 2], ks[i + 3], hidden); i += 4
    # depthwise: (hidden, 1, 3, 3) -> (3, 3, hidden), kept f32 (VPU math)
    w = 0.2 * jax.random.normal(ks[i], (hidden, 1, 3, 3)); i += 1
    p["w_dw"] = jnp.transpose(w[:, 0], (1, 2, 0)).astype(jnp.float32)
    p["s_dw"], p["b_dw"] = _fold_bn(ks[i], ks[i + 1], ks[i + 2], ks[i + 3], hidden); i += 4
    # projection: (out, hidden, 1, 1) -> (hidden, out)
    w = 0.2 * jax.random.normal(ks[i], (out_channel, hidden, 1, 1)); i += 1
    p["w_proj"] = jnp.transpose(w[:, :, 0, 0], (1, 0)).astype(jnp.bfloat16)
    p["s_proj"], p["b_proj"] = _fold_bn(ks[i], ks[i + 1], ks[i + 2], ks[i + 3], out_channel); i += 4
    return p


# ------------------------------- pure-JAX ref -------------------------------- #

def inverted_residual_ref(x_nchw, params, *, stride, expand_ratio):
    """Reference with identical numerics (bf16 MXU inputs, f32 accumulation/BN)."""
    x = jnp.transpose(x_nchw, (0, 2, 3, 1)).astype(jnp.float32)
    h = x
    if expand_ratio != 1:
        h = jnp.dot(h.astype(jnp.bfloat16), params["w_exp"],
                    preferred_element_type=jnp.float32)
        h = jnp.clip(h * params["s_exp"] + params["b_exp"], 0.0, 6.0)
    C = h.shape[-1]
    wk = params["w_dw"].reshape(3, 3, 1, C)
    h = lax.conv_general_dilated(
        h, wk, (stride, stride), [(1, 1), (1, 1)],
        dimension_numbers=("NHWC", "HWIO", "NHWC"),
        feature_group_count=C, precision=lax.Precision.HIGHEST)
    h = jnp.clip(h * params["s_dw"] + params["b_dw"], 0.0, 6.0)
    y = jnp.dot(h.astype(jnp.bfloat16), params["w_proj"],
                preferred_element_type=jnp.float32)
    y = y * params["s_proj"] + params["b_proj"]
    if stride == 1 and x.shape[-1] == y.shape[-1]:
        y = y + x
    return jnp.transpose(y, (0, 3, 1, 2))


# ----------------------------------- main ------------------------------------ #

if __name__ == "__main__":
    key = jax.random.PRNGKey(0)
    kx, kp1, kp2 = jax.random.split(key, 3)

    x = jax.random.normal(kx, (2, 8, 16, 16), dtype=jnp.float32)  # NCHW like PyTorch

    # Config 1: shortcut path (stride=1, in==out), expand_ratio=2
    p1 = init_inverted_residual_params(kp1, in_channel=8, out_channel=8, expand_ratio=2)
    y1 = inverted_residual(x, p1, stride=1, expand_ratio=2)
    r1 = inverted_residual_ref(x, p1, stride=1, expand_ratio=2)

    # Config 2: no shortcut (stride=2, in!=out), expand_ratio=3
    p2 = init_inverted_residual_params(kp2, in_channel=8, out_channel=16, expand_ratio=3)
    y2 = inverted_residual(x, p2, stride=2, expand_ratio=3)
    r2 = inverted_residual_ref(x, p2, stride=2, expand_ratio=3)

    jax.block_until_ready((y1, y2))
    assert y1.shape == (2, 8, 16, 16), y1.shape
    assert y2.shape == (2, 16, 8, 8), y2.shape
    e1 = float(jnp.max(jnp.abs(y1 - r1)))
    e2 = float(jnp.max(jnp.abs(y2 - r2)))
    assert e1 < 2e-2, f"config1 max abs err {e1}"
    assert e2 < 2e-2, f"config2 max abs err {e2}"
    print("KERNEL_OK")
</pallas_src>

<mosaic_0001>
module attributes {stable_mosaic.version = 11 : i64} {
  func.func @_fused_inverted_residual_kernel(%arg0: i32, %arg1: memref<1x1x18x18x8xf32, #tpu.memory_space<vmem>>, %arg2: memref<8x16xbf16, #tpu.memory_space<vmem>>, %arg3: memref<1x16xf32, #tpu.memory_space<vmem>>, %arg4: memref<1x16xf32, #tpu.memory_space<vmem>>, %arg5: memref<3x3x16xf32, #tpu.memory_space<vmem>>, %arg6: memref<1x16xf32, #tpu.memory_space<vmem>>, %arg7: memref<1x16xf32, #tpu.memory_space<vmem>>, %arg8: memref<16x8xbf16, #tpu.memory_space<vmem>>, %arg9: memref<1x8xf32, #tpu.memory_space<vmem>>, %arg10: memref<1x8xf32, #tpu.memory_space<vmem>>, %arg11: memref<1x16x16x8xf32, #tpu.memory_space<vmem>>) attributes {dimension_semantics = [#tpu.dimension_semantics<parallel>], iteration_bounds = array<i64: 2>, scalar_prefetch = 0 : i64, scratch_operands = 0 : i64, tpu.core_type = #tpu.core_type<tc>, window_params = [{transform_indices = @transform_0, window_bounds = array<i64: 1, 1, 18, 18, 8>}, {pipeline_mode = #tpu.pipeline_mode<synchronous>, transform_indices = @transform_1, window_bounds = array<i64: 8, 16>}, {pipeline_mode = #tpu.pipeline_mode<synchronous>, transform_indices = @transform_2, window_bounds = array<i64: 1, 16>}, {pipeline_mode = #tpu.pipeline_mode<synchronous>, transform_indices = @transform_3, window_bounds = array<i64: 1, 16>}, {pipeline_mode = #tpu.pipeline_mode<synchronous>, transform_indices = @transform_4, window_bounds = array<i64: 3, 3, 16>}, {pipeline_mode = #tpu.pipeline_mode<synchronous>, transform_indices = @transform_5, window_bounds = array<i64: 1, 16>}, {pipeline_mode = #tpu.pipeline_mode<synchronous>, transform_indices = @transform_6, window_bounds = array<i64: 1, 16>}, {pipeline_mode = #tpu.pipeline_mode<synchronous>, transform_indices = @transform_7, window_bounds = array<i64: 16, 8>}, {pipeline_mode = #tpu.pipeline_mode<synchronous>, transform_indices = @transform_8, window_bounds = array<i64: 1, 8>}, {pipeline_mode = #tpu.pipeline_mode<synchronous>, transform_indices = @transform_9, window_bounds = array<i64: 1, 8>}, {transform_indices = @transform_10, window_bounds = array<i64: 1, 16, 16, 8>}]} {
    %c0 = arith.constant 0 : index
    %c0_0 = arith.constant 0 : index
    %c0_1 = arith.constant 0 : index
    %c0_2 = arith.constant 0 : index
    %c0_3 = arith.constant 0 : index
    %0 = vector.load %arg1[%c0, %c0_0, %c0_1, %c0_2, %c0_3] : memref<1x1x18x18x8xf32, #tpu.memory_space<vmem>>, vector<1x1x18x18x8xf32>
    %1 = vector.shape_cast %0 : vector<1x1x18x18x8xf32> to vector<1x18x18x8xf32>
    %2 = vector.shape_cast %1 : vector<1x18x18x8xf32> to vector<324x8xf32>
    %3 = arith.truncf %2 : vector<324x8xf32> to vector<324x8xbf16>
    %c0_4 = arith.constant 0 : index
    %c0_5 = arith.constant 0 : index
    %4 = vector.load %arg2[%c0_4, %c0_5] : memref<8x16xbf16, #tpu.memory_space<vmem>>, vector<8x16xbf16>
    %cst = arith.constant dense<0.000000e+00> : vector<324x16xf32>
    %5 = tpu.matmul %3, %4, %cst {dimension_numbers = #tpu.dot_dimension_numbers<[1], [0], [0], [1], [0, 0, 1, 1], [], []>} : vector<324x8xbf16>, vector<8x16xbf16>, vector<324x16xf32> -> vector<324x16xf32>
    %c0_6 = arith.constant 0 : index
    %c0_7 = arith.constant 0 : index
    %6 = vector.load %arg3[%c0_6, %c0_7] : memref<1x16xf32, #tpu.memory_space<vmem>>, vector<1x16xf32>
    %7 = vector.broadcast %6 : vector<1x16xf32> to vector<324x16xf32>
    %8 = arith.mulf %5, %7 : vector<324x16xf32>
    %c0_8 = arith.constant 0 : index
    %c0_9 = arith.constant 0 : index
    %9 = vector.load %arg4[%c0_8, %c0_9] : memref<1x16xf32, #tpu.memory_space<vmem>>, vector<1x16xf32>
    %10 = vector.broadcast %9 : vector<1x16xf32> to vector<324x16xf32>
    %11 = arith.addf %8, %10 : vector<324x16xf32>
    %cst_10 = arith.constant 0.000000e+00 : f32
    %cst_11 = arith.constant 6.000000e+00 : f32
    %12 = vector.broadcast %cst_10 : f32 to vector<324x16xf32>
    %13 = arith.maximumf %12, %11 : vector<324x16xf32>
    %14 = vector.broadcast %cst_11 : f32 to vector<324x16xf32>
    %15 = arith.minimumf %14, %13 : vector<324x16xf32>
    %16 = vector.shape_cast %15 : vector<324x16xf32> to vector<1x18x18x16xf32>
    %17 = vector.shape_cast %16 : vector<1x18x18x16xf32> to vector<18x18x16xf32>
    %18 = tpu.iota {dimensions = array<i32: 0>} : vector<18x18x1xi32>
    %c1_i32 = arith.constant 1 : i32
    %19 = vector.broadcast %c1_i32 : i32 to vector<18x18x1xi32>
    %20 = arith.muli %18, %19 : vector<18x18x1xi32>
    %c0_i32 = arith.constant 0 : i32
    %21 = vector.broadcast %c0_i32 : i32 to vector<18x18x1xi32>
    %22 = arith.addi %20, %21 : vector<18x18x1xi32>
    %23 = tpu.iota {dimensions = array<i32: 1>} : vector<18x18x1xi32>
    %c1_i32_12 = arith.constant 1 : i32
    %24 = vector.broadcast %c1_i32_12 : i32 to vector<18x18x1xi32>
    %25 = arith.muli %23, %24 : vector<18x18x1xi32>
    %c0_i32_13 = arith.constant 0 : i32
    %26 = vector.broadcast %c0_i32_13 : i32 to vector<18x18x1xi32>
    %27 = arith.addi %25, %26 : vector<18x18x1xi32>
    %c1_i32_14 = arith.constant 1 : i32
    %28 = vector.broadcast %c1_i32_14 : i32 to vector<18x18x1xi32>
    %29 = arith.cmpi sge, %22, %28 : vector<18x18x1xi32>
    %c16_i32 = arith.constant 16 : i32
    %30 = vector.broadcast %c16_i32 : i32 to vector<18x18x1xi32>
    %31 = arith.cmpi sle, %22, %30 : vector<18x18x1xi32>
    %32 = arith.andi %29, %31 : vector<18x18x1xi1>
    %c1_i32_15 = arith.constant 1 : i32
    %33 = vector.broadcast %c1_i32_15 : i32 to vector<18x18x1xi32>
    %34 = arith.cmpi sge, %27, %33 : vector<18x18x1xi32>
    %35 = arith.andi %32, %34 : vector<18x18x1xi1>
    %c16_i32_16 = arith.constant 16 : i32
    %36 = vector.broadcast %c16_i32_16 : i32 to vector<18x18x1xi32>
    %37 = arith.cmpi sle, %27, %36 : vector<18x18x1xi32>
    %38 = arith.andi %35, %37 : vector<18x18x1xi1>
    %cst_17 = arith.constant 0.000000e+00 : f32
    %39 = vector.shape_cast %38 : vector<18x18x1xi1> to vector<18x18x1xi1>
    %40 = vector.broadcast %39 : vector<18x18x1xi1> to vector<18x18x16xi1>
    %41 = vector.broadcast %cst_17 : f32 to vector<18x18x16xf32>
    %42 = arith.select %40, %17, %41 : vector<18x18x16xi1>, vector<18x18x16xf32>
    %c0_18 = arith.constant 0 : index
    %c0_19 = arith.constant 0 : index
    %c0_20 = arith.constant 0 : index
    %43 = vector.load %arg5[%c0_18, %c0_19, %c0_20] : memref<3x3x16xf32, #tpu.memory_space<vmem>>, vector<3x3x16xf32>
    %cst_21 = arith.constant 0.000000e+00 : f32
    %44 = vector.broadcast %cst_21 : f32 to vector<16x16x16xf32>
    %45 = vector.extract_strided_slice %42 {offsets = [0, 0, 0], sizes = [16, 16, 16], strides = [1, 1, 1]} : vector<18x18x16xf32> to vector<16x16x16xf32>
    %46 = vector.extract_strided_slice %43 {offsets = [0, 0, 0], sizes = [1, 1, 16], strides = [1, 1, 1]} : vector<3x3x16xf32> to vector<1x1x16xf32>
    %47 = vector.shape_cast %46 : vector<1x1x16xf32> to vector<16xf32>
    %48 = vector.shape_cast %47 : vector<16xf32> to vector<1x1x16xf32>
    %49 = vector.broadcast %48 : vector<1x1x16xf32> to vector<16x16x16xf32>
    %50 = arith.mulf %45, %49 : vector<16x16x16xf32>
    %51 = arith.addf %44, %50 : vector<16x16x16xf32>
    %52 = vector.extract_strided_slice %42 {offsets = [0, 1, 0], sizes = [16, 16, 16], strides = [1, 1, 1]} : vector<18x18x16xf32> to vector<16x16x16xf32>
    %53 = vector.extract_strided_slice %43 {offsets = [0, 1, 0], sizes = [1, 1, 16], strides = [1, 1, 1]} : vector<3x3x16xf32> to vector<1x1x16xf32>
    %54 = vector.shape_cast %53 : vector<1x1x16xf32> to vector<16xf32>
    %55 = vector.shape_cast %54 : vector<16xf32> to vector<1x1x16xf32>
    %56 = vector.broadcast %55 : vector<1x1x16xf32> to vector<16x16x16xf32>
    %57 = arith.mulf %52, %56 : vector<16x16x16xf32>
    %58 = arith.addf %51, %57 : vector<16x16x16xf32>
    %59 = vector.extract_strided_slice %42 {offsets = [0, 2, 0], sizes = [16, 16, 16], strides = [1, 1, 1]} : vector<18x18x16xf32> to vector<16x16x16xf32>
    %60 = vector.extract_strided_slice %43 {offsets = [0, 2, 0], sizes = [1, 1, 16], strides = [1, 1, 1]} : vector<3x3x16xf32> to vector<1x1x16xf32>
    %61 = vector.shape_cast %60 : vector<1x1x16xf32> to vector<16xf32>
    %62 = vector.shape_cast %61 : vector<16xf32> to vector<1x1x16xf32>
    %63 = vector.broadcast %62 : vector<1x1x16xf32> to vector<16x16x16xf32>
    %64 = arith.mulf %59, %63 : vector<16x16x16xf32>
    %65 = arith.addf %58, %64 : vector<16x16x16xf32>
    %66 = vector.extract_strided_slice %42 {offsets = [1, 0, 0], sizes = [16, 16, 16], strides = [1, 1, 1]} : vector<18x18x16xf32> to vector<16x16x16xf32>
    %67 = vector.extract_strided_slice %43 {offsets = [1, 0, 0], sizes = [1, 1, 16], strides = [1, 1, 1]} : vector<3x3x16xf32> to vector<1x1x16xf32>
    %68 = vector.shape_cast %67 : vector<1x1x16xf32> to vector<16xf32>
    %69 = vector.shape_cast %68 : vector<16xf32> to vector<1x1x16xf32>
    %70 = vector.broadcast %69 : vector<1x1x16xf32> to vector<16x16x16xf32>
    %71 = arith.mulf %66, %70 : vector<16x16x16xf32>
    %72 = arith.addf %65, %71 : vector<16x16x16xf32>
    %73 = vector.extract_strided_slice %42 {offsets = [1, 1, 0], sizes = [16, 16, 16], strides = [1, 1, 1]} : vector<18x18x16xf32> to vector<16x16x16xf32>
    %74 = vector.extract_strided_slice %43 {offsets = [1, 1, 0], sizes = [1, 1, 16], strides = [1, 1, 1]} : vector<3x3x16xf32> to vector<1x1x16xf32>
    %75 = vector.shape_cast %74 : vector<1x1x16xf32> to vector<16xf32>
    %76 = vector.shape_cast %75 : vector<16xf32> to vector<1x1x16xf32>
    %77 = vector.broadcast %76 : vector<1x1x16xf32> to vector<16x16x16xf32>
    %78 = arith.mulf %73, %77 : vector<16x16x16xf32>
    %79 = arith.addf %72, %78 : vector<16x16x16xf32>
    %80 = vector.extract_strided_slice %42 {offsets = [1, 2, 0], sizes = [16, 16, 16], strides = [1, 1, 1]} : vector<18x18x16xf32> to vector<16x16x16xf32>
    %81 = vector.extract_strided_slice %43 {offsets = [1, 2, 0], sizes = [1, 1, 16], strides = [1, 1, 1]} : vector<3x3x16xf32> to vector<1x1x16xf32>
    %82 = vector.shape_cast %81 : vector<1x1x16xf32> to vector<16xf32>
    %83 = vector.shape_cast %82 : vector<16xf32> to vector<1x1x16xf32>
    %84 = vector.broadcast %83 : vector<1x1x16xf32> to vector<16x16x16xf32>
    %85 = arith.mulf %80, %84 : vector<16x16x16xf32>
    %86 = arith.addf %79, %85 : vector<16x16x16xf32>
    %87 = vector.extract_strided_slice %42 {offsets = [2, 0, 0], sizes = [16, 16, 16], strides = [1, 1, 1]} : vector<18x18x16xf32> to vector<16x16x16xf32>
    %88 = vector.extract_strided_slice %43 {offsets = [2, 0, 0], sizes = [1, 1, 16], strides = [1, 1, 1]} : vector<3x3x16xf32> to vector<1x1x16xf32>
    %89 = vector.shape_cast %88 : vector<1x1x16xf32> to vector<16xf32>
    %90 = vector.shape_cast %89 : vector<16xf32> to vector<1x1x16xf32>
    %91 = vector.broadcast %90 : vector<1x1x16xf32> to vector<16x16x16xf32>
    %92 = arith.mulf %87, %91 : vector<16x16x16xf32>
    %93 = arith.addf %86, %92 : vector<16x16x16xf32>
    %94 = vector.extract_strided_slice %42 {offsets = [2, 1, 0], sizes = [16, 16, 16], strides = [1, 1, 1]} : vector<18x18x16xf32> to vector<16x16x16xf32>
    %95 = vector.extract_strided_slice %43 {offsets = [2, 1, 0], sizes = [1, 1, 16], strides = [1, 1, 1]} : vector<3x3x16xf32> to vector<1x1x16xf32>
    %96 = vector.shape_cast %95 : vector<1x1x16xf32> to vector<16xf32>
    %97 = vector.shape_cast %96 : vector<16xf32> to vector<1x1x16xf32>
    %98 = vector.broadcast %97 : vector<1x1x16xf32> to vector<16x16x16xf32>
    %99 = arith.mulf %94, %98 : vector<16x16x16xf32>
    %100 = arith.addf %93, %99 : vector<16x16x16xf32>
    %101 = vector.extract_strided_slice %42 {offsets = [2, 2, 0], sizes = [16, 16, 16], strides = [1, 1, 1]} : vector<18x18x16xf32> to vector<16x16x16xf32>
    %102 = vector.extract_strided_slice %43 {offsets = [2, 2, 0], sizes = [1, 1, 16], strides = [1, 1, 1]} : vector<3x3x16xf32> to vector<1x1x16xf32>
    %103 = vector.shape_cast %102 : vector<1x1x16xf32> to vector<16xf32>
    %104 = vector.shape_cast %103 : vector<16xf32> to vector<1x1x16xf32>
    %105 = vector.broadcast %104 : vector<1x1x16xf32> to vector<16x16x16xf32>
    %106 = arith.mulf %101, %105 : vector<16x16x16xf32>
    %107 = arith.addf %100, %106 : vector<16x16x16xf32>
    %c0_22 = arith.constant 0 : index
    %c0_23 = arith.constant 0 : index
    %108 = vector.load %arg6[%c0_22, %c0_23] : memref<1x16xf32, #tpu.memory_space<vmem>>, vector<1x16xf32>
    %109 = vector.shape_cast %108 : vector<1x16xf32> to vector<1x1x16xf32>
    %110 = vector.broadcast %109 : vector<1x1x16xf32> to vector<16x16x16xf32>
    %111 = arith.mulf %107, %110 : vector<16x16x16xf32>
    %c0_24 = arith.constant 0 : index
    %c0_25 = arith.constant 0 : index
    %112 = vector.load %arg7[%c0_24, %c0_25] : memref<1x16xf32, #tpu.memory_space<vmem>>, vector<1x16xf32>
    %113 = vector.shape_cast %112 : vector<1x16xf32> to vector<1x1x16xf32>
    %114 = vector.broadcast %113 : vector<1x1x16xf32> to vector<16x16x16xf32>
    %115 = arith.addf %111, %114 : vector<16x16x16xf32>
    %cst_26 = arith.constant 0.000000e+00 : f32
    %cst_27 = arith.constant 6.000000e+00 : f32
    %116 = vector.broadcast %cst_26 : f32 to vector<16x16x16xf32>
    %117 = arith.maximumf %116, %115 : vector<16x16x16xf32>
    %118 = vector.broadcast %cst_27 : f32 to vector<16x16x16xf32>
    %119 = arith.minimumf %118, %117 : vector<16x16x16xf32>
    %120 = vector.shape_cast %119 : vector<16x16x16xf32> to vector<256x16xf32>
    %121 = arith.truncf %120 : vector<256x16xf32> to vector<256x16xbf16>
    %c0_28 = arith.constant 0 : index
    %c0_29 = arith.constant 0 : index
    %122 = vector.load %arg8[%c0_28, %c0_29] : memref<16x8xbf16, #tpu.memory_space<vmem>>, vector<16x8xbf16>
    %cst_30 = arith.constant dense<0.000000e+00> : vector<256x8xf32>
    %123 = tpu.matmul %121, %122, %cst_30 {dimension_numbers = #tpu.dot_dimension_numbers<[1], [0], [0], [1], [0, 0, 1, 1], [], []>} : vector<256x16xbf16>, vector<16x8xbf16>, vector<256x8xf32> -> vector<256x8xf32>
    %c0_31 = arith.constant 0 : index
    %c0_32 = arith.constant 0 : index
    %124 = vector.load %arg9[%c0_31, %c0_32] : memref<1x8xf32, #tpu.memory_space<vmem>>, vector<1x8xf32>
    %125 = vector.broadcast %124 : vector<1x8xf32> to vector<256x8xf32>
    %126 = arith.mulf %123, %125 : vector<256x8xf32>
    %c0_33 = arith.constant 0 : index
    %c0_34 = arith.constant 0 : index
    %127 = vector.load %arg10[%c0_33, %c0_34] : memref<1x8xf32, #tpu.memory_space<vmem>>, vector<1x8xf32>
    %128 = vector.broadcast %127 : vector<1x8xf32> to vector<256x8xf32>
    %129 = arith.addf %126, %128 : vector<256x8xf32>
    %130 = vector.shape_cast %129 : vector<256x8xf32> to vector<16x16x8xf32>
    %131 = vector.extract_strided_slice %1 {offsets = [0, 1, 1, 0], sizes = [1, 16, 16, 8], strides = [1, 1, 1, 1]} : vector<1x18x18x8xf32> to vector<1x16x16x8xf32>
    %132 = vector.shape_cast %131 : vector<1x16x16x8xf32> to vector<16x16x8xf32>
    %133 = arith.addf %130, %132 : vector<16x16x8xf32>
    %134 = vector.shape_cast %133 : vector<16x16x8xf32> to vector<1x16x16x8xf32>
    %c0_35 = arith.constant 0 : index
    %c0_36 = arith.constant 0 : index
    %c0_37 = arith.constant 0 : index
    %c0_38 = arith.constant 0 : index
    %135 = vector.load %arg11[%c0_35, %c0_36, %c0_37, %c0_38] : memref<1x16x16x8xf32, #tpu.memory_space<vmem>>, vector<1x16x16x8xf32>
    tpu.vector_store %arg11[%c0_35, %c0_36, %c0_37, %c0_38], %134 {strides = array<i32>} : memref<1x16x16x8xf32, #tpu.memory_space<vmem>>, vector<1x16x16x8xf32>,
    return
  }
  func.func @transform_0(%arg0: i32) -> (i32, i32, i32, i32, i32) {
    %c0_i32 = arith.constant 0 : i32
    %c0_i32_0 = arith.constant 0 : i32
    %c0_i32_1 = arith.constant 0 : i32
    %c0_i32_2 = arith.constant 0 : i32
    %c0_i32_3 = arith.constant 0 : i32
    return %arg0, %c0_i32, %c0_i32_0, %c0_i32_1, %c0_i32_2 : i32, i32, i32, i32, i32
  }
  func.func @transform_1(%arg0: i32) -> (i32, i32) {
    %c0_i32 = arith.constant 0 : i32
    %c0_i32_0 = arith.constant 0 : i32
    %c0_i32_1 = arith.constant 0 : i32
    return %c0_i32, %c0_i32_0 : i32, i32
  }
  func.func @transform_2(%arg0: i32) -> (i32, i32) {
    %c0_i32 = arith.constant 0 : i32
    %c0_i32_0 = arith.constant 0 : i32
    %c0_i32_1 = arith.constant 0 : i32
    return %c0_i32, %c0_i32_0 : i32, i32
  }
  func.func @transform_3(%arg0: i32) -> (i32, i32) {
    %c0_i32 = arith.constant 0 : i32
    %c0_i32_0 = arith.constant 0 : i32
    %c0_i32_1 = arith.constant 0 : i32
    return %c0_i32, %c0_i32_0 : i32, i32
  }
  func.func @transform_4(%arg0: i32) -> (i32, i32, i32) {
    %c0_i32 = arith.constant 0 : i32
    %c0_i32_0 = arith.constant 0 : i32
    %c0_i32_1 = arith.constant 0 : i32
    %c0_i32_2 = arith.constant 0 : i32
    return %c0_i32, %c0_i32_0, %c0_i32_1 : i32, i32, i32
  }
  func.func @transform_5(%arg0: i32) -> (i32, i32) {
    %c0_i32 = arith.constant 0 : i32
    %c0_i32_0 = arith.constant 0 : i32
    %c0_i32_1 = arith.constant 0 : i32
    return %c0_i32, %c0_i32_0 : i32, i32
  }
  func.func @transform_6(%arg0: i32) -> (i32, i32) {
    %c0_i32 = arith.constant 0 : i32
    %c0_i32_0 = arith.constant 0 : i32
    %c0_i32_1 = arith.constant 0 : i32
    return %c0_i32, %c0_i32_0 : i32, i32
  }
  func.func @transform_7(%arg0: i32) -> (i32, i32) {
    %c0_i32 = arith.constant 0 : i32
    %c0_i32_0 = arith.constant 0 : i32
    %c0_i32_1 = arith.constant 0 : i32
    return %c0_i32, %c0_i32_0 : i32, i32
  }
  func.func @transform_8(%arg0: i32) -> (i32, i32) {
    %c0_i32 = arith.constant 0 : i32
    %c0_i32_0 = arith.constant 0 : i32
    %c0_i32_1 = arith.constant 0 : i32
    return %c0_i32, %c0_i32_0 : i32, i32
  }
  func.func @transform_9(%arg0: i32) -> (i32, i32) {
    %c0_i32 = arith.constant 0 : i32
    %c0_i32_0 = arith.constant 0 : i32
    %c0_i32_1 = arith.constant 0 : i32
    return %c0_i32, %c0_i32_0 : i32, i32
  }
  func.func @transform_10(%arg0: i32) -> (i32, i32, i32, i32) {
    %c0_i32 = arith.constant 0 : i32
    %c0_i32_0 = arith.constant 0 : i32
    %c0_i32_1 = arith.constant 0 : i32
    %c0_i32_2 = arith.constant 0 : i32
    return %arg0, %c0_i32, %c0_i32_0, %c0_i32_1 : i32, i32, i32, i32
  }
}

</mosaic_0001>

<bundles_post_ra>
// kernel: tpu_custom_call.1
= control target key start
LH: loop header
LB: loop body
LE: loop exit
PB: predicated region body
PF: predicated region fallthrough
CT: control target
= control target key end

     0   :  { %s6776_s13 = smov 0   ;;  %s9590_s0 = inlined_call_operand.vmem [shape: f32[2,1,18,18,8], index: 0, kind: input, shape index: {}]   ;;  %s9591_s1 = inlined_call_operand.vmem [shape: bf16[8,16], index: 1, kind: input, shape index: {}]   ;;  %s9592_s2 = inlined_call_operand.vmem [shape: f32[1,16], index: 2, kind: input, shape index: {}]   ;;  %s9593_s3 = inlined_call_operand.vmem [shape: f32[1,16], index: 3, kind: input, shape index: {}]   ;;  %s9594_s4 = inlined_call_operand.vmem [shape: f32[3,3,16], index: 4, kind: input, shape index: {}]   ;;  %s9595_s5 = inlined_call_operand.vmem [shape: f32[1,16], index: 5, kind: input, shape index: {}]   ;;  %s9596_s6 = inlined_call_operand.vmem [shape: f32[1,16], index: 6, kind: input, shape index: {}]   ;;  %s9597_s7 = inlined_call_operand.vmem [shape: bf16[16,8], index: 7, kind: input, shape index: {}]   ;;  %s9598_s8 = inlined_call_operand.vmem [shape: f32[1,8], index: 8, kind: input, shape index: {}]   ;;  %s9599_s9 = inlined_call_operand.vmem [shape: f32[1,8], index: 9, kind: input, shape index: {}]   ;;  %s9600_s10 = inlined_call_operand.vmem [shape: f32[2,16,16,8], index: 10, kind: output, shape index: {}]  }
   0x1 LB: > { %s6371_s14 = sadd.s32 4294967295, %s6716_s13   ;;  %p6375_p0 = scmp.ge.s32.totalorder %s6716_s13, 1  ;;  %s6716_s13 = sphi %s6776_s13, %s20_s13  }
   0x2   : > { %p312_p1 = scmp.lt.s32.totalorder %s6716_s13, 3 }
   0x4   : > { %p313_p2 = pnand %p6375_p0, %p312_p1 }
   0x6   : > { %316 = sbr.rel (%p313_p2) target bundleno = 920 (0x398), region = 60 }
   0xb   : > { %v1957_v0 = vld [vmem:[%s9591_s1] sm:$0xf]  ;;  %vm2022_vm0 = vcmask 1043456   ;;  %p350_p3 = scmp.lt.s32.totalorder %s6371_s14, 1  ;;  %v473_v1 = vlaneseq  ;;  %v6718_v2 = vmov 0.0   ;;  %vm6719_vm1 = vmmov 0  }
   0xc   : > { %6467 = vmatprep.subr.bf16.mxu0 %v6718_v2  ;;  %v2024_v3 = vsel %vm2022_vm0, %v1957_v0, 0  ;;  %6469 = vmatprep.mubr.msk.bf16.mxu0 %vm6719_vm1, %v6718_v2  ;;  %v6720_v4 = vmov 1983009808   ;;  %vm1958_vm2 = vcmask 64512   ;;  %vm4184_vm5 = vcmask 1046528  }
   0xd   : > { %6468 = vmatpush3.bf16.msra.mxu0 %v2024_v3  ;;  %s10066_s14 = smov (!%p350_p3, %s6371_s14), 1  ;;  %v471_v5 = vunpack.c.l.s4 %v6720_v4  ;;  %v6792_v6 = vshrl.u32 %v473_v1, 7  ;;  %6587 = vmatprep.subr.bf16.mxu1 %v6718_v2  ;;  %vm4429_vm6 = vcmask 1045504   ;;  %vm5852_vm7 = vcmask 130048  }
   0xe   : > { %6588 = vmatpush3.bf16.msra.mxu1 %v2024_v3  ;;  %6529 = vmatprep.mubr.msk.bf16.mxu1 %vm6719_vm1, %v6718_v2  ;;  %s6589_s17 = smul.u32 432, %s10066_s14  ;;  %s6427_s23 = sshll.u32 %s10066_s14, 8 }
   0xf   : > { %v472_v7 = vunpack.c.0.s8 %v471_v5  ;;  %vm3137_vm3 = vcmp.ge.s32.totalorder %v6792_v6, 1  ;;  %s9377_s25 = scalar_lea.vmem %s9600_s10, %s6427_s23 }
  0x10   : > { %s6801_s20 = scalar_lea.vmem %s9590_s0, %s6589_s17 }
  0x11   : > { %v6804_v8 = vsub.s32 %v472_v7, %v6792_v6  ;;  %v361_v9 = vld [vmem:[%s6801_s20] sm:$0xff]  ;;  %v362_v10 = vld [vmem:[%s6801_s20 + $0x8] sm:$0xff]  ;;  %v364_v15 = vld [vmem:[%s6801_s20 + $0x18] sm:$0xff] }
  0x12   : > { %v469_v11 = vcombine.high %v361_v9, %v361_v9  ;;  %v486_v13 = vcombine.high %v362_v10, %v362_v10  ;;  %v365_v16 = vld [vmem:[%s6801_s20 + $0x20] sm:$0xff]  ;;  %v510_v17 = vcombine.high %v364_v15, %v364_v15  ;;  %v6379_v25 = vld.sshfl [vmem:[%s6801_s20 + $0x10] sm:$0x3 pattern:$0x76325410]  ;;  %v368_v46 = vld [vmem:[%s6801_s20 + $0x38] sm:$0xff] }
  0x13   : > { %v476_v12 = vrot.slane %v361_v9, %v6804_v8  ;;  %v493_v14 = vrot.slane %v362_v10, %v6804_v8  ;;  %v517_v18 = vrot.slane %v364_v15, %v6804_v8  ;;  %v527_v19 = vcombine.high %v365_v16, %v365_v16  ;;  %v6694_v42 = vld.sshfl [vmem:[%s6801_s20 + $0x28] sm:$0x3 pattern:$0x76325410]  ;;  %v367_v43 = vld [vmem:[%s6801_s20 + $0x30] sm:$0xff] }
  0x14   : > { %v534_v20 = vrot.slane %v365_v16, %v6804_v8  ;;  %v483_v21 = vrot.slane %v469_v11, %v6804_v8  ;;  %v500_v23 = vrot.slane %v486_v13, %v6804_v8  ;;  %v524_v26 = vrot.slane %v510_v17, %v6804_v8  ;;  %v370_v60 = vld [vmem:[%s6801_s20 + $0x48] sm:$0xff]  ;;  %v6695_v1 = vld.sshfl [vmem:[%s6801_s20 + $0x40] sm:$0x3 pattern:$0x76325410]  ;;  %v371_v7 = vld [vmem:[%s6801_s20 + $0x50] sm:$0xff] }
  0x15   : > { %v484_v22 = vcombine.high %v476_v12, %v476_v12  ;;  %v501_v24 = vcombine.high %v493_v14, %v493_v14  ;;  %v525_v27 = vcombine.high %v517_v18, %v517_v18  ;;  %v541_v28 = vrot.slane %v527_v19, %v6804_v8 }
  0x16   : > { %v542_v29 = vcombine.high %v534_v20, %v534_v20  ;;  %v485_v30 = vcombine.high %v483_v21, %v483_v21  ;;  %v502_v31 = vcombine.high %v500_v23, %v500_v23  ;;  %v526_v34 = vcombine.high %v524_v26, %v524_v26 }
  0x17   : > { %v1207_v32 = vcombine.low %v476_v12, %v484_v22  ;;  %v1224_v33 = vcombine.low %v493_v14, %v501_v24  ;;  %v1241_v35 = vcombine.low %v6379_v25, %v517_v18  ;;  %v1242_v36 = vcombine.low %v525_v27, %v524_v26  ;;  %v373_v24 = vld [vmem:[%s6801_s20 + $0x60] sm:$0xff] }
  0x18   : > { %v1259_v37 = vcombine.low %v542_v29, %v541_v28  ;;  %v1208_v38 = vcombine.low %v483_v21, %v485_v30  ;;  %v1225_v40 = vcombine.low %v500_v23, %v502_v31  ;;  %v1258_v45 = vcombine.low %v526_v34, %v534_v20  ;;  %v6696_v30 = vld.sshfl [vmem:[%s6801_s20 + $0x58] sm:$0x3 pattern:$0x76325410]  ;;  %v374_v31 = vld [vmem:[%s6801_s20 + $0x68] sm:$0xff] }
  0x19   : > { %v1215_v39 = vrot.slane %v1207_v32, %v6804_v8  ;;  %v1232_v41 = vrot.slane %v1224_v33, %v6804_v8  ;;  %v1249_v44 = vrot.slane %v1241_v35, %v6804_v8  ;;  %v1256_v49 = vrot.slane %v1242_v36, %v6804_v8 }
  0x1a   : > { %v1222_v47 = vrot.slane %v1208_v38, %v6804_v8  ;;  %v1239_v48 = vrot.slane %v1225_v40, %v6804_v8  ;;  %v1273_v50 = vrot.slane %v1259_v37, %v6804_v8  ;;  %v543_v51 = vcombine.high %v541_v28, %v541_v28 }
  0x1b   : > { %v551_v52 = vcombine.high %v367_v43, %v367_v43  ;;  %v558_v53 = vrot.slane %v367_v43, %v6804_v8  ;;  %v1266_v56 = vrot.slane %v1258_v45, %v6804_v8  ;;  %v575_v57 = vrot.slane %v368_v46, %v6804_v8 }
  0x1c   : > { %v1223_v54 = vcombine.low %v1215_v39, %v1222_v47  ;;  %v1240_v55 = vcombine.low %v1232_v41, %v1239_v48  ;;  %v568_v61 = vcombine.high %v368_v46, %v368_v46  ;;  %v1257_v63 = vcombine.low %v1249_v44, %v1256_v49  ;;  %v376_v48 = vld [vmem:[%s6801_s20 + $0x78] sm:$0xff] }
  0x1d   : > { %v565_v58 = vrot.slane %v551_v52, %v6804_v8  ;;  %v566_v59 = vcombine.high %v558_v53, %v558_v53  ;;  %v583_v0 = vcombine.high %v575_v57, %v575_v57  ;;  %v1275_v4 = vcombine.low %v543_v51, %v6694_v42  ;;  %v377_v52 = vld [vmem:[%s6801_s20 + $0x80] sm:$0xff] }
  0x1e   : > { %v1936_v62 = vpack.c.bf16 %v1240_v55, %v1223_v54  ;;  %v582_v9 = vrot.slane %v568_v61, %v6804_v8  ;;  %v1274_v10 = vcombine.low %v1266_v56, %v1273_v50  ;;  %v592_v12 = vcombine.high %v370_v60, %v370_v60  ;;  %v6697_v50 = vld.sshfl [vmem:[%s6801_s20 + $0x70] sm:$0x3 pattern:$0x76325410] }
  0x1f   : > { %v567_v3 = vcombine.high %v565_v58, %v565_v58  ;;  %v1276_v5 = vcombine.low %v558_v53, %v566_v59  ;;  %v1293_v11 = vcombine.low %v575_v57, %v583_v0  ;;  %v599_v13 = vrot.slane %v370_v60, %v6804_v8 }
  0x20   : > { %6470 = vmatmul.mubr.msk.bf16.vlgmr.msra.gmra.mxu0 %vm1958_vm2, %v1936_v62  ;;  %v584_v15 = vcombine.high %v582_v9, %v582_v9  ;;  %v609_v16 = vcombine.high %v371_v7, %v371_v7  ;;  %v606_v17 = vrot.slane %v592_v12, %v6804_v8  ;;  %v616_v19 = vrot.slane %v371_v7, %v6804_v8  ;;  %v379_v62 = vld [vmem:[%s6801_s20 + $0x90] sm:$0xff]  ;;  %v6698_v12 = vld.sshfl [vmem:[%s6801_s20 + $0x88] sm:$0x3 pattern:$0x76325410] }
  0x21   : > { %6473 = vmatprep.mubr.msk.bf16.mxu0 %vm6719_vm1, %v6718_v2  ;;  %v1292_v14 = vcombine.low %v565_v58, %v567_v3  ;;  %v607_v18 = vcombine.high %v599_v13, %v599_v13  ;;  %v1283_v20 = vrot.slane %v1275_v4, %v6804_v8  ;;  %v1290_v21 = vrot.slane %v1276_v5, %v6804_v8 }
  0x22   : > { %v1307_v23 = vrot.slane %v1293_v11, %v6804_v8  ;;  %v1937_v25 = vpack.c.bf16 %v1274_v10, %v1257_v63  ;;  %v608_v26 = vcombine.high %v606_v17, %v606_v17  ;;  %v623_v27 = vrot.slane %v609_v16, %v6804_v8 }
  0x23   : > { %v1300_v22 = vrot.slane %v1292_v14, %v6804_v8  ;;  %v1309_v28 = vcombine.low %v582_v9, %v584_v15  ;;  %v1310_v29 = vcombine.low %v6695_v1, %v599_v13  ;;  %v1326_v32 = vcombine.low %v607_v18, %v606_v17  ;;  %v380_v14 = vld [vmem:[%s6801_s20 + $0x98] sm:$0xff] }
  0x24   : > { %v1327_v33 = vcombine.low %v608_v26, %v616_v19  ;;  %v633_v34 = vcombine.high %v373_v24, %v373_v24  ;;  %v640_v35 = vrot.slane %v373_v24, %v6804_v8  ;;  %v1291_v36 = vcombine.low %v1283_v20, %v1290_v21 }
  0x25   : > { %v1308_v37 = vcombine.low %v1300_v22, %v1307_v23  ;;  %v624_v38 = vcombine.high %v616_v19, %v616_v19  ;;  %v625_v39 = vcombine.high %v623_v27, %v623_v27  ;;  %v650_v41 = vcombine.high %v374_v31, %v374_v31 }
  0x26   : > { %v647_v40 = vrot.slane %v633_v34, %v6804_v8  ;;  %v1317_v42 = vrot.slane %v1309_v28, %v6804_v8  ;;  %v1324_v43 = vrot.slane %v1310_v29, %v6804_v8  ;;  %v657_v44 = vrot.slane %v374_v31, %v6804_v8  ;;  %v383_v29 = vld [vmem:[%s6801_s20 + $0xb0] sm:$0xff]  ;;  %v6699_v31 = vld.sshfl [vmem:[%s6801_s20 + $0xa0] sm:$0x3 pattern:$0x76325410] }
  0x27   : > { %v1334_v45 = vrot.slane %v1326_v32, %v6804_v8  ;;  %v1341_v46 = vrot.slane %v1327_v33, %v6804_v8  ;;  %v648_v47 = vcombine.high %v640_v35, %v640_v35  ;;  %v664_v51 = vrot.slane %v650_v41, %v6804_v8  ;;  %v382_v32 = vld [vmem:[%s6801_s20 + $0xa8] sm:$0xff] }
  0x28   : > { %6474 = vmatmul.mubr.msk.bf16.gmra.mxu0 %vm1958_vm2, %v1937_v25  ;;  %v649_v49 = vcombine.high %v647_v40, %v647_v40  ;;  %v1938_v53 = vpack.c.bf16 %v1308_v37, %v1291_v36  ;;  %v1343_v54 = vcombine.low %v624_v38, %v623_v27  ;;  %v1344_v55 = vcombine.low %v625_v39, %v6696_v30 }
  0x29   : > { %6477 = vmatprep.mubr.msk.bf16.mxu0 %vm6719_vm1, %v6718_v2  ;;  %v1325_v56 = vcombine.low %v1317_v42, %v1324_v43  ;;  %v665_v57 = vcombine.high %v657_v44, %v657_v44  ;;  %v674_v58 = vcombine.high %v376_v48, %v376_v48  ;;  %v681_v59 = vrot.slane %v376_v48, %v6804_v8 }
  0x2a   : > { %v1342_v60 = vcombine.low %v1334_v45, %v1341_v46  ;;  %v1360_v61 = vcombine.low %v640_v35, %v648_v47  ;;  %v691_v63 = vcombine.high %v377_v52, %v377_v52  ;;  %v1361_v0 = vcombine.low %v647_v40, %v649_v49  ;;  %v6700_v46 = vld.sshfl [vmem:[%s6801_s20 + $0xb8] sm:$0x3 pattern:$0x76325410] }
  0x2b   : > { %v666_v1 = vcombine.high %v664_v51, %v664_v51  ;;  %v1351_v3 = vrot.slane %v1343_v54, %v6804_v8  ;;  %v1358_v4 = vrot.slane %v1344_v55, %v6804_v8  ;;  %v698_v5 = vrot.slane %v377_v52, %v6804_v8  ;;  %v385_v52 = vld [vmem:[%s6801_s20 + $0xc0] sm:$0xff] }
  0x2c   : > { %v705_v7 = vrot.slane %v691_v63, %v6804_v8  ;;  %v688_v9 = vrot.slane %v674_v58, %v6804_v8  ;;  %v689_v10 = vcombine.high %v681_v59, %v681_v59  ;;  %v6875_v11 = vcombine.low %v657_v44, %v665_v57 }
  0x2d   : > { %v722_v13 = vrot.slane %v379_v62, %v6804_v8  ;;  %v1939_v15 = vpack.c.bf16 %v1342_v60, %v1325_v56  ;;  %v1368_v16 = vrot.slane %v1360_v61, %v6804_v8  ;;  %v1394_v17 = vcombine.low %v6697_v50, %v681_v59 }
  0x2e   : > { %v1375_v18 = vrot.slane %v1361_v0, %v6804_v8  ;;  %v1378_v19 = vcombine.low %v664_v51, %v666_v1  ;;  %v690_v20 = vcombine.high %v688_v9, %v688_v9  ;;  %v715_v21 = vcombine.high %v379_v62, %v379_v62 }
  0x2f   : > { %v706_v22 = vcombine.high %v698_v5, %v698_v5  ;;  %v707_v23 = vcombine.high %v705_v7, %v705_v7  ;;  %v732_v24 = vcombine.high %v380_v14, %v380_v14  ;;  %v1359_v25 = vcombine.low %v1351_v3, %v1358_v4 }
  0x30   : > { %6478 = vmatmul.mubr.msk.bf16.gmra.mxu0 %vm1958_vm2, %v1938_v53  ;;  %v1385_v26 = vrot.slane %v6875_v11, %v6804_v8  ;;  %v1395_v27 = vcombine.low %v689_v10, %v688_v9  ;;  %v730_v28 = vcombine.high %v722_v13, %v722_v13  ;;  %v1402_v30 = vrot.slane %v1394_v17, %v6804_v8 }
  0x31   : > { %6481 = vmatprep.mubr.msk.bf16.mxu0 %vm6719_vm1, %v6718_v2  ;;  %v729_v33 = vrot.slane %v715_v21, %v6804_v8  ;;  %v739_v34 = vrot.slane %v380_v14, %v6804_v8  ;;  %v746_v35 = vrot.slane %v732_v24, %v6804_v8  ;;  %v1376_v36 = vcombine.low %v1368_v16, %v1375_v18 }
  0x32   : > { %v1392_v37 = vrot.slane %v1378_v19, %v6804_v8  ;;  %v1411_v38 = vcombine.low %v690_v20, %v698_v5  ;;  %v756_v39 = vcombine.high %v382_v32, %v382_v32  ;;  %v1412_v40 = vcombine.low %v706_v22, %v705_v7  ;;  %v386_v5 = vld [vmem:[%s6801_s20 + $0xc8] sm:$0xff] }
  0x33   : > { %v1428_v41 = vcombine.low %v707_v23, %v6698_v12  ;;  %v773_v42 = vcombine.high %v383_v29, %v383_v29  ;;  %v780_v43 = vrot.slane %v383_v29, %v6804_v8  ;;  %v1429_v44 = vcombine.low %v722_v13, %v730_v28 }
  0x34   : > { %v763_v45 = vrot.slane %v382_v32, %v6804_v8  ;;  %v770_v47 = vrot.slane %v756_v39, %v6804_v8  ;;  %v731_v48 = vcombine.high %v729_v33, %v729_v33  ;;  %v747_v49 = vcombine.high %v739_v34, %v739_v34 }
  0x35   : > { %v748_v50 = vcombine.high %v746_v35, %v746_v35  ;;  %v787_v51 = vrot.slane %v773_v42, %v6804_v8  ;;  %v1940_v53 = vpack.c.bf16 %v1376_v36, %v1359_v25  ;;  %v1409_v54 = vrot.slane %v1395_v27, %v6804_v8  ;;  %v388_v27 = vld [vmem:[%s6801_s20 + $0xd8] sm:$0xff]  ;;  %v389_v42 = vld [vmem:[%s6801_s20 + $0xe0] sm:$0xff] }
  0x36   : > { %v771_v55 = vcombine.high %v763_v45, %v763_v45  ;;  %v772_v56 = vcombine.high %v770_v47, %v770_v47  ;;  %v1419_v57 = vrot.slane %v1411_v38, %v6804_v8  ;;  %v788_v58 = vcombine.high %v780_v43, %v780_v43 }
  0x37   : > { %v789_v59 = vcombine.high %v787_v51, %v787_v51  ;;  %v1426_v60 = vrot.slane %v1412_v40, %v6804_v8  ;;  %v1436_v61 = vrot.slane %v1428_v41, %v6804_v8  ;;  %v1443_v62 = vrot.slane %v1429_v44, %v6804_v8 }
  0x38   : > { %6482 = vmatmul.mubr.msk.bf16.gmra.mxu0 %vm1958_vm2, %v1939_v15  ;;  %v797_v63 = vcombine.high %v385_v52, %v385_v52  ;;  %v1445_v0 = vcombine.low %v729_v33, %v731_v48  ;;  %v1446_v1 = vcombine.low %v739_v34, %v747_v49  ;;  %v1462_v3 = vcombine.low %v746_v35, %v748_v50  ;;  %v6924_v33 = vld.sshfl [vmem:[%s6801_s20 + $0xd0] sm:$0x3 pattern:$0x76325410]  ;;  %v6927_v34 = vld [vmem:[%s6801_s20 + $0x138] sm:$0xff] }
  0x39   : > { %6485 = vmatprep.mubr.msk.bf16.mxu0 %vm6719_vm1, %v6718_v2  ;;  %v1463_v4 = vcombine.low %v6699_v31, %v763_v45  ;;  %v1479_v7 = vcombine.low %v771_v55, %v770_v47  ;;  %v1480_v9 = vcombine.low %v772_v56, %v780_v43  ;;  %v1496_v10 = vcombine.low %v788_v58, %v787_v51  ;;  %v6702_v45 = vld.sshfl [vmem:[%s6801_s20 + $0x148] sm:$0x3 pattern:$0x76325410]  ;;  %v403_v49 = vld [vmem:[%s6801_s20 + $0x150] sm:$0xff] }
  0x3a   : > { %v1497_v11 = vcombine.low %v789_v59, %v6700_v46  ;;  %v1393_v12 = vcombine.low %v1385_v26, %v1392_v37  ;;  %v1410_v13 = vcombine.low %v1402_v30, %v1409_v54  ;;  %v804_v14 = vrot.slane %v385_v52, %v6804_v8  ;;  %v401_v37 = vld [vmem:[%s6801_s20 + $0x140] sm:$0xff] }
  0x3b   : > { %v811_v15 = vrot.slane %v797_v63, %v6804_v8  ;;  %v1427_v16 = vcombine.low %v1419_v57, %v1426_v60  ;;  %v1444_v17 = vcombine.low %v1436_v61, %v1443_v62  ;;  %v814_v18 = vcombine.high %v386_v5, %v386_v5 }
  0x3c   : > { %v1453_v19 = vrot.slane %v1445_v0, %v6804_v8  ;;  %v1460_v20 = vrot.slane %v1446_v1, %v6804_v8  ;;  %v1470_v21 = vrot.slane %v1462_v3, %v6804_v8  ;;  %v1477_v22 = vrot.slane %v1463_v4, %v6804_v8 }
  0x3d   : > { %v1487_v23 = vrot.slane %v1479_v7, %v6804_v8  ;;  %v1494_v24 = vrot.slane %v1480_v9, %v6804_v8  ;;  %v1504_v25 = vrot.slane %v1496_v10, %v6804_v8  ;;  %v1511_v26 = vrot.slane %v1497_v11, %v6804_v8 }
  0x3e   : > { %v1941_v28 = vpack.c.bf16 %v1410_v13, %v1393_v12  ;;  %v812_v29 = vcombine.high %v804_v14, %v804_v14  ;;  %v813_v30 = vcombine.high %v811_v15, %v811_v15  ;;  %v821_v31 = vrot.slane %v386_v5, %v6804_v8 }
  0x3f   : > { %v828_v32 = vrot.slane %v814_v18, %v6804_v8  ;;  %v1942_v35 = vpack.c.bf16 %v1444_v17, %v1427_v16  ;;  %v838_v36 = vcombine.high %v388_v27, %v388_v27  ;;  %v6930_v38 = vcombine.low %v1453_v19, %v1460_v20  ;;  %v404_v18 = vld [vmem:[%s6801_s20 + $0x158] sm:$0xff] }
  0x40   : > { %6486 = vmatmul.mubr.msk.bf16.gmra.mxu0 %vm1958_vm2, %v1940_v53  ;;  %v6932_v39 = vcombine.low %v1470_v21, %v1477_v22  ;;  %v6934_v40 = vcombine.low %v1487_v23, %v1494_v24  ;;  %v6936_v41 = vcombine.low %v1504_v25, %v1511_v26  ;;  %v1513_v43 = vcombine.low %v804_v14, %v812_v29  ;;  %v391_v26 = vld [vmem:[%s6801_s20 + $0xf0] sm:$0xff] }
  0x41   : > { %6489 = vmatprep.mubr.msk.bf16.mxu0 %vm6719_vm1, %v6718_v2  ;;  %v1514_v44 = vcombine.low %v811_v15, %v813_v30  ;;  %v1002_v46 = vcombine.high %v6927_v34, %v6927_v34  ;;  %v829_v47 = vcombine.high %v821_v31, %v821_v31  ;;  %v830_v48 = vcombine.high %v828_v32, %v828_v32 }
  0x42   : > { %v1019_v50 = vcombine.high %v401_v37, %v401_v37  ;;  %v1026_v51 = vrot.slane %v401_v37, %v6804_v8  ;;  %v845_v52 = vrot.slane %v388_v27, %v6804_v8  ;;  %v852_v53 = vrot.slane %v838_v36, %v6804_v8  ;;  %v6703_v27 = vld.sshfl [vmem:[%s6801_s20 + $0x160] sm:$0x3 pattern:$0x76325410]  ;;  %v406_v36 = vld [vmem:[%s6801_s20 + $0x168] sm:$0xff] }
  0x43   : > { %v855_v54 = vcombine.high %v389_v42, %v389_v42  ;;  %v6950_v55 = vrot.slane %v1002_v46, %v6804_v8  ;;  %v862_v56 = vrot.slane %v389_v42, %v6804_v8  ;;  %v1521_v59 = vrot.slane %v1513_v43, %v6804_v8 }
  0x44   : > { %v1033_v57 = vrot.slane %v1019_v50, %v6804_v8  ;;  %v1034_v58 = vcombine.high %v1026_v51, %v1026_v51  ;;  %v1528_v60 = vrot.slane %v1514_v44, %v6804_v8  ;;  %v1050_v62 = vrot.slane %v403_v49, %v6804_v8  ;;  %v392_v50 = vld [vmem:[%s6801_s20 + $0xf8] sm:$0xff] }
  0x45   : > { %v1018_v61 = vcombine.high %v6950_v55, %v6950_v55  ;;  %v1530_v63 = vcombine.low %v821_v31, %v829_v47  ;;  %v1531_v0 = vcombine.low %v828_v32, %v830_v48  ;;  %v853_v4 = vcombine.high %v845_v52, %v845_v52 }
  0x46   : > { %v1035_v1 = vcombine.high %v1033_v57, %v1033_v57  ;;  %v1718_v3 = vcombine.low %v1034_v58, %v1033_v57  ;;  %v854_v5 = vcombine.high %v852_v53, %v852_v53  ;;  %v1058_v7 = vcombine.high %v1050_v62, %v1050_v62  ;;  %v6704_v57 = vld.sshfl [vmem:[%s6801_s20 + $0xe8] sm:$0x3 pattern:$0x76325410] }
  0x47   : > { %v1717_v9 = vcombine.low %v1018_v61, %v1026_v51  ;;  %v6960_v10 = vrot.slane %v855_v54, %v6804_v8  ;;  %v870_v11 = vcombine.high %v862_v56, %v862_v56  ;;  %v1943_v14 = vpack.c.bf16 %v6932_v39, %v6930_v38 }
  0x48   : > { %6490 = vmatmul.mubr.msk.bf16.gmra.mxu0 %vm1958_vm2, %v1941_v28  ;;  %v1732_v12 = vrot.slane %v1718_v3, %v6804_v8  ;;  %v1734_v13 = vcombine.low %v1035_v1, %v6702_v45  ;;  %v1547_v15 = vcombine.low %v6924_v33, %v845_v52  ;;  %v1735_v17 = vcombine.low %v1050_v62, %v1058_v7  ;;  %v407_v7 = vld [vmem:[%s6801_s20 + $0x170] sm:$0xff] }
  0x49   : > { %6493 = vmatprep.mubr.msk.bf16.mxu0 %vm6719_vm1, %v6718_v2  ;;  %v1725_v16 = vrot.slane %v1717_v9, %v6804_v8  ;;  %v1944_v19 = vpack.c.bf16 %v6936_v41, %v6934_v40  ;;  %v1538_v20 = vrot.slane %v1530_v63, %v6804_v8  ;;  %v1545_v21 = vrot.slane %v1531_v0, %v6804_v8  ;;  %v6706_v40 = vld.sshfl [vmem:[%s6801_s20 + $0x100] sm:$0x3 pattern:$0x76325410] }
  0x4a   : > { %v1742_v22 = vrot.slane %v1734_v13, %v6804_v8  ;;  %v1548_v23 = vcombine.low %v853_v4, %v852_v53  ;;  %v1749_v25 = vrot.slane %v1735_v17, %v6804_v8  ;;  %v1043_v28 = vcombine.high %v403_v49, %v403_v49 }
  0x4b   : > { %v1733_v24 = vcombine.low %v1725_v16, %v1732_v12  ;;  %v6979_v29 = vcombine.low %v1521_v59, %v1528_v60  ;;  %v1564_v30 = vcombine.low %v854_v5, %v862_v56  ;;  %v1565_v31 = vcombine.low %v870_v11, %v6960_v10  ;;  %v394_v12 = vld [vmem:[%s6801_s20 + $0x108] sm:$0xff] }
  0x4c   : > { %v1060_v32 = vcombine.high %v404_v18, %v404_v18  ;;  %v1555_v33 = vrot.slane %v1547_v15, %v6804_v8  ;;  %v1057_v37 = vrot.slane %v1043_v28, %v6804_v8  ;;  %v1067_v38 = vrot.slane %v404_v18, %v6804_v8 }
  0x4d   : > { %v6986_v39 = vcombine.low %v1538_v20, %v1545_v21  ;;  %v879_v42 = vcombine.high %v391_v26, %v391_v26  ;;  %v1562_v44 = vrot.slane %v1548_v23, %v6804_v8  ;;  %v1572_v48 = vrot.slane %v1564_v30, %v6804_v8  ;;  %v6705_v20 = vld.sshfl [vmem:[%s6801_s20 + $0x178] sm:$0x3 pattern:$0x76325410] }
  0x4e   : > { %v1074_v43 = vrot.slane %v1060_v32, %v6804_v8  ;;  %v1059_v46 = vcombine.high %v1057_v37, %v1057_v37  ;;  %v1075_v47 = vcombine.high %v1067_v38, %v1067_v38  ;;  %v1579_v49 = vrot.slane %v1565_v31, %v6804_v8 }
  0x4f   : > { %v1091_v52 = vrot.slane %v406_v36, %v6804_v8  ;;  %v886_v53 = vrot.slane %v391_v26, %v6804_v8  ;;  %v893_v58 = vrot.slane %v879_v42, %v6804_v8  ;;  %v7003_v61 = vcombine.low %v1555_v33, %v1562_v44  ;;  %v409_v42 = vld [vmem:[%s6801_s20 + $0x180] sm:$0xff] }
  0x50   : > { %6494 = vmatmul.mubr.msk.bf16.gmra.mxu0 %vm1958_vm2, %v1942_v35  ;;  %v1750_v35 = vcombine.low %v1742_v22, %v1749_v25  ;;  %v1076_v51 = vcombine.high %v1074_v43, %v1074_v43  ;;  %v1751_v54 = vcombine.low %v1057_v37, %v1059_v46  ;;  %v1752_v56 = vcombine.low %v1067_v38, %v1075_v47 }
  0x51   : > { %6497 = vmatprep.mubr.msk.bf16.mxu0 %vm6719_vm1, %v6718_v2  ;;  %v1769_v60 = vcombine.low %v6703_v27, %v1091_v52  ;;  %v903_v62 = vrot.slane %v392_v50, %v6804_v8  ;;  %v7008_v1 = vcombine.low %v1572_v48, %v1579_v49  ;;  %v871_v3 = vcombine.high %v6960_v10, %v6960_v10 }
  0x52   : > { %v1951_v45 = vpack.c.bf16 %v1750_v35, %v1733_v24  ;;  %v1768_v59 = vcombine.low %v1074_v43, %v1076_v51  ;;  %v1759_v63 = vrot.slane %v1751_v54, %v6804_v8  ;;  %v1766_v0 = vrot.slane %v1752_v56, %v6804_v8  ;;  %v410_v54 = vld [vmem:[%s6801_s20 + $0x188] sm:$0xff] }
  0x53   : > { %v1783_v5 = vrot.slane %v1769_v60, %v6804_v8  ;;  %v894_v9 = vcombine.high %v886_v53, %v886_v53  ;;  %v1084_v13 = vcombine.high %v406_v36, %v406_v36  ;;  %v895_v15 = vcombine.high %v893_v58, %v893_v58 }
  0x54   : > { %6530 = vmatmul.mubr.msk.bf16.vlgmr.msra.gmra.mxu1 %vm1958_vm2, %v1951_v45  ;;  %v1776_v4 = vrot.slane %v1768_v59, %v6804_v8  ;;  %v1767_v11 = vcombine.low %v1759_v63, %v1766_v0  ;;  %v896_v17 = vcombine.high %v392_v50, %v392_v50  ;;  %v911_v18 = vcombine.high %v903_v62, %v903_v62  ;;  %v395_v45 = vld [vmem:[%s6801_s20 + $0x110] sm:$0xff] }
  0x55   : > { %6533 = vmatprep.mubr.msk.bf16.mxu1 %vm6719_vm1, %v6718_v2  ;;  %v1098_v21 = vrot.slane %v1084_v13, %v6804_v8  ;;  %v1099_v10 = vcombine.high %v1091_v52, %v1091_v52  ;;  %v1101_v22 = vcombine.high %v407_v7, %v407_v7  ;;  %v1946_v23 = vpack.c.bf16 %v7008_v1, %v7003_v61 }
  0x56   : > { %v1784_v16 = vcombine.low %v1776_v4, %v1783_v5  ;;  %v920_v25 = vcombine.high %v394_v12, %v394_v12  ;;  %v1108_v26 = vrot.slane %v407_v7, %v6804_v8  ;;  %v1581_v27 = vcombine.low %v871_v3, %v6704_v57 }
  0x57   : > { %v1582_v28 = vcombine.low %v886_v53, %v894_v9  ;;  %v1115_v30 = vrot.slane %v1101_v22, %v6804_v8  ;;  %v910_v31 = vrot.slane %v896_v17, %v6804_v8  ;;  %v1598_v33 = vcombine.low %v893_v58, %v895_v15 }
  0x58   : > { %6498 = vmatmul.mubr.msk.bf16.gmra.mxu0 %vm1958_vm2, %v1943_v14  ;;  %v1945_v14 = vpack.c.bf16 %v6986_v39, %v6979_v29  ;;  %v1952_v24 = vpack.c.bf16 %v1784_v16, %v1767_v11  ;;  %v1100_v29 = vcombine.high %v1098_v21, %v1098_v21  ;;  %v1116_v32 = vcombine.high %v1108_v26, %v1108_v26 }
  0x59   : > { %6501 = vmatprep.mubr.msk.bf16.mxu0 %vm6719_vm1, %v6718_v2  ;;  %v1599_v35 = vcombine.low %v903_v62, %v911_v18  ;;  %v1117_v41 = vcombine.high %v1115_v30, %v1115_v30  ;;  %v927_v36 = vrot.slane %v394_v12, %v6804_v8  ;;  %v934_v37 = vrot.slane %v920_v25, %v6804_v8  ;;  %v397_v62 = vld [vmem:[%s6801_s20 + $0x120] sm:$0xff] }
  0x5a   : > { %v1786_v38 = vcombine.low %v1100_v29, %v1108_v26  ;;  %v1802_v39 = vcombine.low %v1116_v32, %v1115_v30  ;;  %v1589_v43 = vrot.slane %v1581_v27, %v6804_v8  ;;  %v1596_v44 = vrot.slane %v1582_v28, %v6804_v8  ;;  %v6707_v27 = vld.sshfl [vmem:[%s6801_s20 + $0x118] sm:$0x3 pattern:$0x76325410] }
  0x5b   : > { %v1803_v47 = vcombine.low %v1117_v41, %v6705_v20  ;;  %v912_v48 = vcombine.high %v910_v31, %v910_v31  ;;  %v1606_v51 = vrot.slane %v1598_v33, %v6804_v8  ;;  %v1613_v52 = vrot.slane %v1599_v35, %v6804_v8 }
  0x5c   : > { %6534 = vmatmul.mubr.msk.bf16.gmra.mxu1 %vm1958_vm2, %v1952_v24  ;;  %v1800_v49 = vrot.slane %v1786_v38, %v6804_v8  ;;  %v1810_v50 = vrot.slane %v1802_v39, %v6804_v8  ;;  %v1125_v56 = vcombine.high %v409_v42, %v409_v42  ;;  %v935_v57 = vcombine.high %v927_v36, %v927_v36  ;;  %v412_v39 = vld [vmem:[%s6801_s20 + $0x198] sm:$0xff] }
  0x5d   : > { %6537 = vmatprep.mubr.msk.bf16.mxu1 %vm6719_vm1, %v6718_v2  ;;  %v1817_v53 = vrot.slane %v1803_v47, %v6804_v8  ;;  %v936_v58 = vcombine.high %v934_v37, %v934_v37  ;;  %v944_v59 = vrot.slane %v395_v45, %v6804_v8  ;;  %v937_v0 = vcombine.high %v395_v45, %v395_v45  ;;  %v398_v47 = vld [vmem:[%s6801_s20 + $0x128] sm:$0xff] }
  0x5e   : > { %v1132_v3 = vrot.slane %v409_v42, %v6804_v8  ;;  %v1139_v4 = vrot.slane %v1125_v56, %v6804_v8  ;;  %v7055_v5 = vcombine.low %v1589_v43, %v1596_v44  ;;  %v1615_v7 = vcombine.low %v910_v31, %v912_v48  ;;  %v413_v42 = vld [vmem:[%s6801_s20 + $0x1a0] sm:$0xff] }
  0x5f   : > { %v1818_v63 = vcombine.low %v1810_v50, %v1817_v53  ;;  %v1616_v9 = vcombine.low %v6706_v40, %v927_v36  ;;  %v1142_v11 = vcombine.high %v410_v54, %v410_v54  ;;  %v961_v13 = vcombine.high %v397_v62, %v397_v62 }
  0x60   : > { %6502 = vmatmul.mubr.msk.bf16.gmra.mxu0 %vm1958_vm2, %v1944_v19  ;;  %v1785_v19 = vcombine.low %v1099_v10, %v1098_v21  ;;  %v1140_v15 = vcombine.high %v1132_v3, %v1132_v3  ;;  %v1141_v16 = vcombine.high %v1139_v4, %v1139_v4  ;;  %v1632_v17 = vcombine.low %v935_v57, %v934_v37 }
  0x61   : > { %6505 = vmatprep.mubr.msk.bf16.mxu0 %vm6719_vm1, %v6718_v2  ;;  %v1149_v18 = vrot.slane %v410_v54, %v6804_v8  ;;  %v1156_v20 = vrot.slane %v1142_v11, %v6804_v8  ;;  %v1633_v21 = vcombine.low %v936_v58, %v944_v59  ;;  %v951_v10 = vrot.slane %v937_v0, %v6804_v8 }
  0x62   : > { %v1793_v46 = vrot.slane %v1785_v19, %v6804_v8  ;;  %v1819_v22 = vcombine.low %v1132_v3, %v1140_v15  ;;  %v1820_v24 = vcombine.low %v1139_v4, %v1141_v16  ;;  %v1623_v25 = vrot.slane %v1615_v7, %v6804_v8  ;;  %v6708_v19 = vld.sshfl [vmem:[%s6801_s20 + $0x190] sm:$0x3 pattern:$0x76325410] }
  0x63   : > { %v1630_v26 = vrot.slane %v1616_v9, %v6804_v8  ;;  %v1157_v28 = vcombine.high %v1149_v18, %v1149_v18  ;;  %v1158_v29 = vcombine.high %v1156_v20, %v1156_v20  ;;  %v968_v30 = vrot.slane %v397_v62, %v6804_v8  ;;  %v6709_v15 = vld.sshfl [vmem:[%s6801_s20 + $0x130] sm:$0x3 pattern:$0x76325410] }
  0x64   : > { %v1801_v60 = vcombine.low %v1793_v46, %v1800_v49  ;;  %v975_v31 = vrot.slane %v961_v13, %v6804_v8  ;;  %v1827_v32 = vrot.slane %v1819_v22, %v6804_v8  ;;  %v1834_v33 = vrot.slane %v1820_v24, %v6804_v8 }
  0x65   : > { %v1640_v35 = vrot.slane %v1632_v17, %v6804_v8  ;;  %v1836_v40 = vcombine.low %v1149_v18, %v1157_v28  ;;  %v1837_v41 = vcombine.low %v1156_v20, %v1158_v29  ;;  %v1647_v36 = vrot.slane %v1633_v21, %v6804_v8 }
  0x66   : > { %v1953_v12 = vpack.c.bf16 %v1818_v63, %v1801_v60  ;;  %v952_v37 = vcombine.high %v944_v59, %v944_v59  ;;  %v953_v38 = vcombine.high %v951_v10, %v951_v10  ;;  %v1835_v44 = vcombine.low %v1827_v32, %v1834_v33 }
  0x67   : > { %v1844_v45 = vrot.slane %v1836_v40, %v6804_v8  ;;  %v1851_v46 = vrot.slane %v1837_v41, %v6804_v8  ;;  %v1631_v61 = vcombine.low %v1623_v25, %v1630_v26  ;;  %v976_v1 = vcombine.high %v968_v30, %v968_v30 }
  0x68   : > { %6506 = vmatmul.mubr.msk.bf16.gmra.mxu0 %vm1958_vm2, %v1945_v14  ;;  %v1614_v14 = vcombine.low %v1606_v51, %v1613_v52  ;;  %6538 = vmatmul.mubr.msk.bf16.gmra.mxu1 %vm1958_vm2, %v1953_v12  ;;  %v1166_v49 = vcombine.high %v412_v39, %v412_v39  ;;  %v1173_v50 = vrot.slane %v412_v39, %v6804_v8 }
  0x69   : > { %6509 = vmatprep.mubr.msk.bf16.mxu0 %vm6719_vm1, %v6718_v2  ;;  %6541 = vmatprep.mubr.msk.bf16.mxu1 %vm6719_vm1, %v6718_v2  ;;  %v1852_v48 = vcombine.low %v1844_v45, %v1851_v46  ;;  %v1183_v51 = vcombine.high %v413_v42, %v413_v42  ;;  %v1648_v52 = vcombine.low %v1640_v35, %v1647_v36  ;;  %v6380_v45 = vld.sshfl [vmem:[%s6801_s20 + $0x1a8] sm:$0x3 pattern:$0x76325410] }
  0x6a   : > { %v1947_v43 = vpack.c.bf16 %v1614_v14, %v7055_v5  ;;  %v1649_v53 = vcombine.low %v952_v37, %v951_v10  ;;  %v1650_v54 = vcombine.low %v953_v38, %v6707_v27  ;;  %v978_v56 = vcombine.high %v398_v47, %v398_v47 }
  0x6b   : > { %v1954_v57 = vpack.c.bf16 %v1852_v48, %v1835_v44  ;;  %v1180_v58 = vrot.slane %v1166_v49, %v6804_v8  ;;  %v1181_v59 = vcombine.high %v1173_v50, %v1173_v50  ;;  %v1190_v60 = vrot.slane %v413_v42, %v6804_v8  ;;  %v6637_v48 = vld [vmem:[%s9597_s7] sm:$0xff]  }
  0x6c   : > { %v1666_v62 = vcombine.low %v968_v30, %v976_v1  ;;  %v1197_v0 = vrot.slane %v1183_v51, %v6804_v8  ;;  %v1853_v3 = vcombine.low %v6708_v19, %v1173_v50  ;;  %v985_v4 = vrot.slane %v398_v47, %v6804_v8  ;;  %v4013_v50 = vld [vmem:[%s9594_s4] sm:$0x7]  ;;  %6553 = vmatprep.subr.bf16.mxu1 %v6637_v48 }
  0x6d   : > { %v1182_v5 = vcombine.high %v1180_v58, %v1180_v58  ;;  %v1198_v7 = vcombine.high %v1190_v60, %v1190_v60  ;;  %v1854_v9 = vcombine.low %v1181_v59, %v1180_v58  ;;  %v992_v11 = vrot.slane %v978_v56, %v6804_v8  ;;  %6554 = vmatpush3.bf16.msra.mxu1 %v6637_v48 }
  0x6e   : > { %v1009_v12 = vrot.slane %v6927_v34, %v6804_v8  ;;  %v1861_v13 = vrot.slane %v1853_v3, %v6804_v8  ;;  %v1948_v18 = vpack.c.bf16 %v1648_v52, %v1631_v61  ;;  %v1657_v20 = vrot.slane %v1649_v53, %v6804_v8  ;;  %v7138_v52 = vld [vmem:[%s9592_s2] ss:$0 sm:$0xff] }
  0x6f   : > { %v1868_v16 = vrot.slane %v1854_v9, %v6804_v8  ;;  %v1870_v14 = vcombine.low %v1182_v5, %v1190_v60  ;;  %v1871_v17 = vcombine.low %v1198_v7, %v1197_v0  ;;  %v1664_v21 = vrot.slane %v1650_v54, %v6804_v8  ;;  %v7143_v54 = vld [vmem:[%s9593_s3] ss:$0 sm:$0xff] }
  0x70   : > { %6510 = vmatmul.mubr.msk.bf16.gmra.mxu0 %vm1958_vm2, %v1946_v23  ;;  %v977_v23 = vcombine.high %v975_v31, %v975_v31  ;;  %6542 = vmatmul.mubr.msk.bf16.gmra.mxu1 %vm1958_vm2, %v1954_v57  ;;  %v1674_v34 = vrot.slane %v1666_v62, %v6804_v8  ;;  %v993_v26 = vcombine.high %v985_v4, %v985_v4  ;;  %v7146_v56 = vsub.s32 0, %v6792_v6 }
  0x71   : > { %6513 = vmatprep.mubr.msk.bf16.mxu0 %vm6719_vm1, %v6718_v2  ;;  %6545 = vmatprep.mubr.msk.bf16.mxu1 %vm6719_vm1, %v6718_v2  ;;  %v1869_v22 = vcombine.low %v1861_v13, %v1868_v16  ;;  %v1878_v24 = vrot.slane %v1870_v14, %v6804_v8  ;;  %v1885_v25 = vrot.slane %v1871_v17, %v6804_v8  ;;  %v7152_v58 = vsub.s32 2, %v6792_v6 }
  0x72   : > { %v1667_v63 = vcombine.low %v975_v31, %v977_v23  ;;  %v994_v27 = vcombine.high %v992_v11, %v992_v11  ;;  %v1017_v28 = vcombine.high %v1009_v12, %v1009_v12  ;;  %v1665_v30 = vcombine.low %v1657_v20, %v1664_v21  ;;  %v4014_v21 = vld [vmem:[%s9594_s4 + $0x4] sm:$0x7] }
  0x73   : > { %v1886_v29 = vcombine.low %v1878_v24, %v1885_v25  ;;  %v1683_v33 = vcombine.low %v985_v4, %v993_v26  ;;  %v1700_v40 = vcombine.low %v6709_v15, %v1009_v12  ;;  %v1199_v44 = vcombine.high %v1197_v0, %v1197_v0 }
  0x74   : > { %v1681_v10 = vrot.slane %v1667_v63, %v6804_v8  ;;  %v1684_v35 = vcombine.low %v992_v11, %v994_v27  ;;  %v1701_v41 = vcombine.low %v1017_v28, %v6950_v55  ;;  %v7157_v0 = vrot.slane %v4013_v50, %v7146_v56 }
  0x75   : > { %v1955_v32 = vpack.c.bf16 %v1886_v29, %v1869_v22  ;;  %v1691_v36 = vrot.slane %v1683_v33, %v6804_v8  ;;  %v1708_v38 = vrot.slane %v1700_v40, %v6804_v8  ;;  %v1887_v46 = vcombine.low %v1199_v44, %v6380_v45 }
  0x76   : > { %v1682_v31 = vcombine.low %v1674_v34, %v1681_v10  ;;  %v1698_v37 = vrot.slane %v1684_v35, %v6804_v8  ;;  %v1715_v39 = vrot.slane %v1701_v41, %v6804_v8  ;;  %v7160_v3 = vrot.slane %v4013_v50, %v7152_v58 }
  0x77   : > { %v1894_v47 = vrot.slane %v1887_v46, %v6804_v8  ;;  %v4020_v15 = vmul.f32 0.0, %v7157_v0  ;;  %v7173_v10 = vadd.s32 16, %v6792_v6  ;;  %v7179_v28 = vrot.slane %v4014_v21, %v7146_v56 }
  0x78   : > { %6514 = vmatmul.mubr.msk.bf16.gmra.mxu0 %vm1958_vm2, %v1947_v43  ;;  %6546 = vmatmul.mubr.msk.bf16.gmra.mxu1 %vm1958_vm2, %v1955_v32  ;;  %v1949_v19 = vpack.c.bf16 %v1682_v31, %v1665_v30  ;;  %v1699_v55 = vcombine.low %v1691_v36, %v1698_v37  ;;  %v1716_v42 = vcombine.low %v1708_v38, %v1715_v39  ;;  %v4333_v14 = vmul.f32 0.0, %v7160_v3 }
  0x79   : > { %6517 = vmatprep.mubr.msk.bf16.mxu0 %vm6719_vm1, %v6718_v2  ;;  %6549 = vmatprep.mubr.msk.bf16.mxu1 %vm6719_vm1, %v6718_v2  ;;  %v1956_v61 = vpack.c.bf16 %v1894_v47, %v1894_v47  ;;  %9724 = vst [vmem:[#allocation2_spill] sm:$0xff] %v7179_v28  ;;  %vm3148_vm4 = vcmp.le.s32.totalorder %v7173_v10, 16 }
  0x7a   : > { %v1950_v43 = vpack.c.bf16 %v1716_v42, %v1699_v55  ;;  %v4430_v30 = vrot.slane %v4333_v14, 2 }
  0x80   : > { %6518 = vmatmul.mubr.msk.bf16.gmra.mxu0 %vm1958_vm2, %v1948_v18  ;;  %6550 = vmatmul.mubr.msk.bf16.gmra.mxu1 %vm1958_vm2, %v1956_v61 }
  0x81   : > { %6521 = vmatprep.mubr.msk.bf16.mxu0 %vm6719_vm1, %v6718_v2 }
  0x88   : > { %6522 = vmatmul.mubr.msk.bf16.gmra.mxu0 %vm1958_vm2, %v1949_v19  ;;  %v7186_v19 = vrot.slane %v4014_v21, %v7152_v58 }
  0x89   : > { %6525 = vmatprep.mubr.msk.bf16.mxu0 %vm6719_vm1, %v6718_v2  ;;  %v7130_v2 = vsub.s32 1, %v6792_v6 }
  0x8b   : > { %v7149_v57 = vrot.slane %v4013_v50, %v7130_v2  ;;  %v7183_v41 = vrot.slane %v4014_v21, %v7130_v2 }
  0x8d   : > { %v4088_v4 = vmul.f32 0.0, %v7149_v57 }
  0x8f   : > { %v4185_v16 = vrot.slane %v4088_v4, 1 }
  0x90   : > { %6526 = vmatmul.mubr.msk.bf16.gmra.mxu0 %vm1958_vm2, %v1950_v43  ;;  %v4015_v43 = vld [vmem:[%s9594_s4 + $0x8] sm:$0x7] }
  0x91   : > { %v4297_v29 = vadd.f32 %v4185_v16, %v4020_v15  ;;  %v7206_v4 = vrot.slane %v4015_v43, %v7152_v58 }
  0x93   : > { %v7195_v46 = vadd.f32 %v4430_v30, %v4297_v29 }
  0xe0   : > { %v2060_v1 = vpop.f32.mrf.mxu0 }
  0xe2   : > { %v6471_v23 = vpop.f32.mrf.mxu0 }
  0xe4   : > { %v2063_v49 = vpop.f32.mrf.mxu0 }
  0xe6   : > { %v6472_v51 = vpop.f32.mrf.mxu0 }
  0xe8   : > { %v2068_v53 = vpop.f32.mrf.mxu0 }
  0xe9   : > { %v2235_v59 = vmul.f32 %v7138_v52, %v2068_v53 }
  0xea   : > { %v6475_v60 = vpop.f32.mrf.mxu0 }
  0xeb   : > { %v2283_v62 = vadd.f32 %v7143_v54, %v2235_v59  ;;  %v7202_v59 = vrot.slane %v4015_v43, %v7130_v2 }
  0xec   : > { %v2071_v63 = vpop.f32.mrf.mxu0 }
  0xed   : > { %v2324_v5 = vmax.f32 %v2283_v62, 0.0  ;;  %v2236_v7 = vmul.f32 %v7138_v52, %v2071_v63 }
  0xee   : > { %v6476_v9 = vpop.f32.mrf.mxu0 }
  0xef   : > { %v2365_v11 = vmin.f32 %v2324_v5, 6.0  ;;  %v2284_v12 = vadd.f32 %v7143_v54, %v2236_v7  ;;  %v7209_v5 = vrot.slane %v4015_v43, %v7146_v56 }
  0xf0   : > { %v2076_v13 = vpop.f32.mrf.mxu0 }
  0xf1   : > { %v2479_v17 = vcombine.high %v2365_v11, %v2365_v11  ;;  %v2486_v18 = vrot.slane %v2365_v11, %v6804_v8  ;;  %v2325_v20 = vmax.f32 %v2284_v12, 0.0  ;;  %v2237_v34 = vmul.f32 %v7138_v52, %v2076_v13 }
  0xf2   : > { %v6479_v22 = vpop.f32.mrf.mxu0 }
  0xf3   : > { %v2493_v24 = vrot.slane %v2479_v17, %v6804_v8  ;;  %v2494_v25 = vcombine.high %v2486_v18, %v2486_v18  ;;  %v2366_v26 = vmin.f32 %v2325_v20, 6.0  ;;  %v2285_v27 = vadd.f32 %v7143_v54, %v2237_v34 }
  0xf4   : > { %v2079_v31 = vpop.f32.mrf.mxu0 }
  0xf5   : > { %v3208_v32 = vcombine.low %v2494_v25, %v2493_v24  ;;  %v2495_v33 = vcombine.high %v2493_v24, %v2493_v24  ;;  %v2496_v35 = vcombine.high %v2366_v26, %v2366_v26  ;;  %v2503_v40 = vrot.slane %v2366_v26, %v6804_v8 }
  0xf6   : > { %v2326_v36 = vmax.f32 %v2285_v27, 0.0  ;;  %v2238_v37 = vmul.f32 %v7138_v52, %v2079_v31  ;;  %v6480_v38 = vpop.f32.mrf.mxu0 }
  0xf7   : > { %v2510_v39 = vrot.slane %v2496_v35, %v6804_v8  ;;  %v2511_v55 = vcombine.high %v2503_v40, %v2503_v40  ;;  %v3209_v42 = vcombine.low %v2495_v33, %v2503_v40  ;;  %v3216_v44 = vrot.slane %v3208_v32, %v6804_v8 }
  0xf8   : > { %v2367_v45 = vmin.f32 %v2326_v36, 6.0  ;;  %v2286_v47 = vadd.f32 %v7143_v54, %v2238_v37  ;;  %v2084_v61 = vpop.f32.mrf.mxu0 }
  0xf9   : > { %v3223_v1 = vrot.slane %v3209_v42, %v6804_v8  ;;  %v3225_v23 = vcombine.low %v2511_v55, %v2510_v39  ;;  %v2512_v48 = vcombine.high %v2510_v39, %v2510_v39  ;;  %v2239_v49 = vmul.f32 %v7138_v52, %v2084_v61 }
  0xfa   : > { %v2513_v50 = vcombine.high %v2367_v45, %v2367_v45  ;;  %v2520_v51 = vrot.slane %v2367_v45, %v6804_v8  ;;  %v2327_v53 = vmax.f32 %v2286_v47, 0.0  ;;  %v6483_v60 = vpop.f32.mrf.mxu0 }
  0xfb   : > { %v3224_v62 = vcombine.low %v3216_v44, %v3223_v1  ;;  %v2287_v63 = vadd.f32 %v7143_v54, %v2239_v49  ;;  %v3233_v2 = vrot.slane %v3225_v23, %v6804_v8 }
  0xfc   : > { %v2527_v7 = vrot.slane %v2513_v50, %v6804_v8  ;;  %v2528_v9 = vcombine.high %v2520_v51, %v2520_v51  ;;  %v3226_v11 = vcombine.low %v2512_v48, %v2520_v51  ;;  %v2368_v12 = vmin.f32 %v2327_v53, 6.0  ;;  %v2087_v13 = vpop.f32.mrf.mxu0 }
  0xfd   : > { %v3962_v15 = vsel %vm3137_vm3, %v3224_v62, 0.0  ;;  %v2328_v16 = vmax.f32 %v2287_v63, 0.0  ;;  %v7216_v58 = vmul.f32 %v7138_v52, %v2087_v13 }
  0xfe   : > { %v4022_v56 = vmul.f32 %v7157_v0, %v3962_v15  ;;  %v4091_v14 = vmul.f32 %v7149_v57, %v3962_v15  ;;  %v4336_v17 = vmul.f32 %v7160_v3, %v3962_v15  ;;  %v7222_v18 = vmul.f32 %v7179_v28, %v3962_v15  ;;  %v6484_v20 = vpop.f32.mrf.mxu0 }
  0xff   : > { %v7225_v21 = vmul.f32 %v7183_v41, %v3962_v15  ;;  %v7228_v34 = vmul.f32 %v7186_v19, %v3962_v15  ;;  %v2529_v22 = vcombine.high %v2527_v7, %v2527_v7  ;;  %v3240_v24 = vrot.slane %v3226_v11, %v6804_v8 }
 0x100   : > { %v4190_v25 = vrot.slane %v4091_v14, 1  ;;  %v4435_v26 = vrot.slane %v4336_v17, 2  ;;  %v3248_v27 = vrot.slane %v2528_v9, %v6804_v8  ;;  %v2530_v29 = vcombine.high %v2368_v12, %v2368_v12  ;;  %v2092_v30 = vpop.f32.mrf.mxu0 }
 0x101   : > { %v3241_v33 = vcombine.low %v3233_v2, %v3240_v24  ;;  %v3249_v35 = vcombine.low %v2527_v7, %v2529_v22  ;;  %v2537_v36 = vrot.slane %v2368_v12, %v6804_v8  ;;  %v2369_v38 = vmin.f32 %v2328_v16, 6.0 }
 0x102   : > { %v3964_v40 = vsel %vm3148_vm4, %v3248_v27, 0.0  ;;  %v2544_v37 = vrot.slane %v2530_v29, %v6804_v8  ;;  %v6487_v39 = vpop.f32.mrf.mxu0 }
 0x103   : > { %v3257_v55 = vrot.slane %v3249_v35, %v6804_v8  ;;  %v4023_v42 = vmul.f32 %v7157_v0, %v3241_v33  ;;  %v4092_v43 = vmul.f32 %v7149_v57, %v3241_v33  ;;  %v4093_v44 = vmul.f32 %v7149_v57, %v3964_v40 }
 0x104   : > { %v4337_v45 = vmul.f32 %v7160_v3, %v3241_v33  ;;  %v4338_v47 = vmul.f32 %v7160_v3, %v3964_v40  ;;  %v4579_v61 = vmul.f32 %v7179_v28, %v3241_v33  ;;  %v7246_v1 = vmul.f32 %v7183_v41, %v3241_v33  ;;  %v2095_v23 = vpop.f32.mrf.mxu0 }
 0x105   : > { %v4191_v48 = vrot.slane %v4092_v43, 1  ;;  %v4193_v49 = vrot.slane %v4093_v44, 1  ;;  %v4648_v50 = vmul.f32 %v7183_v41, %v3964_v40  ;;  %v7250_v51 = vmul.f32 %v7186_v19, %v3241_v33 }
 0x106   : > { %v4436_v53 = vrot.slane %v4337_v45, 2  ;;  %v4438_v60 = vrot.slane %v4338_v47, 2  ;;  %v4611_v62 = vadd.f32 %v4579_v61, %v7195_v46  ;;  %v9602_v63 = vrot.slane %v7246_v1, 1  ;;  %v6488_v7 = vpop.f32.mrf.mxu0 }
 0x107   : > { %v4192_v9 = vsel %vm4184_vm5, %v4190_v25, %v4191_v48  ;;  %v4194_v11 = vsel %vm4184_vm5, %v4191_v48, %v4193_v49  ;;  %v4745_v12 = vrot.slane %v4648_v50, 1  ;;  %v4892_v13 = vmul.f32 %v7186_v19, %v3964_v40 }
 0x108   : > { %v4299_v2 = vadd.f32 %v4192_v9, %v4022_v56  ;;  %v4300_v15 = vadd.f32 %v4194_v11, %v4023_v42  ;;  %v4437_v16 = vsel %vm4429_vm6, %v4435_v26, %v4436_v53  ;;  %v4439_v14 = vsel %vm4429_vm6, %v4436_v53, %v4438_v60  ;;  %v2100_v17 = vpop.f32.mrf.mxu0 }
 0x109   : > { %v4746_v20 = vsel %vm4184_vm5, %v9602_v63, %v4745_v12  ;;  %v9601_v22 = vrot.slane %v7250_v51, 2  ;;  %v4989_v24 = vrot.slane %v4892_v13, 2  ;;  %v2545_v25 = vcombine.high %v2537_v36, %v2537_v36 }
 0x10a   : > { %v7263_v27 = vadd.f32 %v4437_v16, %v4299_v2  ;;  %v4545_v29 = vadd.f32 %v4439_v14, %v4300_v15  ;;  %v7265_v33 = vadd.f32 %v4746_v20, %v4611_v62  ;;  %v2546_v56 = vcombine.high %v2544_v37, %v2544_v37  ;;  %v6491_v35 = vpop.f32.mrf.mxu0 }
 0x10b   : > { %v7270_v26 = vsel %vm4429_vm6, %v9601_v22, %v4989_v24  ;;  %v3250_v40 = vcombine.low %v2537_v36, %v2545_v25  ;;  %v2547_v39 = vcombine.high %v2369_v38, %v2369_v38  ;;  %v2554_v42 = vrot.slane %v2369_v38, %v6804_v8 }
 0x10c   : > { %v3266_v43 = vcombine.low %v2544_v37, %v2546_v56  ;;  %v2288_v44 = vadd.f32 %v7143_v54, %v7216_v58  ;;  %v2241_v45 = vmul.f32 %v7138_v52, %v2092_v30  ;;  %v2242_v47 = vmul.f32 %v7138_v52, %v2095_v23  ;;  %v2103_v61 = vpop.f32.mrf.mxu0 }
 0x10d   : > { %v3264_v48 = vrot.slane %v3250_v40, %v6804_v8  ;;  %v7279_v49 = vrot.slane %v2547_v39, %v6804_v8  ;;  %v2562_v50 = vcombine.high %v2554_v42, %v2554_v42  ;;  %v2243_v36 = vmul.f32 %v7138_v52, %v2100_v17 }
 0x10e   : > { %v3274_v53 = vrot.slane %v3266_v43, %v6804_v8  ;;  %v2329_v38 = vmax.f32 %v2288_v44, 0.0  ;;  %v2289_v37 = vadd.f32 %v7143_v54, %v2241_v45  ;;  %v7285_v58 = vadd.f32 %v7143_v54, %v2242_v47  ;;  %v6492_v30 = vpop.f32.mrf.mxu0 }
 0x10f   : > { %v3265_v60 = vcombine.low %v3257_v55, %v3264_v48  ;;  %v3267_v23 = vcombine.low %v2554_v42, %v2562_v50  ;;  %v3289_v62 = vrot.slane %v7279_v49, %v6804_v8  ;;  %v2563_v7 = vcombine.high %v7279_v49, %v7279_v49 }
 0x110   : > { %v2370_v9 = vmin.f32 %v2329_v38, 6.0  ;;  %v2330_v11 = vmax.f32 %v2289_v37, 0.0  ;;  %v2331_v12 = vmax.f32 %v7285_v58, 0.0  ;;  %v7293_v13 = vadd.f32 %v7143_v54, %v2243_v36  ;;  %v7295_v2 = vpop.f32.mrf.mxu0 }
 0x111   : > { %v7299_v15 = vsel %vm3137_vm3, %v3265_v60, 0.0  ;;  %v3281_v55 = vrot.slane %v3267_v23, %v6804_v8  ;;  %v7304_v16 = vsel %vm3148_vm4, %v3289_v62, 0.0  ;;  %v7307_v14 = vmul.f32 %v7138_v52, %v2103_v61 }
 0x112   : > { %v7311_v17 = vmul.f32 %v7149_v57, %v7299_v15  ;;  %v7315_v20 = vmul.f32 %v7179_v28, %v7299_v15  ;;  %v7319_v24 = vmul.f32 %v7183_v41, %v7299_v15  ;;  %v7323_v25 = vmul.f32 %v7186_v19, %v7299_v15  ;;  %v6495_v56 = vpop.f32.mrf.mxu0 }
 0x113   : > { %v7325_v35 = vcombine.low %v3274_v53, %v3281_v55  ;;  %v4096_v40 = vmul.f32 %v7149_v57, %v7304_v16  ;;  %v4341_v39 = vmul.f32 %v7160_v3, %v7304_v16  ;;  %v4651_v42 = vmul.f32 %v7183_v41, %v7304_v16 }
 0x114   : > { %9725 = vst [vmem:[#allocation3_spill] sm:$0xff] %v7311_v17  ;;  %v4895_v45 = vmul.f32 %v7186_v19, %v7304_v16  ;;  %v7339_v47 = vmul.f32 %v7202_v59, %v7304_v16  ;;  %v7341_v61 = vpop.f32.mrf.mxu0  ;;  %v2564_v44 = vcombine.high %v2370_v9, %v2370_v9  ;;  %v7369_v32 = vpop.f32.mrf.mxu1  ;;  %v2371_v31 = vmin.f32 %v2330_v11, 6.0 }
 0x115   : > { %v4025_v48 = vmul.f32 %v7157_v0, %v7325_v35  ;;  %v7347_v49 = vmul.f32 %v7149_v57, %v7325_v35  ;;  %v4198_v50 = vrot.slane %v4096_v40, 1  ;;  %v7351_v36 = vmul.f32 %v7160_v3, %v7325_v35  ;;  %9728 = vst [vmem:[#allocation6_spill] sm:$0xff] %v7369_v32 }
 0x116   : > { %v4443_v53 = vrot.slane %v4341_v39, 2  ;;  %v4581_v38 = vmul.f32 %v7179_v28, %v7325_v35  ;;  %v7357_v37 = vmul.f32 %v7183_v41, %v7325_v35  ;;  %v4750_v58 = vrot.slane %v4651_v42, 1  ;;  %v6496_v30 = vpop.f32.mrf.mxu0 }
 0x117   : > { %9726 = vst [vmem:[#allocation4_spill] sm:$0xff] %v7347_v49  ;;  %9727 = vst [vmem:[#allocation5_spill] sm:$0xff] %v7351_v36  ;;  %v9603_v60 = vrot.slane %v7347_v49, 1  ;;  %v9604_v23 = vrot.slane %v7351_v36, 2  ;;  %v7363_v62 = vmul.f32 %v7186_v19, %v7325_v35  ;;  %v4994_v55 = vrot.slane %v4895_v45, 2 }
 0x118   : > { %v4613_v56 = vadd.f32 %v4581_v38, %v4545_v29  ;;  %v9608_v40 = vrot.slane %v7357_v37, 1  ;;  %v7367_v43 = vpop.f32.mrf.mxu0  ;;  %v2571_v45 = vrot.slane %v2370_v9, %v6804_v8  ;;  %v2578_v22 = vrot.slane %v2564_v44, %v6804_v8 }
 0x119   : > { %v4199_v42 = vsel %vm4184_vm5, %v9603_v60, %v4198_v50  ;;  %v7377_v30 = vsel %vm4429_vm6, %v9604_v23, %v4443_v53  ;;  %v9607_v29 = vrot.slane %v7363_v62, 2  ;;  %v6531_v50 = vpop.f32.mrf.mxu1  ;;  %v2581_v9 = vcombine.high %v2371_v31, %v2371_v31 }
 0x11a   : > { %9729 = vst [vmem:[#allocation7_spill] sm:$0xff] %v7377_v30  ;;  %v7381_v38 = vadd.f32 %v4199_v42, %v4025_v48  ;;  %v4751_v39 = vsel %vm4184_vm5, %v9608_v40, %v4750_v58  ;;  %v6499_v63 = vpop.f32.mrf.mxu0  ;;  %v2579_v23 = vcombine.high %v2571_v45, %v2571_v45  ;;  %v3290_v32 = vcombine.low %v2563_v7, %v2571_v45 }
 0x11b   : > { %v4857_v60 = vadd.f32 %v4751_v39, %v4613_v56  ;;  %v4995_v53 = vsel %vm4429_vm6, %v9607_v29, %v4994_v55  ;;  %v2580_v28 = vcombine.high %v2578_v22, %v2578_v22  ;;  %v2588_v48 = vrot.slane %v2371_v31, %v6804_v8  ;;  %v7393_v58 = vpop.f32.mrf.mxu1 }
 0x11c   : > { %9730 = vst [vmem:[#allocation8_spill] sm:$0xff] %v7381_v38  ;;  %v2372_v42 = vmin.f32 %v2331_v12, 6.0  ;;  %v7391_v30 = vpop.f32.mrf.mxu0  ;;  %9731 = vst [vmem:[#allocation9_spill] sm:$0xff] %v7393_v58  ;;  %v3291_v63 = vcombine.low %v2579_v23, %v2578_v22  ;;  %v3298_v11 = vrot.slane %v3290_v32, %v6804_v8  ;;  %v2332_v56 = vmax.f32 %v7293_v13, 0.0 }
 0x11d   : > { %v7395_v44 = vadd.f32 %v4995_v53, %v4857_v60  ;;  %v2595_v55 = vrot.slane %v2581_v9, %v6804_v8  ;;  %v2596_v39 = vcombine.high %v2588_v48, %v2588_v48  ;;  %v3307_v7 = vcombine.low %v2580_v28, %v2588_v48  ;;  %v6532_v29 = vpop.f32.mrf.mxu1 }
 0x11e   : > { %v2598_v45 = vcombine.high %v2372_v42, %v2372_v42  ;;  %v6500_v50 = vpop.f32.mrf.mxu0  ;;  %v3305_v31 = vrot.slane %v3291_v63, %v6804_v8  ;;  %v2605_v12 = vrot.slane %v2372_v42, %v6804_v8  ;;  %v2373_v40 = vmin.f32 %v2332_v56, 6.0 }
 0x11f   : > { %9732 = vst [vmem:[#allocation10_spill] sm:$0xff] %v7395_v44  ;;  %v2292_v60 = vadd.f32 %v7143_v54, %v7307_v14  ;;  %v2597_v22 = vcombine.high %v2595_v55, %v2595_v55  ;;  %v3308_v23 = vcombine.low %v2596_v39, %v2595_v55  ;;  %v3315_v32 = vrot.slane %v3307_v7, %v6804_v8 }
 0x120   : > { %v2612_v13 = vrot.slane %v2598_v45, %v6804_v8  ;;  %v7406_v53 = vpop.f32.mrf.mxu0  ;;  %v3306_v28 = vcombine.low %v3298_v11, %v3305_v31  ;;  %v2613_v9 = vcombine.high %v2605_v12, %v2605_v12  ;;  %v2615_v48 = vcombine.high %v2373_v40, %v2373_v40 }
 0x121   : > { %v2622_v29 = vrot.slane %v2373_v40, %v6804_v8  ;;  %v3322_v63 = vrot.slane %v3308_v23, %v6804_v8  ;;  %v3330_v42 = vrot.slane %v2597_v22, %v6804_v8  ;;  %v2333_v50 = vmax.f32 %v2292_v60, 0.0 }
 0x122   : > { %v2614_v56 = vcombine.high %v2612_v13, %v2612_v13  ;;  %v6503_v14 = vpop.f32.mrf.mxu0  ;;  %v7413_v55 = vsel %vm3137_vm3, %v3306_v28, 0.0  ;;  %v3331_v39 = vcombine.low %v2605_v12, %v2613_v9  ;;  %v2629_v7 = vrot.slane %v2615_v48, %v6804_v8 }
 0x123   : > { %v2630_v45 = vcombine.high %v2622_v29, %v2622_v29  ;;  %v7418_v11 = vmul.f32 %v7149_v57, %v7413_v55  ;;  %v7420_v40 = vcombine.low %v3315_v32, %v3322_v63  ;;  %v3970_v31 = vsel %vm3148_vm4, %v3330_v42, 0.0 }
 0x124   : > { %v3332_v22 = vcombine.low %v2612_v13, %v2614_v56  ;;  %v7424_v60 = vpop.f32.mrf.mxu0  ;;  %v4099_v23 = vmul.f32 %v7149_v57, %v3970_v31  ;;  %v7428_v28 = vmul.f32 %v7160_v3, %v3970_v31  ;;  %v7431_v12 = vmul.f32 %v7183_v41, %v3970_v31 }
 0x125   : > { %9733 = vst [vmem:[#allocation11_spill] sm:$0xff] %v7418_v11  ;;  %v7434_v9 = vmul.f32 %v7186_v19, %v3970_v31  ;;  %v7438_v32 = vmul.f32 %v7149_v57, %v7420_v40  ;;  %v7441_v48 = vmul.f32 %v7202_v59, %v3970_v31  ;;  %v7444_v13 = vmul.f32 %v7206_v4, %v3970_v31 }
 0x126   : > { %9734 = vst [vmem:[#allocation12_spill] sm:$0xff] %v7428_v28  ;;  %9735 = vst [vmem:[#allocation13_spill] sm:$0xff] %v7431_v12  ;;  %v3339_v63 = vrot.slane %v3331_v39, %v6804_v8  ;;  %v6504_v42 = vpop.f32.mrf.mxu0  ;;  %v4203_v56 = vrot.slane %v4099_v23, 1  ;;  %v3346_v17 = vrot.slane %v3332_v22, %v6804_v8  ;;  %v2631_v44 = vcombine.high %v2629_v7, %v2629_v7 }
 0x127   : > { %9736 = vst [vmem:[#allocation14_spill] sm:$0xff] %v7434_v9  ;;  %9737 = vst [vmem:[#allocation15_spill] sm:$0xff] %v7438_v32  ;;  %v9611_v38 = vrot.slane %v7438_v32, 1  ;;  %v3348_v39 = vcombine.low %v2622_v29, %v2630_v45  ;;  %v2374_v42 = vmin.f32 %v2333_v50, 6.0  ;;  %v2245_v23 = vmul.f32 %v7138_v52, %v7295_v2 }
 0x128   : > { %9738 = vst [vmem:[#allocation16_spill] sm:$0xff] %v7444_v13  ;;  %v7454_v31 = vpop.f32.mrf.mxu0  ;;  %v3347_v58 = vcombine.low %v3339_v63, %v3346_v17  ;;  %v2246_v11 = vmul.f32 %v7138_v52, %v7341_v61  ;;  %v2247_v22 = vmul.f32 %v7138_v52, %v7367_v43  ;;  %v3349_v36 = vcombine.low %v2629_v7, %v2631_v44 }
 0x129   : > { %v7461_v14 = vsel %vm4184_vm5, %v9611_v38, %v4203_v56  ;;  %v3356_v29 = vrot.slane %v3348_v39, %v6804_v8  ;;  %v2632_v50 = vcombine.high %v2374_v42, %v2374_v42  ;;  %v2639_v45 = vrot.slane %v2374_v42, %v6804_v8 }
 0x12a   : > { %9739 = vst [vmem:[#allocation17_spill] sm:$0xff] %v7461_v14  ;;  %v6507_v49 = vpop.f32.mrf.mxu0  ;;  %v7471_v2 = vsel %vm3137_vm3, %v3347_v58, 0.0  ;;  %v2293_v56 = vadd.f32 %v7143_v54, %v2245_v23  ;;  %v2294_v17 = vadd.f32 %v7143_v54, %v2246_v11  ;;  %v2295_v61 = vadd.f32 %v7143_v54, %v2247_v22 }
 0x12b   : > { %9740 = vst [vmem:[#allocation18_spill] sm:$0xff] %v7471_v2  ;;  %v7480_v43 = vmul.f32 %v7149_v57, %v7471_v2  ;;  %v3363_v49 = vrot.slane %v3349_v36, %v6804_v8  ;;  %v2646_v44 = vrot.slane %v2632_v50, %v6804_v8  ;;  %v2647_v7 = vcombine.high %v2639_v45, %v2639_v45 }
 0x12c   : > { %v7476_v63 = vpop.f32.mrf.mxu0  ;;  %v3371_v58 = vrot.slane %v2639_v45, %v6804_v8  ;;  %v2334_v39 = vmax.f32 %v2293_v56, 0.0  ;;  %v2335_v42 = vmax.f32 %v2294_v17, 0.0  ;;  %v2336_v23 = vmax.f32 %v2295_v61, 0.0 }
 0x12d   : > { %9741 = vst [vmem:[#allocation19_spill] sm:$0xff] %v7476_v63  ;;  %9742 = vst [vmem:[#allocation20_spill] sm:$0xff] %v7480_v43  ;;  %v7485_v11 = vcombine.low %v3356_v29, %v3363_v49  ;;  %v3372_v22 = vcombine.low %v2647_v7, %v2646_v44  ;;  %v2648_v28 = vcombine.high %v2646_v44, %v2646_v44 }
 0x12e   : > { %v6508_v38 = vpop.f32.mrf.mxu0  ;;  %v2248_v32 = vmul.f32 %v7138_v52, %v7391_v30  ;;  %v3973_v43 = vsel %vm3148_vm4, %v3371_v58, 0.0  ;;  %v2375_v36 = vmin.f32 %v2334_v39, 6.0  ;;  %v2376_v14 = vmin.f32 %v2335_v42, 6.0 }
 0x12f   : > { %9743 = vst [vmem:[#allocation21_spill] sm:$0xff] %v7485_v11  ;;  %v2377_v50 = vmin.f32 %v2336_v23, 6.0  ;;  %v3380_v45 = vrot.slane %v3372_v22, %v6804_v8  ;;  %v4029_v38 = vmul.f32 %v7157_v0, %v7485_v11  ;;  %v7498_v29 = vmul.f32 %v7149_v57, %v7485_v11 }
 0x130   : > { %v7491_v9 = vpop.f32.mrf.mxu0  ;;  %v4102_v56 = vmul.f32 %v7149_v57, %v3973_v43  ;;  %v7503_v30 = vmul.f32 %v7160_v3, %v7485_v11  ;;  %v4347_v17 = vmul.f32 %v7160_v3, %v3973_v43  ;;  %v7507_v61 = vmul.f32 %v7183_v41, %v3973_v43 }
 0x131   : > { %9744 = vst [vmem:[#allocation22_spill] sm:$0xff] %v7491_v9  ;;  %9745 = vst [vmem:[#allocation23_spill] sm:$0xff] %v7498_v29  ;;  %v7510_v49 = vmul.f32 %v7186_v19, %v3973_v43  ;;  %v9624_v7 = vrot.slane %v7498_v29, 1  ;;  %v7514_v39 = vmul.f32 %v7202_v59, %v3973_v43  ;;  %v7517_v42 = vmul.f32 %v7206_v4, %v3973_v43 }
 0x132   : > { %9746 = vst [vmem:[#allocation24_spill] sm:$0xff] %v7503_v30  ;;  %9747 = vst [vmem:[#allocation25_spill] sm:$0xff] %v7507_v61  ;;  %v6511_v44 = vpop.f32.mrf.mxu0  ;;  %v4208_v58 = vrot.slane %v4102_v56, 1  ;;  %v9625_v23 = vrot.slane %v7503_v30, 2  ;;  %v4453_v22 = vrot.slane %v4347_v17, 2  ;;  %v2649_v9 = vcombine.high %v2375_v36, %v2375_v36 }
 0x133   : > { %9748 = vst [vmem:[#allocation26_spill] sm:$0xff] %v7510_v49  ;;  %9749 = vst [vmem:[#allocation27_spill] sm:$0xff] %v7514_v39  ;;  %v2656_v12 = vrot.slane %v2375_v36, %v6804_v8  ;;  %v2666_v61 = vcombine.high %v2376_v14, %v2376_v14  ;;  %v2673_v29 = vrot.slane %v2376_v14, %v6804_v8 }
 0x134   : > { %9750 = vst [vmem:[#allocation28_spill] sm:$0xff] %v7517_v42  ;;  %v7522_v2 = vpop.f32.mrf.mxu0  ;;  %v4209_v44 = vsel %vm4184_vm5, %v9624_v7, %v4208_v58  ;;  %v4454_v17 = vsel %vm4429_vm6, %v9625_v23, %v4453_v22  ;;  %v2663_v49 = vrot.slane %v2649_v9, %v6804_v8  ;;  %v2690_v58 = vrot.slane %v2377_v50, %v6804_v8 }
 0x135   : > { %9751 = vst [vmem:[#allocation29_spill] sm:$0xff] %v7522_v2  ;;  %v4306_v43 = vadd.f32 %v4209_v44, %v4029_v38  ;;  %v2683_v2 = vcombine.high %v2377_v50, %v2377_v50  ;;  %v2664_v13 = vcombine.high %v2656_v12, %v2656_v12  ;;  %v3373_v56 = vcombine.low %v2648_v28, %v2656_v12 }
 0x136   : > { %v6512_v11 = vpop.f32.mrf.mxu0  ;;  %v2680_v38 = vrot.slane %v2666_v61, %v6804_v8  ;;  %v2665_v22 = vcombine.high %v2663_v49, %v2663_v49  ;;  %v2681_v23 = vcombine.high %v2673_v29, %v2673_v29  ;;  %v2296_v42 = vadd.f32 %v7143_v54, %v2248_v32  ;;  %v7545_v61 = vpop.f32.mrf.mxu1 }
 0x137   : > { %v7536_v7 = vadd.f32 %v4454_v17, %v4306_v43  ;;  %v2697_v36 = vrot.slane %v2683_v2, %v6804_v8  ;;  %v2698_v11 = vcombine.high %v2690_v58, %v2690_v58  ;;  %v3387_v9 = vrot.slane %v3373_v56, %v6804_v8 }
 0x138   : > { %v7539_v44 = vpop.f32.mrf.mxu0  ;;  %v3389_v30 = vcombine.low %v2664_v13, %v2663_v49  ;;  %v2682_v14 = vcombine.high %v2680_v38, %v2680_v38  ;;  %v3390_v43 = vcombine.low %v2665_v22, %v2673_v29  ;;  %v3412_v17 = vrot.slane %v2681_v23, %v6804_v8  ;;  %v6535_v23 = vpop.f32.mrf.mxu1 }
 0x139   : > { %9752 = vst [vmem:[#allocation30_spill] sm:$0xff] %v7536_v7  ;;  %9753 = vst [vmem:[#allocation31_spill] sm:$0xff] %v7539_v44  ;;  %v2699_v28 = vcombine.high %v2697_v36, %v2697_v36  ;;  %v3414_v12 = vcombine.low %v2690_v58, %v2698_v11  ;;  %v3388_v7 = vcombine.low %v3380_v45, %v3387_v9  ;;  %v2337_v2 = vmax.f32 %v2296_v42, 0.0 }
 0x13a   : > { %v6515_v50 = vpop.f32.mrf.mxu0  ;;  %v3397_v44 = vrot.slane %v3389_v30, %v6804_v8  ;;  %v3413_v39 = vcombine.low %v2680_v38, %v2682_v14  ;;  %v3404_v13 = vrot.slane %v3390_v43, %v6804_v8  ;;  %v7553_v32 = vsel %vm3148_vm4, %v3412_v17, 0.0 }
 0x13b   : > { %v3428_v29 = vrot.slane %v3414_v12, %v6804_v8  ;;  %v7556_v49 = vcombine.low %v2697_v36, %v2699_v28  ;;  %v7560_v45 = vsel %vm3137_vm3, %v3388_v7, 0.0  ;;  %v4105_v42 = vmul.f32 %v7149_v57, %v7553_v32 }
 0x13c   : > { %v7548_v63 = vpop.f32.mrf.mxu0  ;;  %v3421_v30 = vrot.slane %v3413_v39, %v6804_v8  ;;  %v4350_v56 = vmul.f32 %v7160_v3, %v7553_v32  ;;  %v7569_v38 = vmul.f32 %v7149_v57, %v7560_v45  ;;  %v7571_v22 = vcombine.low %v3397_v44, %v3404_v13  ;;  %v7581_v39 = vpop.f32.mrf.mxu1 }
 0x13d   : > { %v7575_v36 = vmul.f32 %v7183_v41, %v7553_v32  ;;  %v7579_v7 = vmul.f32 %v7186_v19, %v7553_v32  ;;  %v4213_v11 = vrot.slane %v4105_v42, 1  ;;  %v7585_v14 = vmul.f32 %v7202_v59, %v7553_v32 }
 0x13e   : > { %v6516_v58 = vpop.f32.mrf.mxu0  ;;  %9754 = vst [vmem:[#allocation32_spill] sm:$0xff] %v7569_v38  ;;  %v4458_v9 = vrot.slane %v4350_v56, 2  ;;  %v3429_v50 = vcombine.low %v3421_v30, %v3428_v29  ;;  %v4031_v44 = vmul.f32 %v7157_v0, %v7571_v22  ;;  %v7591_v43 = vmul.f32 %v7149_v57, %v7571_v22  ;;  %v6536_v12 = vpop.f32.mrf.mxu1 }
 0x13f   : > { %9755 = vst [vmem:[#allocation33_spill] sm:$0xff] %v7579_v7  ;;  %v7595_v17 = vmul.f32 %v7160_v3, %v7571_v22  ;;  %v3438_v29 = vrot.slane %v7556_v49, %v6804_v8  ;;  %v2378_v12 = vmin.f32 %v2337_v2, 6.0  ;;  %v4610_v13 = vadd.f32 %v7222_v18, %v7195_v46 }
 0x140   : > { %9756 = vst [vmem:[#allocation34_spill] sm:$0xff] %v7591_v43  ;;  %v7604_v30 = vsel %vm3137_vm3, %v3429_v50, 0.0  ;;  %v7612_v28 = vpop.f32.mrf.mxu0  ;;  %v9759_v49 = vrot.slane %v7246_v1, 1  ;;  %v9760_v23 = vrot.slane %v7225_v21, 1  ;;  %v9761_v42 = vrot.slane %v7250_v51, 2 }
 0x141   : > { %9757 = vst [vmem:[#allocation35_spill] sm:$0xff] %v7595_v17  ;;  %v7610_v58 = vmul.f32 %v7149_v57, %v7604_v30  ;;  %v9762_v56 = vrot.slane %v7228_v34, 2  ;;  %v5099_v2 = vadd.f32 %v7270_v26, %v7265_v33  ;;  %v9764_v46 = vrot.slane %v7595_v17, 2 }
 0x142   : > { %v4744_v50 = vsel %vm4184_vm5, %v9760_v23, %v9759_v49  ;;  %v2700_v21 = vcombine.high %v2378_v12, %v2378_v12  ;;  %v2707_v1 = vrot.slane %v2378_v12, %v6804_v8  ;;  %v6519_v51 = vpop.f32.mrf.mxu0  ;;  %v5135_v33 = vmul.f32 %v7209_v5, %v7325_v35 }
 0x143   : > { %9758 = vst [vmem:[#allocation36_spill] sm:$0xff] %v7610_v58  ;;  %v4988_v38 = vsel %vm4429_vm6, %v9762_v56, %v9761_v42  ;;  %v9763_v58 = vrot.slane %v7591_v43, 1  ;;  %v7634_v18 = vsel %vm4429_vm6, %v9764_v46, %v4458_v9  ;;  %v4854_v34 = vadd.f32 %v4744_v50, %v4610_v13 }
 0x144   : > { %9765 = vst [vmem:[#allocation37_spill] sm:$0xff] %v7634_v18  ;;  %v5134_v42 = vmul.f32 %v7209_v5, %v7299_v15  ;;  %v7644_v26 = vrot.slane %v2700_v21, %v6804_v8  ;;  %v5202_v9 = vmul.f32 %v7202_v59, %v7299_v15  ;;  %v5203_v56 = vmul.f32 %v7202_v59, %v7325_v35 }
 0x145   : > { %v4214_v7 = vsel %vm4184_vm5, %v9763_v58, %v4213_v11  ;;  %v2715_v11 = vcombine.high %v2707_v1, %v2707_v1  ;;  %v5098_v58 = vadd.f32 %v4988_v38, %v4854_v34  ;;  %v5447_v13 = vmul.f32 %v7206_v4, %v7325_v35 }
 0x146   : > { %v7637_v23 = vadd.f32 %v4214_v7, %v4031_v44  ;;  %v5167_v7 = vadd.f32 %v5135_v33, %v5099_v2  ;;  %v5446_v44 = vmul.f32 %v7206_v4, %v7299_v15  ;;  %v3453_v49 = vrot.slane %v7644_v26, %v6804_v8 }
 0x147   : > { %v3431_v12 = vcombine.low %v2707_v1, %v2715_v11  ;;  %v5298_v50 = vrot.slane %v5202_v9, 1  ;;  %v5299_v46 = vrot.slane %v5203_v56, 1  ;;  %v5166_v21 = vadd.f32 %v5134_v42, %v5098_v58 }
 0x148   : > { %9766 = vst [vmem:[#allocation38_spill] sm:$0xff] %v7637_v23  ;;  %v5448_v51 = vmul.f32 %v7206_v4, %v7304_v16  ;;  %v5542_v17 = vrot.slane %v5446_v44, 2  ;;  %v5543_v18 = vrot.slane %v5447_v13, 2  ;;  %v7661_v2 = vsel %vm3148_vm4, %v3453_v49, 0.0 }
 0x149   : > { %v3445_v38 = vrot.slane %v3431_v12, %v6804_v8  ;;  %v5300_v35 = vsel %vm4184_vm5, %v5298_v50, %v5299_v46  ;;  %v9767_v1 = vrot.slane %v7339_v47, 1  ;;  %v4108_v42 = vmul.f32 %v7149_v57, %v7661_v2  ;;  %v7716_v12 = vld [vmem:[%s9596_s6] ss:$0 sm:$0xff] }
 0x14a   : > { %v4353_v16 = vmul.f32 %v7160_v3, %v7661_v2  ;;  %v7673_v33 = vmul.f32 %v7183_v41, %v7661_v2  ;;  %v7677_v11 = vmul.f32 %v7186_v19, %v7661_v2  ;;  %v7683_v47 = vmul.f32 %v7202_v59, %v7661_v2 }
 0x14b   : > { %v5302_v34 = vsel %vm4184_vm5, %v5299_v46, %v9767_v1  ;;  %v7679_v9 = vcombine.low %v3438_v29, %v3445_v38  ;;  %v5410_v56 = vadd.f32 %v5300_v35, %v5166_v21  ;;  %v4218_v44 = vrot.slane %v4108_v42, 1  ;;  %v7702_v35 = vld [vmem:[%s9595_s5] ss:$0 sm:$0xff] }
 0x14c   : > { %9768 = vst [vmem:[#allocation39_spill] sm:$0xff] %v7673_v33  ;;  %9769 = vst [vmem:[#allocation40_spill] sm:$0xff] %v7677_v11  ;;  %v5411_v58 = vadd.f32 %v5302_v34, %v5167_v7  ;;  %v4463_v13 = vrot.slane %v4353_v16, 2  ;;  %v5544_v7 = vsel %vm4429_vm6, %v5542_v17, %v5543_v18  ;;  %v5545_v38 = vrot.slane %v5448_v51, 2 }
 0x14d   : > { %9770 = vst [vmem:[#allocation41_spill] sm:$0xff] %v7683_v47  ;;  %v4033_v50 = vmul.f32 %v7157_v0, %v7679_v9  ;;  %v7691_v46 = vmul.f32 %v7149_v57, %v7679_v9  ;;  %v7695_v29 = vmul.f32 %v7160_v3, %v7679_v9  ;;  %v2249_v1 = vmul.f32 %v7138_v52, %v7406_v53  ;;  %v9822_v47 = vld [vmem:[#allocation6_spill] sm:$0xff] }
 0x14e   : > { %v2716_v34 = vcombine.high %v7644_v26, %v7644_v26  ;;  %v5654_v49 = vadd.f32 %v5544_v7, %v5410_v56  ;;  %v2250_v17 = vmul.f32 %v7138_v52, %v7424_v60  ;;  %v5546_v51 = vsel %vm4429_vm6, %v5543_v18, %v5545_v38 }
 0x14f   : > { %9771 = vst [vmem:[#allocation42_spill] sm:$0xff] %v7691_v46  ;;  %9772 = vst [vmem:[#allocation43_spill] sm:$0xff] %v7695_v29  ;;  %v9631_v42 = vrot.slane %v7691_v46, 1  ;;  %v2297_v53 = vadd.f32 %v7143_v54, %v2249_v1  ;;  %v4612_v26 = vadd.f32 %v7315_v20, %v7263_v27  ;;  %v9773_v21 = vrot.slane %v7357_v37, 1 }
 0x150   : > { %v9774_v16 = vrot.slane %v7319_v24, 1  ;;  %v9775_v60 = vrot.slane %v7695_v29, 2  ;;  %v5655_v7 = vadd.f32 %v5546_v51, %v5411_v58  ;;  %v5693_v38 = vmul.f32 %v7702_v35, %v5654_v49 }
 0x151   : > { %v4219_v52 = vsel %vm4184_vm5, %v9631_v42, %v4218_v44  ;;  %v2338_v27 = vmax.f32 %v2297_v53, 0.0  ;;  %v2298_v20 = vadd.f32 %v7143_v54, %v2250_v17  ;;  %v9778_v44 = vrot.slane %v7363_v62, 2 }
 0x152   : > { %v4749_v56 = vsel %vm4184_vm5, %v9774_v16, %v9773_v21  ;;  %v7732_v18 = vsel %vm4429_vm6, %v9775_v60, %v4463_v13  ;;  %v7735_v1 = vadd.f32 %v4219_v52, %v4033_v50  ;;  %v5694_v37 = vmul.f32 %v7702_v35, %v5655_v7 }
 0x153   : > { %9776 = vst [vmem:[#allocation44_spill] sm:$0xff] %v7732_v18  ;;  %v4856_v24 = vadd.f32 %v4749_v56, %v4612_v26  ;;  %v5732_v21 = vadd.f32 %v7716_v12, %v5693_v38  ;;  %v9779_v16 = vrot.slane %v7323_v25, 2  ;;  %v5136_v58 = vmul.f32 %v7209_v5, %v7413_v55 }
 0x154   : > { %9777 = vst [vmem:[#allocation45_spill] sm:$0xff] %v7735_v1  ;;  %v2379_v49 = vmin.f32 %v2338_v27, 6.0  ;;  %v2339_v50 = vmax.f32 %v2298_v20, 0.0  ;;  %v5137_v54 = vmul.f32 %v7209_v5, %v7420_v40  ;;  %v5733_v17 = vadd.f32 %v7716_v12, %v5694_v37  ;;  %v9780_v27 = vld [vmem:[#allocation10_spill] sm:$0xff] }
 0x155   : > { %v4993_v13 = vsel %vm4429_vm6, %v9779_v16, %v9778_v44  ;;  %v5764_v53 = vmax.f32 %v5732_v21, 0.0  ;;  %v5205_v26 = vmul.f32 %v7202_v59, %v7413_v55  ;;  %v5206_v25 = vmul.f32 %v7202_v59, %v7420_v40 }
 0x156   : > { %v5100_v51 = vadd.f32 %v4993_v13, %v4856_v24  ;;  %v2717_v62 = vcombine.high %v2379_v49, %v2379_v49  ;;  %v2724_v56 = vrot.slane %v2379_v49, %v6804_v8  ;;  %v2380_v52 = vmin.f32 %v2339_v50, 6.0 }
 0x157   : > { %v5765_v7 = vmax.f32 %v5733_v17, 0.0  ;;  %v5796_v38 = vmin.f32 %v5764_v53, 6.0  ;;  %v5169_v20 = vadd.f32 %v5137_v54, %v9780_v27  ;;  %v5303_v24 = vrot.slane %v5205_v26, 1 }
 0x158   : > { %v5168_v60 = vadd.f32 %v5136_v58, %v5100_v51  ;;  %v2731_v44 = vrot.slane %v2717_v62, %v6804_v8  ;;  %v2732_v37 = vcombine.high %v2724_v56, %v2724_v56  ;;  %v3454_v21 = vcombine.low %v2716_v34, %v2724_v56 }
 0x159   : > { %v2734_v16 = vcombine.high %v2380_v52, %v2380_v52  ;;  %v5797_v13 = vmin.f32 %v5765_v7, 6.0  ;;  %v2741_v42 = vrot.slane %v2380_v52, %v6804_v8  ;;  %v5304_v29 = vrot.slane %v5206_v25, 1 }
 0x15a   : > { %v5449_v18 = vmul.f32 %v7206_v4, %v7413_v55  ;;  %v3455_v49 = vcombine.low %v2732_v37, %v2731_v44  ;;  %v3462_v58 = vrot.slane %v3454_v21, %v6804_v8  ;;  %v2733_v50 = vcombine.high %v2731_v44, %v2731_v44 }
 0x15b   : > { %v2748_v51 = vrot.slane %v2734_v16, %v6804_v8  ;;  %v5828_v54 = vpack.c.bf16 %v5797_v13, %v5796_v38  ;;  %v2749_v17 = vcombine.high %v2741_v42, %v2741_v42  ;;  %v5305_v53 = vsel %vm4184_vm5, %v5303_v24, %v5304_v29  ;;  %v9782_v16 = vld [vmem:[#allocation19_spill] sm:$0xff]  ;;  %v9783_v13 = vld [vmem:[#allocation22_spill] sm:$0xff] }
 0x15c   : > { %v9781_v34 = vrot.slane %v7441_v48, 1  ;;  %v3469_v62 = vrot.slane %v3455_v49, %v6804_v8  ;;  %v3471_v56 = vcombine.low %v2733_v50, %v2741_v42  ;;  %v5412_v52 = vadd.f32 %v5305_v53, %v5168_v60  ;;  %v7779_v60 = vpop.f32.mrf.mxu1 }
 0x15d   : > { %v2750_v25 = vcombine.high %v2748_v51, %v2748_v51  ;;  %6555 = vmatprep.mubr.msk.bf16.mxu1 %vm5852_vm7, %v5828_v54  ;;  %v3472_v7 = vcombine.low %v2749_v17, %v2748_v51  ;;  %v5450_v44 = vmul.f32 %v7206_v4, %v7420_v40  ;;  %v5547_v38 = vrot.slane %v5449_v18, 2  ;;  %v7802_v17 = vpop.f32.mrf.mxu0 }
 0x15e   : > { %v5307_v26 = vsel %vm4184_vm5, %v5304_v29, %v9781_v34  ;;  %v3470_v37 = vcombine.low %v3462_v58, %v3469_v62  ;;  %v3479_v24 = vrot.slane %v3471_v56, %v6804_v8  ;;  %v7775_v29 = vld [vmem:[%s9592_s2] ss:$0 sm:$0xff]  ;;  %v4024_v54 = vmul.f32 %v7157_v0, %v7299_v15  ;;  %9786 = vst [vmem:[#allocation22_spill] sm:$0xff] %v7802_v17  ;;  %v6539_v53 = vpop.f32.mrf.mxu1 }
 0x15f   : > { %v5413_v27 = vadd.f32 %v5307_v26, %v5169_v20  ;;  %v3494_v48 = vrot.slane %v2750_v25, %v6804_v8  ;;  %v2251_v42 = vmul.f32 %v7775_v29, %v7454_v31  ;;  %v3486_v20 = vrot.slane %v3472_v7, %v6804_v8  ;;  %v7797_v31 = vld [vmem:[%s9593_s3] ss:$0 sm:$0xff] }
 0x160   : > { %v5548_v21 = vrot.slane %v5450_v44, 2  ;;  %v2252_v18 = vmul.f32 %v7775_v29, %v9782_v16  ;;  %v2253_v49 = vmul.f32 %v7775_v29, %v9783_v13  ;;  %v7788_v58 = vsel %vm3137_vm3, %v3470_v37, 0.0  ;;  %v9792_v37 = vld [vmem:[#allocation16_spill] sm:$0xff] }
 0x161   : > { %9784 = vst [vmem:[#allocation10_spill] sm:$0xff] %v7788_v58  ;;  %v7792_v50 = vsel %vm3148_vm4, %v3494_v48, 0.0  ;;  %v2299_v51 = vadd.f32 %v7797_v31, %v2251_v42  ;;  %v7806_v34 = vmul.f32 %v7149_v57, %v7788_v58  ;;  %v7808_v26 = vcombine.low %v3479_v24, %v3486_v20  ;;  %v6520_v42 = vpop.f32.mrf.mxu0 }
 0x162   : > { %9785 = vst [vmem:[#allocation19_spill] sm:$0xff] %v7792_v50  ;;  %v4111_v62 = vmul.f32 %v7149_v57, %v7792_v50  ;;  %v7814_v25 = vmul.f32 %v7160_v3, %v7792_v50  ;;  %v7818_v56 = vmul.f32 %v7183_v41, %v7792_v50  ;;  %v7822_v7 = vmul.f32 %v7186_v19, %v7792_v50 }
 0x163   : > { %9787 = vst [vmem:[#allocation46_spill] sm:$0xff] %v7806_v34  ;;  %9788 = vst [vmem:[#allocation47_spill] sm:$0xff] %v7808_v26  ;;  %v5549_v44 = vsel %vm4429_vm6, %v5547_v38, %v5548_v21  ;;  %v9793_v24 = vrot.slane %v9792_v37, 2  ;;  %v7830_v20 = vmul.f32 %v7149_v57, %v7808_v26  ;;  %v7833_v34 = vpop.f32.mrf.mxu1  ;;  %v2340_v11 = vmax.f32 %v2299_v51, 0.0 }
 0x164   : > { %9789 = vst [vmem:[#allocation48_spill] sm:$0xff] %v7814_v25  ;;  %9790 = vst [vmem:[#allocation49_spill] sm:$0xff] %v7818_v56  ;;  %v4223_v16 = vrot.slane %v4111_v62, 1  ;;  %v5656_v53 = vadd.f32 %v5549_v44, %v5412_v52  ;;  %v2301_v42 = vadd.f32 %v7797_v31, %v2253_v49  ;;  %v7841_v62 = vpop.f32.mrf.mxu0  ;;  %v9797_v25 = vld [vmem:[#allocation3_spill] sm:$0xff] }
 0x165   : > { %9791 = vst [vmem:[#allocation50_spill] sm:$0xff] %v7822_v7  ;;  %v5551_v48 = vsel %vm4429_vm6, %v5548_v21, %v9793_v24  ;;  %9794 = vst [vmem:[#allocation16_spill] sm:$0xff] %v7830_v20  ;;  %v9641_v37 = vrot.slane %v7830_v20, 1  ;;  %v2300_v24 = vadd.f32 %v7797_v31, %v2252_v18  ;;  %v6540_v13 = vpop.f32.mrf.mxu1  ;;  %v2381_v44 = vmin.f32 %v2340_v11, 6.0 }
 0x166   : > { %9795 = vst [vmem:[#allocation51_spill] sm:$0xff] %v7833_v34  ;;  %v5657_v38 = vadd.f32 %v5551_v48, %v5413_v27  ;;  %v5695_v21 = vmul.f32 %v7702_v35, %v5656_v53  ;;  %9796 = vst [vmem:[#allocation52_spill] sm:$0xff] %v7841_v62  ;;  %v4195_v1 = vrot.slane %v9797_v25, 1  ;;  %v4339_v27 = vmul.f32 %v7160_v3, %v7299_v15  ;;  %v6523_v53 = vpop.f32.mrf.mxu0 }
 0x167   : > { %v7850_v51 = vsel %vm4184_vm5, %v9641_v37, %v4223_v16  ;;  %v2341_v48 = vmax.f32 %v2300_v24, 0.0  ;;  %v2342_v49 = vmax.f32 %v2301_v42, 0.0  ;;  %v2751_v46 = vcombine.high %v2381_v44, %v2381_v44 }
 0x168   : > { %v5696_v52 = vmul.f32 %v7702_v35, %v5657_v38  ;;  %9798 = vst [vmem:[#allocation3_spill] sm:$0xff] %v7850_v51  ;;  %v5734_v18 = vadd.f32 %v7716_v12, %v5695_v21  ;;  %v2758_v11 = vrot.slane %v2381_v44, %v6804_v8  ;;  %v9799_v38 = vld [vmem:[#allocation4_spill] sm:$0xff]  ;;  %v4440_v24 = vrot.slane %v4339_v27, 2 }
 0x169   : > { %v9800_v25 = vrot.slane %v9799_v38, 1  ;;  %v2382_v56 = vmin.f32 %v2341_v48, 6.0  ;;  %v2383_v20 = vmin.f32 %v2342_v49, 6.0  ;;  %v2765_v37 = vrot.slane %v2751_v46, %v6804_v8 }
 0x16a   : > { %v5735_v13 = vadd.f32 %v7716_v12, %v5696_v52  ;;  %v5766_v15 = vmax.f32 %v5734_v18, 0.0  ;;  %v2766_v21 = vcombine.high %v2758_v11, %v2758_v11 }
 0x16b   : > { %v4197_v7 = vsel %vm4184_vm5, %v4195_v1, %v9800_v25  ;;  %v2768_v53 = vcombine.high %v2382_v56, %v2382_v56  ;;  %v2775_v52 = vrot.slane %v2382_v56, %v6804_v8  ;;  %v2785_v51 = vcombine.high %v2383_v20, %v2383_v20 }
 0x16c   : > { %v4301_v50 = vadd.f32 %v4197_v7, %v4024_v54  ;;  %v5767_v16 = vmax.f32 %v5735_v13, 0.0  ;;  %v5798_v42 = vmin.f32 %v5766_v15, 6.0  ;;  %v2767_v44 = vcombine.high %v2765_v37, %v2765_v37  ;;  %v9801_v7 = vld [vmem:[#allocation5_spill] sm:$0xff] }
 0x16d   : > { %v3495_v26 = vcombine.low %v2758_v11, %v2766_v21  ;;  %v2792_v38 = vrot.slane %v2383_v20, %v6804_v8  ;;  %v2782_v1 = vrot.slane %v2768_v53, %v6804_v8  ;;  %v2783_v18 = vcombine.high %v2775_v52, %v2775_v52  ;;  %v9803_v21 = vld [vmem:[#allocation8_spill] sm:$0xff]  ;;  %v9804_v53 = vld [vmem:[#allocation7_spill] sm:$0xff] }
 0x16e   : > { %v5799_v33 = vmin.f32 %v5767_v16, 6.0  ;;  %v7863_v54 = vrot.slane %v2785_v51, %v6804_v8  ;;  %v9802_v46 = vrot.slane %v9801_v7, 2  ;;  %v3496_v49 = vcombine.low %v2765_v37, %v2767_v44 }
 0x16f   : > { %v3503_v56 = vrot.slane %v3495_v26, %v6804_v8  ;;  %v2800_v13 = vcombine.high %v2792_v38, %v2792_v38  ;;  %v2784_v25 = vcombine.high %v2782_v1, %v2782_v1  ;;  %v3512_v15 = vcombine.low %v2775_v52, %v2783_v18 }
 0x170   : > { %v4442_v27 = vsel %vm4429_vm6, %v4440_v24, %v9802_v46  ;;  %v5829_v48 = vpack.c.bf16 %v5799_v33, %v5798_v42  ;;  %v3535_v11 = vrot.slane %v2792_v38, %v6804_v8  ;;  %v3510_v16 = vrot.slane %v3496_v49, %v6804_v8  ;;  %v9805_v33 = vld [vmem:[#allocation2_spill] sm:$0xff]  ;;  %v9816_v38 = vld [vmem:[#allocation21_spill] sm:$0xff] }
 0x171   : > { %v4546_v20 = vadd.f32 %v4442_v27, %v4301_v50  ;;  %v7873_v51 = vcombine.low %v2800_v13, %v7863_v54  ;;  %v4547_v24 = vadd.f32 %v9804_v53, %v9803_v21  ;;  %v4582_v37 = vmul.f32 %v9805_v33, %v7413_v55 }
 0x172   : > { %6556 = vmatmul.mubr.msk.bf16.vlgmr.msra.gmra.mxu1 %vm5852_vm7, %v5829_v48  ;;  %v3513_v26 = vcombine.low %v2782_v1, %v2784_v25  ;;  %v3520_v42 = vrot.slane %v3512_v15, %v6804_v8  ;;  %v3985_v52 = vsel %vm3148_vm4, %v3535_v11, 0.0  ;;  %v4583_v50 = vmul.f32 %v9805_v33, %v7420_v40 }
 0x173   : > { %v3511_v44 = vcombine.low %v3503_v56, %v3510_v16  ;;  %v4114_v18 = vmul.f32 %v7149_v57, %v3985_v52  ;;  %v4359_v7 = vmul.f32 %v7160_v3, %v3985_v52  ;;  %v7890_v1 = vmul.f32 %v7183_v41, %v3985_v52 }
 0x174   : > { %v3527_v46 = vrot.slane %v3513_v26, %v6804_v8  ;;  %v7893_v27 = vmul.f32 %v7186_v19, %v3985_v52  ;;  %v7896_v48 = vmul.f32 %v7202_v59, %v3985_v52  ;;  %v7903_v25 = vmul.f32 %v7206_v4, %v3985_v52 }
 0x175   : > { %9806 = vst [vmem:[#allocation4_spill] sm:$0xff] %v7890_v1  ;;  %v7900_v49 = vsel %vm3137_vm3, %v3511_v44, 0.0  ;;  %v4228_v56 = vrot.slane %v4114_v18, 1  ;;  %v4473_v13 = vrot.slane %v4359_v7, 2  ;;  %v4614_v44 = vadd.f32 %v4582_v37, %v4546_v20  ;;  %v9815_v37 = vld [vmem:[#allocation18_spill] sm:$0xff] }
 0x176   : > { %9807 = vst [vmem:[#allocation5_spill] sm:$0xff] %v7893_v27  ;;  %9808 = vst [vmem:[#allocation8_spill] sm:$0xff] %v7896_v48  ;;  %v7907_v15 = vmul.f32 %v7149_v57, %v7900_v49  ;;  %v7909_v11 = vcombine.low %v3520_v42, %v3527_v46  ;;  %v4615_v18 = vadd.f32 %v4583_v50, %v4547_v24 }
 0x177   : > { %9809 = vst [vmem:[#allocation7_spill] sm:$0xff] %v7900_v49  ;;  %9810 = vst [vmem:[#allocation2_spill] sm:$0xff] %v7903_v25  ;;  %v4652_v46 = vmul.f32 %v7183_v41, %v7413_v55  ;;  %v4653_v21 = vmul.f32 %v7183_v41, %v7420_v40  ;;  %v4896_v20 = vmul.f32 %v7186_v19, %v7413_v55 }
 0x178   : > { %9811 = vst [vmem:[#allocation53_spill] sm:$0xff] %v7907_v15  ;;  %9812 = vst [vmem:[#allocation54_spill] sm:$0xff] %v7909_v11  ;;  %v4037_v52 = vmul.f32 %v7157_v0, %v7909_v11  ;;  %v7919_v7 = vmul.f32 %v7149_v57, %v7909_v11  ;;  %v7923_v42 = vmul.f32 %v7160_v3, %v7909_v11 }
 0x179   : > { %v4897_v24 = vmul.f32 %v7186_v19, %v7420_v40  ;;  %v5138_v50 = vmul.f32 %v7209_v5, %v9815_v37  ;;  %v4752_v53 = vrot.slane %v4652_v46, 1  ;;  %v5139_v15 = vmul.f32 %v7209_v5, %v9816_v38 }
 0x17a   : > { %9813 = vst [vmem:[#allocation55_spill] sm:$0xff] %v7919_v7  ;;  %9814 = vst [vmem:[#allocation56_spill] sm:$0xff] %v7923_v42  ;;  %v9657_v16 = vrot.slane %v7919_v7, 1  ;;  %v9659_v26 = vrot.slane %v7923_v42, 2  ;;  %v4753_v27 = vrot.slane %v4653_v21, 1  ;;  %v4996_v1 = vrot.slane %v4896_v20, 2 }
 0x17b   : > { %v4997_v25 = vrot.slane %v4897_v24, 2  ;;  %v5208_v48 = vmul.f32 %v7202_v59, %v9815_v37  ;;  %v5209_v46 = vmul.f32 %v7202_v59, %v9816_v38  ;;  %v5452_v58 = vmul.f32 %v7206_v4, %v9815_v37  ;;  %v9817_v24 = vld [vmem:[#allocation13_spill] sm:$0xff]  ;;  %v9819_v42 = vld [vmem:[#allocation14_spill] sm:$0xff] }
 0x17c   : > { %v4229_v11 = vsel %vm4184_vm5, %v9657_v16, %v4228_v56  ;;  %v4474_v49 = vsel %vm4429_vm6, %v9659_v26, %v4473_v13  ;;  %v4754_v20 = vsel %vm4184_vm5, %v4752_v53, %v4753_v27  ;;  %v9818_v23 = vrot.slane %v9817_v24, 1 }
 0x17d   : > { %v4314_v21 = vadd.f32 %v4229_v11, %v4037_v52  ;;  %v4998_v7 = vsel %vm4429_vm6, %v4996_v1, %v4997_v25  ;;  %v4858_v56 = vadd.f32 %v4754_v20, %v4614_v44  ;;  %v9820_v62 = vrot.slane %v9819_v42, 2  ;;  %v9823_v1 = vld [vmem:[#allocation29_spill] sm:$0xff]  ;;  %v9824_v44 = vld [vmem:[#allocation27_spill] sm:$0xff]  ;;  %v9826_v42 = vld [vmem:[#allocation28_spill] sm:$0xff] }
 0x17e   : > { %v4756_v43 = vsel %vm4184_vm5, %v4753_v27, %v9818_v23  ;;  %v5308_v26 = vrot.slane %v5208_v48, 1  ;;  %v5309_v17 = vrot.slane %v5209_v46, 1  ;;  %v5453_v11 = vmul.f32 %v7206_v4, %v9816_v38 }
 0x17f   : > { %v4859_v16 = vadd.f32 %v4756_v43, %v4615_v18  ;;  %v5000_v13 = vsel %vm4429_vm6, %v4997_v25, %v9820_v62  ;;  %v7959_v34 = vadd.f32 %v4474_v49, %v4314_v21  ;;  %v5552_v53 = vrot.slane %v5452_v58, 2  ;;  %v9828_v21 = vld [vmem:[#allocation9_spill] sm:$0xff] }
 0x180   : > { %v5102_v52 = vadd.f32 %v4998_v7, %v4858_v56  ;;  %v2263_v23 = vmul.f32 %v7775_v29, %v9822_v47  ;;  %v2254_v43 = vmul.f32 %v7775_v29, %v9823_v1  ;;  %v5310_v27 = vsel %vm4184_vm5, %v5308_v26, %v5309_v17 }
 0x181   : > { %9821 = vst [vmem:[#allocation18_spill] sm:$0xff] %v7959_v34  ;;  %v5103_v24 = vadd.f32 %v5000_v13, %v4859_v16  ;;  %v9825_v62 = vrot.slane %v9824_v44, 1  ;;  %v5553_v49 = vrot.slane %v5453_v11, 2  ;;  %v2801_v25 = vcombine.high %v7863_v54, %v7863_v54  ;;  %v7983_v11 = vpop.f32.mrf.mxu1 }
 0x182   : > { %v5170_v18 = vadd.f32 %v5138_v50, %v5102_v52  ;;  %v2311_v16 = vadd.f32 %v7797_v31, %v2263_v23  ;;  %v2302_v7 = vadd.f32 %v7797_v31, %v2254_v43  ;;  %v9827_v46 = vrot.slane %v9826_v42, 2 }
 0x183   : > { %v5312_v48 = vsel %vm4184_vm5, %v5309_v17, %v9825_v62  ;;  %v5171_v58 = vadd.f32 %v5139_v15, %v5103_v24  ;;  %v5554_v47 = vsel %vm4429_vm6, %v5552_v53, %v5553_v49  ;;  %v2264_v20 = vmul.f32 %v7775_v29, %v9828_v21  ;;  %v9829_v17 = vld [vmem:[#allocation31_spill] sm:$0xff]  ;;  %v6543_v62 = vpop.f32.mrf.mxu1 }
 0x184   : > { %v5556_v26 = vsel %vm4429_vm6, %v5553_v49, %v9827_v46  ;;  %v2255_v56 = vmul.f32 %v7775_v29, %v9829_v17  ;;  %v5414_v13 = vadd.f32 %v5310_v27, %v5170_v18  ;;  %v2352_v50 = vmax.f32 %v2311_v16, 0.0  ;;  %v9830_v18 = vld [vmem:[#allocation11_spill] sm:$0xff]  ;;  %v9831_v16 = vld [vmem:[#allocation17_spill] sm:$0xff] }
 0x185   : > { %v5415_v54 = vadd.f32 %v5312_v48, %v5171_v58  ;;  %v2343_v15 = vmax.f32 %v2302_v7, 0.0  ;;  %v2312_v52 = vadd.f32 %v7797_v31, %v2264_v20  ;;  %v7989_v24 = vmul.f32 %v7157_v0, %v7413_v55 }
 0x186   : > { %v2303_v53 = vadd.f32 %v7797_v31, %v2255_v56  ;;  %v4027_v23 = vmul.f32 %v7157_v0, %v7420_v40  ;;  %v5658_v1 = vadd.f32 %v5554_v47, %v5414_v13  ;;  %v2393_v44 = vmin.f32 %v2352_v50, 6.0 }
 0x187   : > { %v5659_v43 = vadd.f32 %v5556_v26, %v5415_v54  ;;  %v2384_v27 = vmin.f32 %v2343_v15, 6.0  ;;  %v2353_v48 = vmax.f32 %v2312_v52, 0.0  ;;  %v4200_v58 = vrot.slane %v9830_v18, 1  ;;  %v8008_v52 = vpop.f32.mrf.mxu0 }
 0x188   : > { %v2344_v49 = vmax.f32 %v2303_v53, 0.0  ;;  %v7995_v7 = vadd.f32 %v9831_v16, %v4027_v23  ;;  %v5697_v42 = vmul.f32 %v7702_v35, %v5658_v1  ;;  %v2955_v21 = vcombine.high %v2393_v44, %v2393_v44  ;;  %9833 = vst [vmem:[#allocation13_spill] sm:$0xff] %v8008_v52  ;;  %v8010_v53 = vpop.f32.mrf.mxu1 }
 0x189   : > { %v5698_v46 = vmul.f32 %v7702_v35, %v5659_v43  ;;  %v8000_v20 = vrot.slane %v2393_v44, %v6804_v8  ;;  %v2802_v47 = vcombine.high %v2384_v27, %v2384_v27  ;;  %v2809_v26 = vrot.slane %v2384_v27, %v6804_v8  ;;  %9834 = vst [vmem:[#allocation14_spill] sm:$0xff] %v8010_v53  ;;  %v6524_v18 = vpop.f32.mrf.mxu0 }
 0x18a   : > { %v2394_v17 = vmin.f32 %v2353_v48, 6.0  ;;  %v2385_v56 = vmin.f32 %v2344_v49, 6.0  ;;  %v5736_v13 = vadd.f32 %v7716_v12, %v5697_v42  ;;  %v2969_v50 = vrot.slane %v2955_v21, %v6804_v8  ;;  %v6544_v16 = vpop.f32.mrf.mxu1 }
 0x18b   : > { %9832 = vst [vmem:[#allocation21_spill] sm:$0xff] %v8000_v20  ;;  %v5737_v54 = vadd.f32 %v7716_v12, %v5698_v46  ;;  %v2970_v15 = vcombine.high %v8000_v20, %v8000_v20  ;;  %v2816_v23 = vrot.slane %v2802_v47, %v6804_v8  ;;  %v2817_v1 = vcombine.high %v2809_v26, %v2809_v26 }
 0x18c   : > { %v3537_v43 = vcombine.low %v2801_v25, %v2809_v26  ;;  %v2972_v44 = vcombine.high %v2394_v17, %v2394_v17  ;;  %v5768_v27 = vmax.f32 %v5736_v13, 0.0  ;;  %v2971_v49 = vcombine.high %v2969_v50, %v2969_v50  ;;  %v8017_v25 = vpop.f32.mrf.mxu0 }
 0x18d   : > { %v5769_v62 = vmax.f32 %v5737_v54, 0.0  ;;  %v3717_v48 = vcombine.low %v2970_v15, %v2969_v50  ;;  %v3553_v46 = vcombine.low %v2817_v1, %v2816_v23  ;;  %v2979_v21 = vrot.slane %v2394_v17, %v6804_v8 }
 0x18e   : > { %v3551_v42 = vrot.slane %v3537_v43, %v6804_v8  ;;  %v2986_v34 = vrot.slane %v2972_v44, %v6804_v8  ;;  %v5800_v20 = vmin.f32 %v5768_v27, 6.0  ;;  %v2818_v52 = vcombine.high %v2816_v23, %v2816_v23  ;;  %v6527_v27 = vpop.f32.mrf.mxu0 }
 0x18f   : > { %v5801_v53 = vmin.f32 %v5769_v62, 6.0  ;;  %v3725_v47 = vrot.slane %v3717_v48, %v6804_v8  ;;  %v9835_v26 = vrot.slane %v7873_v51, %v6804_v8  ;;  %v3561_v54 = vrot.slane %v3553_v46, %v6804_v8  ;;  %v9836_v51 = vld [vmem:[#allocation15_spill] sm:$0xff] }
 0x190   : > { %v2987_v50 = vcombine.high %v2979_v21, %v2979_v21  ;;  %v2988_v15 = vcombine.high %v2986_v34, %v2986_v34  ;;  %v3718_v43 = vcombine.low %v2971_v49, %v2979_v21  ;;  %v2819_v17 = vcombine.high %v2385_v56, %v2385_v56 }
 0x191   : > { %v3552_v13 = vcombine.low %v9835_v26, %v3551_v42  ;;  %v5830_v1 = vpack.c.bf16 %v5801_v53, %v5800_v20  ;;  %v2826_v44 = vrot.slane %v2385_v56, %v6804_v8  ;;  %v9837_v18 = vrot.slane %v9836_v51, 1  ;;  %v8041_v42 = vpop.f32.mrf.mxu0 }
 0x192   : > { %v3740_v23 = vrot.slane %v2987_v50, %v6804_v8  ;;  %v8029_v48 = vcombine.low %v2986_v34, %v2988_v15  ;;  %v3732_v56 = vrot.slane %v3718_v43, %v6804_v8  ;;  %v2833_v53 = vrot.slane %v2819_v17, %v6804_v8 }
 0x193   : > { %v8026_v62 = vsel %vm3137_vm3, %v3552_v13, 0.0  ;;  %v4202_v16 = vsel %vm4184_vm5, %v4200_v58, %v9837_v18  ;;  %6559 = vmatprep.mubr.msk.bf16.mxu1 %vm5852_vm7, %v5830_v1  ;;  %v2834_v49 = vcombine.high %v2826_v44, %v2826_v44  ;;  %v3554_v58 = vcombine.low %v2818_v52, %v2826_v44  ;;  %v6528_v1 = vpop.f32.mrf.mxu0 }
 0x194   : > { %v8037_v20 = vmul.f32 %v7149_v57, %v8026_v62  ;;  %v8047_v46 = vsel %vm3148_vm4, %v3740_v23, 0.0  ;;  %v4303_v21 = vadd.f32 %v4202_v16, %v7989_v24  ;;  %v8050_v26 = vcombine.low %v3725_v47, %v3732_v56 }
 0x195   : > { %9839 = vst [vmem:[#allocation29_spill] sm:$0xff] %v8047_v46  ;;  %v4129_v13 = vmul.f32 %v7149_v57, %v8047_v46  ;;  %v4374_v50 = vmul.f32 %v7160_v3, %v8047_v46  ;;  %v8058_v15 = vmul.f32 %v7183_v41, %v8047_v46  ;;  %v8062_v43 = vmul.f32 %v7186_v19, %v8047_v46 }
 0x196   : > { %9838 = vst [vmem:[#allocation6_spill] sm:$0xff] %v8037_v20  ;;  %9840 = vst [vmem:[#allocation27_spill] sm:$0xff] %v8050_v26  ;;  %v8066_v24 = vmul.f32 %v7202_v59, %v8047_v46  ;;  %v2835_v52 = vcombine.high %v2833_v53, %v2833_v53  ;;  %v3568_v47 = vrot.slane %v3554_v58, %v6804_v8  ;;  %v9855_v20 = vld [vmem:[#allocation25_spill] sm:$0xff] }
 0x197   : > { %9841 = vst [vmem:[#allocation28_spill] sm:$0xff] %v8058_v15  ;;  %9842 = vst [vmem:[#allocation9_spill] sm:$0xff] %v8062_v43  ;;  %v4047_v17 = vmul.f32 %v7157_v0, %v8050_v26  ;;  %v8073_v44 = vmul.f32 %v7149_v57, %v8050_v26  ;;  %v4253_v27 = vrot.slane %v4129_v13, 1  ;;  %v8077_v23 = vmul.f32 %v7160_v3, %v8050_v26 }
 0x198   : > { %9843 = vst [vmem:[#allocation31_spill] sm:$0xff] %v8066_v24  ;;  %v4498_v51 = vrot.slane %v4374_v50, 2  ;;  %v8084_v34 = vcombine.low %v3561_v54, %v3568_v47  ;;  %v3576_v46 = vrot.slane %v2834_v49, %v6804_v8  ;;  %v8087_v13 = vcombine.low %v2833_v53, %v2835_v52 }
 0x199   : > { %9844 = vst [vmem:[#allocation11_spill] sm:$0xff] %v8073_v44  ;;  %9845 = vst [vmem:[#allocation17_spill] sm:$0xff] %v8077_v23  ;;  %v9666_v58 = vrot.slane %v8073_v44, 1  ;;  %v9665_v1 = vrot.slane %v8077_v23, 2  ;;  %v4342_v26 = vmul.f32 %v7160_v3, %v7413_v55  ;;  %v4343_v50 = vmul.f32 %v7160_v3, %v7420_v40 }
 0x19a   : > { %v4584_v16 = vmul.f32 %v9805_v33, %v9815_v37  ;;  %v8105_v53 = vsel %vm3148_vm4, %v3576_v46, 0.0  ;;  %v4039_v55 = vmul.f32 %v7157_v0, %v8084_v34  ;;  %v8115_v52 = vmul.f32 %v7149_v57, %v8084_v34 }
 0x19b   : > { %v4254_v18 = vsel %vm4184_vm5, %v9666_v58, %v4253_v27  ;;  %v8101_v54 = vsel %vm4429_vm6, %v9665_v1, %v4498_v51  ;;  %v4117_v47 = vmul.f32 %v7149_v57, %v8105_v53  ;;  %v8121_v27 = vmul.f32 %v7160_v3, %v8084_v34 }
 0x19c   : > { %9846 = vst [vmem:[#allocation15_spill] sm:$0xff] %v8101_v54  ;;  %v8109_v40 = vadd.f32 %v4254_v18, %v4047_v17  ;;  %9848 = vst [vmem:[#allocation58_spill] sm:$0xff] %v8115_v52  ;;  %v4362_v46 = vmul.f32 %v7160_v3, %v8105_v53  ;;  %v8127_v17 = vmul.f32 %v7183_v41, %v8105_v53  ;;  %v9672_v18 = vrot.slane %v8115_v52, 1 }
 0x19d   : > { %9849 = vst [vmem:[#allocation59_spill] sm:$0xff] %v8121_v27  ;;  %v8131_v51 = vmul.f32 %v7186_v19, %v8105_v53  ;;  %v4233_v1 = vrot.slane %v4117_v47, 1  ;;  %v8136_v58 = vmul.f32 %v7202_v59, %v8105_v53  ;;  %v4445_v56 = vrot.slane %v4342_v26, 2 }
 0x19e   : > { %9847 = vst [vmem:[#allocation57_spill] sm:$0xff] %v8109_v40  ;;  %v9673_v49 = vrot.slane %v8121_v27, 2  ;;  %v4478_v23 = vrot.slane %v4362_v46, 2  ;;  %v4446_v15 = vrot.slane %v4343_v50, 2  ;;  %v4585_v47 = vmul.f32 %v9805_v33, %v9816_v38 }
 0x19f   : > { %9850 = vst [vmem:[#allocation60_spill] sm:$0xff] %v8131_v51  ;;  %v4234_v40 = vsel %vm4184_vm5, %v9672_v18, %v4233_v1  ;;  %v4655_v46 = vmul.f32 %v7183_v41, %v9815_v37  ;;  %v4656_v54 = vmul.f32 %v7183_v41, %v9816_v38  ;;  %v9853_v18 = vld [vmem:[#allocation12_spill] sm:$0xff]  ;;  %v9856_v51 = vrot.slane %v9855_v20, 1 }
 0x1a0   : > { %v8147_v24 = vadd.f32 %v4234_v40, %v4039_v55  ;;  %v8152_v26 = vsel %vm4429_vm6, %v9673_v49, %v4478_v23  ;;  %v4447_v1 = vsel %vm4429_vm6, %v4445_v56, %v4446_v15  ;;  %v9854_v50 = vrot.slane %v9853_v18, 2 }
 0x1a1   : > { %9852 = vst [vmem:[#allocation62_spill] sm:$0xff] %v8152_v26  ;;  %v4899_v55 = vmul.f32 %v7186_v19, %v9815_v37  ;;  %v4900_v40 = vmul.f32 %v7186_v19, %v9816_v38  ;;  %v4548_v23 = vadd.f32 %v4447_v1, %v4303_v21  ;;  %v4757_v43 = vrot.slane %v4655_v46, 1  ;;  %v9857_v21 = vld [vmem:[#allocation26_spill] sm:$0xff] }
 0x1a2   : > { %9851 = vst [vmem:[#allocation61_spill] sm:$0xff] %v8147_v24  ;;  %v4449_v44 = vsel %vm4429_vm6, %v4446_v15, %v9854_v50  ;;  %v4758_v27 = vrot.slane %v4656_v54, 1  ;;  %v5140_v56 = vmul.f32 %v7209_v5, %v7560_v45  ;;  %v5141_v18 = vmul.f32 %v7209_v5, %v7571_v22 }
 0x1a3   : > { %v4549_v49 = vadd.f32 %v4449_v44, %v7995_v7  ;;  %v5001_v52 = vrot.slane %v4899_v55, 2  ;;  %v5002_v26 = vrot.slane %v4900_v40, 2  ;;  %v4616_v15 = vadd.f32 %v4584_v16, %v4548_v23 }
 0x1a4   : > { %v4759_v24 = vsel %vm4184_vm5, %v4757_v43, %v4758_v27  ;;  %v4761_v38 = vsel %vm4184_vm5, %v4758_v27, %v9856_v51  ;;  %v9858_v44 = vrot.slane %v9857_v21, 2  ;;  %v5211_v46 = vmul.f32 %v7202_v59, %v7560_v45 }
 0x1a5   : > { %v4617_v50 = vadd.f32 %v4585_v47, %v4549_v49  ;;  %v5003_v7 = vsel %vm4429_vm6, %v5001_v52, %v5002_v26  ;;  %v5212_v1 = vmul.f32 %v7202_v59, %v7571_v22  ;;  %v4860_v16 = vadd.f32 %v4759_v24, %v4616_v15 }
 0x1a6   : > { %v5005_v54 = vsel %vm4429_vm6, %v5002_v26, %v9858_v44  ;;  %v5455_v43 = vmul.f32 %v7206_v4, %v7560_v45  ;;  %v5456_v20 = vmul.f32 %v7206_v4, %v7571_v22  ;;  %v5313_v27 = vrot.slane %v5211_v46, 1 }
 0x1a7   : > { %v4861_v49 = vadd.f32 %v4761_v38, %v4617_v50  ;;  %v5314_v52 = vrot.slane %v5212_v1, 1  ;;  %v5457_v51 = vmul.f32 %v7206_v4, %v7553_v32  ;;  %v2265_v47 = vmul.f32 %v7775_v29, %v7545_v61 }
 0x1a8   : > { %v5104_v26 = vadd.f32 %v5003_v7, %v4860_v16  ;;  %v5557_v40 = vrot.slane %v5455_v43, 2  ;;  %v5558_v23 = vrot.slane %v5456_v20, 2  ;;  %v9859_v15 = vrot.slane %v7585_v14, 1 }
 0x1a9   : > { %v5105_v55 = vadd.f32 %v5005_v54, %v4861_v49  ;;  %v5315_v24 = vsel %vm4184_vm5, %v5313_v27, %v5314_v52  ;;  %v5560_v38 = vrot.slane %v5457_v51, 2  ;;  %v2313_v21 = vadd.f32 %v7797_v31, %v2265_v47  ;;  %v9860_v27 = vld [vmem:[#allocation20_spill] sm:$0xff] }
 0x1aa   : > { %v5317_v50 = vsel %vm4184_vm5, %v5314_v52, %v9859_v15  ;;  %v5172_v44 = vadd.f32 %v5140_v56, %v5104_v26  ;;  %v5559_v32 = vsel %vm4429_vm6, %v5557_v40, %v5558_v23  ;;  %v2256_v61 = vmul.f32 %v7775_v29, %v7548_v63  ;;  %v8216_v26 = vpop.f32.mrf.mxu1 }
 0x1ab   : > { %v5173_v46 = vadd.f32 %v5141_v18, %v5105_v55  ;;  %v5561_v7 = vsel %vm4429_vm6, %v5558_v23, %v5560_v38  ;;  %v2354_v54 = vmax.f32 %v2313_v21, 0.0  ;;  %v2266_v1 = vmul.f32 %v7775_v29, %v7581_v39  ;;  %v9861_v21 = vld [vmem:[#allocation23_spill] sm:$0xff] }
 0x1ac   : > { %v2257_v14 = vmul.f32 %v7775_v29, %v7612_v28  ;;  %v5416_v16 = vadd.f32 %v5315_v24, %v5172_v44  ;;  %v2304_v43 = vadd.f32 %v7797_v31, %v2256_v61  ;;  %v8207_v56 = vmul.f32 %v7157_v0, %v9815_v37 }
 0x1ad   : > { %v5417_v49 = vadd.f32 %v5317_v50, %v5173_v46  ;;  %v2395_v18 = vmin.f32 %v2354_v54, 6.0  ;;  %v2314_v63 = vadd.f32 %v7797_v31, %v2266_v1  ;;  %v4205_v52 = vrot.slane %v9860_v27, 1 }
 0x1ae   : > { %v2305_v20 = vadd.f32 %v7797_v31, %v2257_v14  ;;  %v5660_v51 = vadd.f32 %v5559_v32, %v5416_v16  ;;  %v2345_v47 = vmax.f32 %v2304_v43, 0.0  ;;  %v8214_v28 = vmul.f32 %v7160_v3, %v9815_v37  ;;  %v6547_v32 = vpop.f32.mrf.mxu1 }
 0x1af   : > { %v5661_v39 = vadd.f32 %v5561_v7, %v5417_v49  ;;  %v2989_v55 = vcombine.high %v2395_v18, %v2395_v18  ;;  %v2996_v40 = vrot.slane %v2395_v18, %v6804_v8  ;;  %v2355_v23 = vmax.f32 %v2314_v63, 0.0 }
 0x1b0   : > { %v2346_v24 = vmax.f32 %v2305_v20, 0.0  ;;  %v5699_v15 = vmul.f32 %v7702_v35, %v5660_v51  ;;  %v2386_v38 = vmin.f32 %v2345_v47, 6.0  ;;  %v9862_v44 = vrot.slane %v9861_v21, 1 }
 0x1b1   : > { %v5700_v50 = vmul.f32 %v7702_v35, %v5661_v39  ;;  %v3003_v37 = vrot.slane %v2989_v55, %v6804_v8  ;;  %v3004_v61 = vcombine.high %v2996_v40, %v2996_v40  ;;  %v2396_v7 = vmin.f32 %v2355_v23, 6.0  ;;  %v2215_v35 = vpop.f32.mrf.mxu1 }
 0x1b2   : > { %v8224_v46 = vsel %vm4184_vm5, %v4205_v52, %v9862_v44  ;;  %v2387_v54 = vmin.f32 %v2346_v24, 6.0  ;;  %v5738_v1 = vadd.f32 %v7716_v12, %v5699_v15  ;;  %v2836_v16 = vcombine.high %v2386_v38, %v2386_v38 }
 0x1b3   : > { %v5739_v14 = vadd.f32 %v7716_v12, %v5700_v50  ;;  %v2843_v49 = vrot.slane %v2386_v38, %v6804_v8  ;;  %v3005_v43 = vcombine.high %v3003_v37, %v3003_v37  ;;  %v3742_v18 = vcombine.low %v2996_v40, %v3004_v61  ;;  %v6548_v47 = vpop.f32.mrf.mxu1 }
 0x1b4   : > { %v3006_v63 = vcombine.high %v2396_v7, %v2396_v7  ;;  %v3013_v20 = vrot.slane %v2396_v7, %v6804_v8  ;;  %v5770_v27 = vmax.f32 %v5738_v1, 0.0  ;;  %v2850_v51 = vrot.slane %v2836_v16, %v6804_v8 }
 0x1b5   : > { %v5771_v52 = vmax.f32 %v5739_v14, 0.0  ;;  %v2851_v39 = vcombine.high %v2843_v49, %v2843_v49  ;;  %v3756_v55 = vrot.slane %v3742_v18, %v6804_v8  ;;  %v3758_v23 = vcombine.low %v3003_v37, %v3005_v43  ;;  %v2220_v21 = vpop.f32.mrf.mxu1 }
 0x1b6   : > { %v8234_v12 = vrot.slane %v3006_v63, %v6804_v8  ;;  %v3021_v24 = vcombine.high %v3013_v20, %v3013_v20  ;;  %v5802_v15 = vmin.f32 %v5770_v27, 6.0  ;;  %v2852_v38 = vcombine.high %v2850_v51, %v2850_v51 }
 0x1b7   : > { %v5803_v50 = vmin.f32 %v5771_v52, 6.0  ;;  %v3578_v40 = vcombine.low %v2843_v49, %v2851_v39  ;;  %v9863_v44 = vrot.slane %v8029_v48, %v6804_v8  ;;  %v3766_v61 = vrot.slane %v3758_v23, %v6804_v8  ;;  %v6551_v43 = vpop.f32.mrf.mxu1 }
 0x1b8   : > { %v3759_v7 = vcombine.low %v3013_v20, %v3021_v24  ;;  %v3781_v1 = vrot.slane %v8234_v12, %v6804_v8  ;;  %v3594_v16 = vcombine.low %v2850_v51, %v2852_v38  ;;  %v2853_v35 = vcombine.high %v2387_v54, %v2387_v54 }
 0x1b9   : > { %v3757_v32 = vcombine.low %v9863_v44, %v3756_v55  ;;  %v5831_v37 = vpack.c.bf16 %v5803_v50, %v5802_v15  ;;  %v3592_v14 = vrot.slane %v3578_v40, %v6804_v8  ;;  %v2860_v63 = vrot.slane %v2387_v54, %v6804_v8  ;;  %v2223_v47 = vpop.f32.mrf.mxu1 }
 0x1ba   : > { %v3773_v18 = vrot.slane %v3759_v7, %v6804_v8  ;;  %v8250_v48 = vsel %vm3148_vm4, %v3781_v1, 0.0  ;;  %v9867_v27 = vrot.slane %v8087_v13, %v6804_v8  ;;  %v3602_v51 = vrot.slane %v3594_v16, %v6804_v8 }
 0x1bb   : > { %v8245_v49 = vsel %vm3137_vm3, %v3757_v32, 0.0  ;;  %9865 = vst [vmem:[#allocation25_spill] sm:$0xff] %v8250_v48  ;;  %6560 = vmatmul.mubr.msk.bf16.gmra.mxu1 %vm5852_vm7, %v5831_v37  ;;  %v4132_v39 = vmul.f32 %v7149_v57, %v8250_v48  ;;  %v4377_v54 = vmul.f32 %v7160_v3, %v8250_v48  ;;  %v8270_v23 = vmul.f32 %v7183_v41, %v8250_v48  ;;  %v6552_v40 = vpop.f32.mrf.mxu1 }
 0x1bc   : > { %9864 = vst [vmem:[#allocation12_spill] sm:$0xff] %v8245_v49  ;;  %v8256_v20 = vmul.f32 %v7149_v57, %v8245_v49  ;;  %v3593_v52 = vcombine.low %v9867_v27, %v3592_v14  ;;  %v8264_v55 = vcombine.low %v3766_v61, %v3773_v18  ;;  %v8274_v24 = vmul.f32 %v7186_v19, %v8250_v48 }
 0x1bd   : > { %9869 = vst [vmem:[#allocation23_spill] sm:$0xff] %v8270_v23  ;;  %v4258_v15 = vrot.slane %v4132_v39, 1  ;;  %v8282_v50 = vmul.f32 %v7202_v59, %v8250_v48  ;;  %v8285_v38 = vrot.slane %v2853_v35, %v6804_v8  ;;  %v4503_v7 = vrot.slane %v4377_v54, 2 }
 0x1be   : > { %9866 = vst [vmem:[#allocation26_spill] sm:$0xff] %v8256_v20  ;;  %9868 = vst [vmem:[#allocation20_spill] sm:$0xff] %v8264_v55  ;;  %v8278_v13 = vsel %vm3137_vm3, %v3593_v52, 0.0  ;;  %v4049_v44 = vmul.f32 %v7157_v0, %v8264_v55  ;;  %v8295_v32 = vmul.f32 %v7149_v57, %v8264_v55  ;;  %v8299_v61 = vmul.f32 %v7160_v3, %v8264_v55 }
 0x1bf   : > { %9870 = vst [vmem:[#allocation63_spill] sm:$0xff] %v8274_v24  ;;  %9871 = vst [vmem:[#allocation64_spill] sm:$0xff] %v8282_v50  ;;  %v8289_v21 = vmul.f32 %v7149_v57, %v8278_v13  ;;  %v2868_v43 = vcombine.high %v2860_v63, %v2860_v63  ;;  %v3617_v18 = vrot.slane %v8285_v38, %v6804_v8  ;;  %v4450_v52 = vrot.slane %v8214_v28, 2 }
 0x1c0   : > { %9873 = vst [vmem:[#allocation66_spill] sm:$0xff] %v8295_v32  ;;  %9874 = vst [vmem:[#allocation67_spill] sm:$0xff] %v8299_v61  ;;  %v9678_v16 = vrot.slane %v8295_v32, 1  ;;  %v9677_v35 = vrot.slane %v8299_v61, 2  ;;  %v4305_v27 = vadd.f32 %v8224_v46, %v8207_v56  ;;  %v4586_v39 = vmul.f32 %v9805_v33, %v7560_v45  ;;  %v9880_v32 = vld [vmem:[#allocation30_spill] sm:$0xff] }
 0x1c1   : > { %9872 = vst [vmem:[#allocation65_spill] sm:$0xff] %v8289_v21  ;;  %v4587_v47 = vmul.f32 %v9805_v33, %v7571_v22  ;;  %v3595_v37 = vcombine.low %v2860_v63, %v2868_v43  ;;  %v8325_v56 = vsel %vm3148_vm4, %v3617_v18, 0.0  ;;  %v9878_v43 = vld [vmem:[#allocation24_spill] sm:$0xff]  ;;  %v4658_v23 = vmul.f32 %v7183_v41, %v7560_v45 }
 0x1c2   : > { %v4259_v54 = vsel %vm4184_vm5, %v9678_v16, %v4258_v15  ;;  %v8321_v40 = vsel %vm4429_vm6, %v9677_v35, %v4503_v7  ;;  %v4120_v46 = vmul.f32 %v7149_v57, %v8325_v56  ;;  %v4365_v1 = vmul.f32 %v7160_v3, %v8325_v56 }
 0x1c3   : > { %9875 = vst [vmem:[#allocation68_spill] sm:$0xff] %v8321_v40  ;;  %v8327_v28 = vadd.f32 %v4259_v54, %v4049_v44  ;;  %v8335_v15 = vmul.f32 %v7183_v41, %v8325_v56  ;;  %v3609_v7 = vrot.slane %v3595_v37, %v6804_v8  ;;  %v8340_v63 = vmul.f32 %v7186_v19, %v8325_v56 }
 0x1c4   : > { %v8344_v44 = vmul.f32 %v7202_v59, %v8325_v56  ;;  %v9879_v18 = vrot.slane %v9878_v43, 2  ;;  %v4238_v35 = vrot.slane %v4120_v46, 1  ;;  %v4483_v16 = vrot.slane %v4365_v1, 2 }
 0x1c5   : > { %9876 = vst [vmem:[#allocation69_spill] sm:$0xff] %v8327_v28  ;;  %9877 = vst [vmem:[#allocation70_spill] sm:$0xff] %v8340_v63  ;;  %v8350_v40 = vcombine.low %v3602_v51, %v3609_v7  ;;  %v4619_v20 = vadd.f32 %v4587_v47, %v9880_v32  ;;  %v4902_v1 = vmul.f32 %v7186_v19, %v7560_v45  ;;  %v9883_v28 = vrot.slane %v7575_v36, 1 }
 0x1c6   : > { %v4452_v54 = vsel %vm4429_vm6, %v4450_v52, %v9879_v18  ;;  %v4659_v52 = vmul.f32 %v7183_v41, %v7571_v22  ;;  %v5142_v7 = vmul.f32 %v7209_v5, %v7604_v30  ;;  %v5143_v37 = vmul.f32 %v7209_v5, %v7679_v9 }
 0x1c7   : > { %v4550_v61 = vadd.f32 %v4452_v54, %v4305_v27  ;;  %v4041_v51 = vmul.f32 %v7157_v0, %v8350_v40  ;;  %v8365_v27 = vmul.f32 %v7149_v57, %v8350_v40  ;;  %v8369_v32 = vmul.f32 %v7160_v3, %v8350_v40 }
 0x1c8   : > { %v4763_v47 = vrot.slane %v4659_v52, 1  ;;  %v5006_v46 = vrot.slane %v4902_v1, 2  ;;  %v5215_v52 = vmul.f32 %v7202_v59, %v7679_v9 }
 0x1c9   : > { %v4618_v24 = vadd.f32 %v4586_v39, %v4550_v61  ;;  %9881 = vst [vmem:[#allocation24_spill] sm:$0xff] %v8365_v27  ;;  %9882 = vst [vmem:[#allocation30_spill] sm:$0xff] %v8369_v32  ;;  %v4903_v61 = vmul.f32 %v7186_v19, %v7571_v22  ;;  %v4762_v39 = vrot.slane %v4658_v23, 1  ;;  %v9692_v43 = vrot.slane %v8365_v27, 1 }
 0x1ca   : > { %v9691_v18 = vrot.slane %v8369_v32, 2  ;;  %v4766_v22 = vsel %vm4184_vm5, %v4763_v47, %v9883_v28  ;;  %v5214_v23 = vmul.f32 %v7202_v59, %v7604_v30  ;;  %v5319_v63 = vrot.slane %v5215_v52, 1 }
 0x1cb   : > { %v5007_v54 = vrot.slane %v4903_v61, 2  ;;  %v4764_v14 = vsel %vm4184_vm5, %v4762_v39, %v4763_v47  ;;  %v4239_v1 = vsel %vm4184_vm5, %v9692_v43, %v4238_v35  ;;  %v4863_v50 = vadd.f32 %v4766_v22, %v4619_v20  ;;  %v9886_v47 = vld [vmem:[#allocation33_spill] sm:$0xff] }
 0x1cc   : > { %v8393_v61 = vsel %vm4429_vm6, %v9691_v18, %v4483_v16  ;;  %v4862_v39 = vadd.f32 %v4764_v14, %v4618_v24  ;;  %v8395_v36 = vadd.f32 %v4239_v1, %v4041_v51  ;;  %v9887_v48 = vrot.slane %v9886_v47, 2 }
 0x1cd   : > { %9884 = vst [vmem:[#allocation71_spill] sm:$0xff] %v8393_v61  ;;  %v5008_v28 = vsel %vm4429_vm6, %v5006_v46, %v5007_v54  ;;  %v5318_v49 = vrot.slane %v5214_v23, 1  ;;  %v5458_v35 = vmul.f32 %v7206_v4, %v7604_v30  ;;  %v5459_v16 = vmul.f32 %v7206_v4, %v7679_v9 }
 0x1ce   : > { %9885 = vst [vmem:[#allocation72_spill] sm:$0xff] %v8395_v36  ;;  %v5010_v55 = vsel %vm4429_vm6, %v5007_v54, %v9887_v48  ;;  %v5106_v21 = vadd.f32 %v5008_v28, %v4862_v39  ;;  %v5460_v20 = vmul.f32 %v7206_v4, %v7661_v2  ;;  %v2267_v24 = vmul.f32 %v7775_v29, %v7779_v60  ;;  %v9890_v28 = vld [vmem:[#allocation22_spill] sm:$0xff] }
 0x1cf   : > { %v5107_v27 = vadd.f32 %v5010_v55, %v4863_v50  ;;  %v3022_v14 = vcombine.high %v8234_v12, %v8234_v12  ;;  %v5320_v55 = vsel %vm4184_vm5, %v5318_v49, %v5319_v63  ;;  %v9888_v50 = vld [vmem:[#allocation41_spill] sm:$0xff]  ;;  %v5562_v22 = vrot.slane %v5458_v35, 2 }
 0x1d0   : > { %v5174_v48 = vadd.f32 %v5142_v7, %v5106_v21  ;;  %v9889_v46 = vrot.slane %v9888_v50, 1  ;;  %v5563_v23 = vrot.slane %v5459_v16, 2  ;;  %v5565_v52 = vrot.slane %v5460_v20, 2  ;;  %v9892_v16 = vld [vmem:[#allocation52_spill] sm:$0xff]  ;;  %v8434_v50 = vld [vmem:[%s9595_s5] ss:$0 sm:$0xff] }
 0x1d1   : > { %v5175_v51 = vadd.f32 %v5143_v37, %v5107_v27  ;;  %v2315_v1 = vadd.f32 %v7797_v31, %v2267_v24  ;;  %v2258_v60 = vmul.f32 %v7775_v29, %v9890_v28  ;;  %v2869_v12 = vcombine.high %v8285_v38, %v8285_v38  ;;  %v9891_v27 = vld [vmem:[#allocation51_spill] sm:$0xff] }
 0x1d2   : > { %v5322_v54 = vsel %vm4184_vm5, %v5319_v63, %v9889_v46  ;;  %v5418_v2 = vadd.f32 %v5320_v55, %v5174_v48  ;;  %v5564_v21 = vsel %vm4429_vm6, %v5562_v22, %v5563_v23  ;;  %v5566_v49 = vsel %vm4429_vm6, %v5563_v23, %v5565_v52 }
 0x1d3   : > { %v5419_v39 = vadd.f32 %v5322_v54, %v5175_v51  ;;  %v2356_v37 = vmax.f32 %v2315_v1, 0.0  ;;  %v2268_v63 = vmul.f32 %v7775_v29, %v9891_v27  ;;  %v2306_v35 = vadd.f32 %v7797_v31, %v2258_v60  ;;  %v9893_v51 = vld [vmem:[#allocation32_spill] sm:$0xff]  ;;  %v8446_v60 = vld [vmem:[%s9596_s6] ss:$0 sm:$0xff] }
 0x1d4   : > { %v5662_v7 = vadd.f32 %v5564_v21, %v5418_v2  ;;  %v2259_v20 = vmul.f32 %v7775_v29, %v9892_v16  ;;  %v4030_v38 = vmul.f32 %v7157_v0, %v7560_v45  ;;  %v4210_v55 = vrot.slane %v9893_v51, 1  ;;  %v9894_v2 = vld [vmem:[#allocation34_spill] sm:$0xff] }
 0x1d5   : > { %v5663_v47 = vadd.f32 %v5566_v49, %v5419_v39  ;;  %v2397_v24 = vmin.f32 %v2356_v37, 6.0  ;;  %v2316_v48 = vadd.f32 %v7797_v31, %v2268_v63  ;;  %v2347_v22 = vmax.f32 %v2306_v35, 0.0 }
 0x1d6   : > { %v5701_v46 = vmul.f32 %v8434_v50, %v5662_v7  ;;  %v2307_v29 = vadd.f32 %v7797_v31, %v2259_v20  ;;  %v9895_v39 = vrot.slane %v9894_v2, 1 }
 0x1d7   : > { %v5702_v54 = vmul.f32 %v8434_v50, %v5663_v47  ;;  %v3023_v23 = vcombine.high %v2397_v24, %v2397_v24  ;;  %v3030_v52 = vrot.slane %v2397_v24, %v6804_v8  ;;  %v2357_v1 = vmax.f32 %v2316_v48, 0.0 }
 0x1d8   : > { %v4212_v28 = vsel %vm4184_vm5, %v4210_v55, %v9895_v39  ;;  %v5740_v21 = vadd.f32 %v8446_v60, %v5701_v46  ;;  %v2388_v37 = vmin.f32 %v2347_v22, 6.0  ;;  %v2348_v27 = vmax.f32 %v2307_v29, 0.0 }
 0x1d9   : > { %v5741_v49 = vadd.f32 %v8446_v60, %v5702_v54  ;;  %v3037_v31 = vrot.slane %v3023_v23, %v6804_v8  ;;  %v3038_v63 = vcombine.high %v3030_v52, %v3030_v52  ;;  %v3782_v7 = vcombine.low %v3022_v14, %v3030_v52 }
 0x1da   : > { %v2398_v47 = vmin.f32 %v2357_v1, 6.0  ;;  %v5772_v35 = vmax.f32 %v5740_v21, 0.0  ;;  %v2870_v20 = vcombine.high %v2388_v37, %v2388_v37  ;;  %v2877_v24 = vrot.slane %v2388_v37, %v6804_v8 }
 0x1db   : > { %v5773_v16 = vmax.f32 %v5741_v49, 0.0  ;;  %v3783_v48 = vcombine.low %v3038_v63, %v3037_v31  ;;  %v3790_v51 = vrot.slane %v3782_v7, %v6804_v8  ;;  %v3039_v55 = vcombine.high %v3037_v31, %v3037_v31 }
 0x1dc   : > { %v3040_v2 = vcombine.high %v2398_v47, %v2398_v47  ;;  %v5804_v46 = vmin.f32 %v5772_v35, 6.0  ;;  %v2884_v54 = vrot.slane %v2870_v20, %v6804_v8  ;;  %v2885_v22 = vcombine.high %v2877_v24, %v2877_v24 }
 0x1dd   : > { %v5805_v39 = vmin.f32 %v5773_v16, 6.0  ;;  %v3797_v29 = vrot.slane %v3783_v48, %v6804_v8  ;;  %v3618_v23 = vcombine.low %v2869_v12, %v2877_v24  ;;  %v3047_v14 = vrot.slane %v2398_v47, %v6804_v8 }
 0x1de   : > { %v3054_v52 = vrot.slane %v3040_v2, %v6804_v8  ;;  %v3619_v21 = vcombine.low %v2885_v22, %v2884_v54  ;;  %v2389_v49 = vmin.f32 %v2348_v27, 6.0  ;;  %v2886_v37 = vcombine.high %v2884_v54, %v2884_v54 }
 0x1df   : > { %v5832_v1 = vpack.c.bf16 %v5805_v39, %v5804_v46  ;;  %v3798_v63 = vcombine.low %v3790_v51, %v3797_v29  ;;  %v3626_v31 = vrot.slane %v3618_v23, %v6804_v8  ;;  %v3055_v7 = vcombine.high %v3047_v14, %v3047_v14 }
 0x1e0   : > { %v3056_v35 = vcombine.high %v3054_v52, %v3054_v52  ;;  %v3633_v16 = vrot.slane %v3619_v21, %v6804_v8  ;;  %v3799_v20 = vcombine.low %v3039_v55, %v3047_v14  ;;  %v2887_v48 = vcombine.high %v2389_v49, %v2389_v49 }
 0x1e1   : > { %6563 = vmatprep.mubr.msk.bf16.mxu1 %vm5852_vm7, %v5832_v1  ;;  %v2894_v12 = vrot.slane %v2389_v49, %v6804_v8  ;;  %v8463_v47 = vsel %vm3137_vm3, %v3798_v63, 0.0  ;;  %v3800_v24 = vcombine.low %v3055_v7, %v3054_v52  ;;  %v4307_v51 = vadd.f32 %v4212_v28, %v4030_v38 }
 0x1e2   : > { %9896 = vst [vmem:[#allocation33_spill] sm:$0xff] %v8463_v47  ;;  %v3822_v27 = vrot.slane %v3056_v35, %v6804_v8  ;;  %v8468_v2 = vmul.f32 %v7149_v57, %v8463_v47  ;;  %v3634_v46 = vcombine.low %v3626_v31, %v3633_v16  ;;  %v3807_v39 = vrot.slane %v3799_v20, %v6804_v8  ;;  %v9908_v16 = vld [vmem:[#allocation35_spill] sm:$0xff] }
 0x1e3   : > { %v2901_v55 = vrot.slane %v2887_v48, %v6804_v8  ;;  %v3814_v54 = vrot.slane %v3800_v24, %v6804_v8  ;;  %v2902_v29 = vcombine.high %v2894_v12, %v2894_v12  ;;  %v3635_v23 = vcombine.low %v2886_v37, %v2894_v12 }
 0x1e4   : > { %9897 = vst [vmem:[#allocation41_spill] sm:$0xff] %v8468_v2  ;;  %v8475_v22 = vsel %vm3148_vm4, %v3822_v27, 0.0  ;;  %v8479_v38 = vsel %vm3137_vm3, %v3634_v46, 0.0  ;;  %v4348_v12 = vmul.f32 %v7160_v3, %v7560_v45  ;;  %v9902_v27 = vld [vmem:[#allocation38_spill] sm:$0xff]  ;;  %v9903_v46 = vld [vmem:[#allocation37_spill] sm:$0xff]  ;;  %v4662_v45 = vmul.f32 %v7183_v41, %v7679_v9 }
 0x1e5   : > { %9898 = vst [vmem:[#allocation22_spill] sm:$0xff] %v8475_v22  ;;  %v8483_v28 = vmul.f32 %v7149_v57, %v8475_v22  ;;  %v8487_v14 = vmul.f32 %v7160_v3, %v8475_v22  ;;  %v8491_v52 = vmul.f32 %v7183_v41, %v8475_v22  ;;  %v8495_v1 = vmul.f32 %v7149_v57, %v8479_v38 }
 0x1e6   : > { %v8497_v21 = vcombine.low %v3807_v39, %v3814_v54  ;;  %v8501_v49 = vmul.f32 %v7186_v19, %v8475_v22  ;;  %v2903_v37 = vcombine.high %v2901_v55, %v2901_v55  ;;  %v3636_v35 = vcombine.low %v2902_v29, %v2901_v55 }
 0x1e7   : > { %9899 = vst [vmem:[#allocation51_spill] sm:$0xff] %v8491_v52  ;;  %9900 = vst [vmem:[#allocation52_spill] sm:$0xff] %v8495_v1  ;;  %v3643_v20 = vrot.slane %v3635_v23, %v6804_v8  ;;  %v4553_v39 = vadd.f32 %v9903_v46, %v9902_v27  ;;  %v4588_v54 = vmul.f32 %v9805_v33, %v7604_v30  ;;  %v4455_v23 = vrot.slane %v4348_v12, 2 }
 0x1e8   : > { %9901 = vst [vmem:[#allocation32_spill] sm:$0xff] %v8501_v49  ;;  %v3658_v48 = vrot.slane %v2903_v37, %v6804_v8  ;;  %v3650_v24 = vrot.slane %v3636_v35, %v6804_v8  ;;  %v4589_v55 = vmul.f32 %v9805_v33, %v7679_v9  ;;  %v4661_v37 = vmul.f32 %v7183_v41, %v7604_v30  ;;  %v9913_v49 = vld [vmem:[#allocation39_spill] sm:$0xff] }
 0x1e9   : > { %v9909_v7 = vrot.slane %v9908_v16, 2  ;;  %v4768_v22 = vrot.slane %v4662_v45, 1  ;;  %v4905_v16 = vmul.f32 %v7186_v19, %v7604_v30 }
 0x1ea   : > { %v8520_v29 = vsel %vm3148_vm4, %v3658_v48, 0.0  ;;  %v8526_v35 = vcombine.low %v3643_v20, %v3650_v24  ;;  %v4621_v24 = vadd.f32 %v4589_v55, %v4553_v39  ;;  %v4767_v18 = vrot.slane %v4661_v37, 1  ;;  %v9911_v55 = vld [vmem:[#allocation10_spill] sm:$0xff]  ;;  %v9912_v37 = vld [vmem:[#allocation47_spill] sm:$0xff] }
 0x1eb   : > { %9904 = vst [vmem:[#allocation34_spill] sm:$0xff] %v8520_v29  ;;  %v4123_v27 = vmul.f32 %v7149_v57, %v8520_v29  ;;  %v8532_v46 = vmul.f32 %v7160_v3, %v8520_v29  ;;  %v8536_v48 = vmul.f32 %v7183_v41, %v8520_v29  ;;  %v8540_v12 = vmul.f32 %v7186_v19, %v8520_v29 }
 0x1ec   : > { %v4457_v20 = vsel %vm4429_vm6, %v4455_v23, %v9909_v7  ;;  %v8547_v43 = vmul.f32 %v7149_v57, %v8526_v35  ;;  %v4906_v39 = vmul.f32 %v7186_v19, %v7679_v9  ;;  %v5144_v23 = vmul.f32 %v7209_v5, %v9911_v55 }
 0x1ed   : > { %9905 = vst [vmem:[#allocation38_spill] sm:$0xff] %v8532_v46  ;;  %9906 = vst [vmem:[#allocation37_spill] sm:$0xff] %v8536_v48  ;;  %v4243_v31 = vrot.slane %v4123_v27, 1  ;;  %v4552_v52 = vadd.f32 %v4457_v20, %v4307_v51  ;;  %v5145_v27 = vmul.f32 %v7209_v5, %v9912_v37  ;;  %v4769_v2 = vsel %vm4184_vm5, %v4767_v18, %v4768_v22  ;;  %v9916_v18 = vld [vmem:[#allocation19_spill] sm:$0xff] }
 0x1ee   : > { %9907 = vst [vmem:[#allocation73_spill] sm:$0xff] %v8540_v12  ;;  %9910 = vst [vmem:[#allocation35_spill] sm:$0xff] %v8547_v43  ;;  %v9701_v7 = vrot.slane %v8547_v43, 1  ;;  %v9914_v51 = vrot.slane %v9913_v49, 1  ;;  %v5011_v20 = vrot.slane %v4905_v16, 2  ;;  %v5012_v46 = vrot.slane %v4906_v39, 2 }
 0x1ef   : > { %v4620_v63 = vadd.f32 %v4588_v54, %v4552_v52  ;;  %v5217_v1 = vmul.f32 %v7202_v59, %v9911_v55  ;;  %v5218_v52 = vmul.f32 %v7202_v59, %v9912_v37  ;;  %v5219_v49 = vmul.f32 %v7202_v59, %v9916_v18  ;;  %v9917_v16 = vld [vmem:[#allocation40_spill] sm:$0xff] }
 0x1f0   : > { %v4771_v45 = vsel %vm4184_vm5, %v4768_v22, %v9914_v51  ;;  %v8568_v47 = vsel %vm4184_vm5, %v9701_v7, %v4243_v31  ;;  %v5461_v22 = vmul.f32 %v7206_v4, %v9911_v55  ;;  %v5013_v54 = vsel %vm4429_vm6, %v5011_v20, %v5012_v46  ;;  %v8589_v20 = vld [vmem:[%s9592_s2] ss:$0 sm:$0xff] }
 0x1f1   : > { %9915 = vst [vmem:[#allocation10_spill] sm:$0xff] %v8568_v47  ;;  %v4865_v9 = vadd.f32 %v4771_v45, %v4621_v24  ;;  %v4864_v12 = vadd.f32 %v4769_v2, %v4620_v63  ;;  %v9918_v31 = vrot.slane %v9917_v16, 2  ;;  %v5323_v39 = vrot.slane %v5217_v1, 1 }
 0x1f2   : > { %v5462_v51 = vmul.f32 %v7206_v4, %v9912_v37  ;;  %v5324_v45 = vrot.slane %v5218_v52, 1  ;;  %v5326_v7 = vrot.slane %v5219_v49, 1  ;;  %v5463_v43 = vmul.f32 %v7206_v4, %v9916_v18  ;;  %v8599_v18 = vld [vmem:[%s9593_s3] ss:$0 sm:$0xff] }
 0x1f3   : > { %v5015_v24 = vsel %vm4429_vm6, %v5012_v46, %v9918_v31  ;;  %v5108_v2 = vadd.f32 %v5013_v54, %v4864_v12  ;;  %v5567_v47 = vrot.slane %v5461_v22, 2  ;;  %v2269_v1 = vmul.f32 %v8589_v20, %v7983_v11  ;;  %v9919_v54 = vld [vmem:[#allocation13_spill] sm:$0xff] }
 0x1f4   : > { %v5109_v63 = vadd.f32 %v5015_v24, %v4865_v9  ;;  %v5568_v48 = vrot.slane %v5462_v51, 2  ;;  %v5325_v12 = vsel %vm4184_vm5, %v5323_v39, %v5324_v45  ;;  %v5327_v9 = vsel %vm4184_vm5, %v5324_v45, %v5326_v7 }
 0x1f5   : > { %v5176_v46 = vadd.f32 %v5144_v23, %v5108_v2  ;;  %v5570_v49 = vrot.slane %v5463_v43, 2  ;;  %v2317_v22 = vadd.f32 %v8599_v18, %v2269_v1  ;;  %v2260_v31 = vmul.f32 %v8589_v20, %v9919_v54 }
 0x1f6   : > { %v5177_v16 = vadd.f32 %v5145_v27, %v5109_v63  ;;  %v5569_v52 = vsel %vm4429_vm6, %v5567_v47, %v5568_v48  ;;  %v9920_v27 = vld [vmem:[#allocation14_spill] sm:$0xff]  ;;  %v2261_v7 = vmul.f32 %v8589_v20, %v8017_v25  ;;  %v2262_v51 = vmul.f32 %v8589_v20, %v8041_v42 }
 0x1f7   : > { %v5420_v11 = vadd.f32 %v5325_v12, %v5176_v46  ;;  %v2270_v24 = vmul.f32 %v8589_v20, %v9920_v27  ;;  %v5571_v43 = vsel %vm4429_vm6, %v5568_v48, %v5570_v49  ;;  %v2358_v47 = vmax.f32 %v2317_v22, 0.0 }
 0x1f8   : > { %v5421_v23 = vadd.f32 %v5327_v9, %v5177_v16  ;;  %v2308_v39 = vadd.f32 %v8599_v18, %v2260_v31  ;;  %v2309_v1 = vadd.f32 %v8599_v18, %v2261_v7  ;;  %v2310_v12 = vadd.f32 %v8599_v18, %v2262_v51 }
 0x1f9   : > { %v5664_v2 = vadd.f32 %v5569_v52, %v5420_v11  ;;  %v2318_v45 = vadd.f32 %v8599_v18, %v2270_v24  ;;  %v2399_v46 = vmin.f32 %v2358_v47, 6.0  ;;  %v8617_v25 = vmul.f32 %v7157_v0, %v7604_v30 }
 0x1fa   : > { %v5665_v63 = vadd.f32 %v5571_v43, %v5421_v23  ;;  %v2349_v16 = vmax.f32 %v2308_v39, 0.0  ;;  %v2350_v42 = vmax.f32 %v2309_v1, 0.0  ;;  %v2351_v31 = vmax.f32 %v2310_v12, 0.0 }
 0x1fb   : > { %v5703_v48 = vmul.f32 %v8434_v50, %v5664_v2  ;;  %v2359_v49 = vmax.f32 %v2318_v45, 0.0  ;;  %v3057_v52 = vcombine.high %v2399_v46, %v2399_v46  ;;  %v3064_v22 = vrot.slane %v2399_v46, %v6804_v8 }
 0x1fc   : > { %v5704_v9 = vmul.f32 %v8434_v50, %v5665_v63  ;;  %v2390_v54 = vmin.f32 %v2349_v16, 6.0  ;;  %v2391_v24 = vmin.f32 %v2350_v42, 6.0  ;;  %v4664_v6 = vmul.f32 %v7183_v41, %v9911_v55 }
 0x1fd   : > { %v5742_v11 = vadd.f32 %v8446_v60, %v5703_v48  ;;  %v2400_v27 = vmin.f32 %v2359_v49, 6.0  ;;  %v3071_v7 = vrot.slane %v3057_v52, %v6804_v8  ;;  %v3072_v43 = vcombine.high %v3064_v22, %v3064_v22 }
 0x1fe   : > { %v5743_v23 = vadd.f32 %v8446_v60, %v5704_v9  ;;  %v2904_v47 = vcombine.high %v2390_v54, %v2390_v54  ;;  %v2911_v39 = vrot.slane %v2390_v54, %v6804_v8  ;;  %v2921_v29 = vcombine.high %v2391_v24, %v2391_v24 }
 0x1ff   : > { %v5774_v51 = vmax.f32 %v5742_v11, 0.0  ;;  %v3074_v63 = vcombine.high %v2400_v27, %v2400_v27  ;;  %v3081_v45 = vrot.slane %v2400_v27, %v6804_v8  ;;  %v3073_v1 = vcombine.high %v3071_v7, %v3071_v7 }
 0x200   : > { %v5775_v2 = vmax.f32 %v5743_v23, 0.0  ;;  %v3823_v46 = vcombine.low %v3064_v22, %v3072_v43  ;;  %v2918_v16 = vrot.slane %v2904_v47, %v6804_v8  ;;  %v2919_v12 = vcombine.high %v2911_v39, %v2911_v39 }
 0x201   : > { %v5806_v48 = vmin.f32 %v5774_v51, 6.0  ;;  %v3088_v49 = vrot.slane %v3074_v63, %v6804_v8  ;;  %v3089_v42 = vcombine.high %v3081_v45, %v3081_v45  ;;  %v3824_v52 = vcombine.low %v3071_v7, %v3073_v1 }
 0x202   : > { %v5807_v9 = vmin.f32 %v5775_v2, 6.0  ;;  %v3831_v32 = vrot.slane %v3823_v46, %v6804_v8  ;;  %v2920_v61 = vcombine.high %v2918_v16, %v2918_v16  ;;  %v3659_v54 = vcombine.low %v2911_v39, %v2919_v12  ;;  %v9921_v46 = vld [vmem:[#allocation36_spill] sm:$0xff] }
 0x203   : > { %v3090_v23 = vcombine.high %v3088_v49, %v3088_v49  ;;  %v3840_v36 = vcombine.low %v3081_v45, %v3089_v42  ;;  %v3838_v27 = vrot.slane %v3824_v52, %v6804_v8  ;;  %v2928_v47 = vrot.slane %v2391_v24, %v6804_v8 }
 0x204   : > { %v5833_v11 = vpack.c.bf16 %v5807_v9, %v5806_v48  ;;  %v3660_v22 = vcombine.low %v2918_v16, %v2920_v61  ;;  %v3667_v43 = vrot.slane %v3659_v54, %v6804_v8  ;;  %v2935_v2 = vrot.slane %v2921_v29, %v6804_v8  ;;  %v9923_v29 = vld [vmem:[#allocation42_spill] sm:$0xff] }
 0x205   : > { %v3841_v51 = vcombine.low %v3088_v49, %v3090_v23  ;;  %v3848_v7 = vrot.slane %v3840_v36, %v6804_v8  ;;  %v2392_v63 = vmin.f32 %v2351_v31, 6.0  ;;  %v3839_v39 = vcombine.low %v3831_v32, %v3838_v27 }
 0x206   : > { %6564 = vmatmul.mubr.msk.bf16.gmra.mxu1 %vm5852_vm7, %v5833_v11  ;;  %v3674_v1 = vrot.slane %v3660_v22, %v6804_v8  ;;  %v2936_v45 = vcombine.high %v2928_v47, %v2928_v47  ;;  %v4215_v12 = vrot.slane %v9921_v46, 1  ;;  %v2937_v16 = vcombine.high %v2935_v2, %v2935_v2 }
 0x207   : > { %v3855_v61 = vrot.slane %v3841_v51, %v6804_v8  ;;  %v2938_v48 = vcombine.high %v2392_v63, %v2392_v63  ;;  %v2945_v24 = vrot.slane %v2392_v63, %v6804_v8  ;;  %v8642_v9 = vsel %vm3137_vm3, %v3839_v39, 0.0 }
 0x208   : > { %9922 = vst [vmem:[#allocation47_spill] sm:$0xff] %v8642_v9  ;;  %v3675_v36 = vcombine.low %v3667_v43, %v3674_v1  ;;  %v3676_v49 = vcombine.low %v2928_v47, %v2936_v45  ;;  %v9924_v31 = vrot.slane %v9923_v29, 1  ;;  %v8649_v42 = vmul.f32 %v9805_v33, %v8642_v9  ;;  %v9932_v29 = vld [vmem:[#allocation21_spill] sm:$0xff] }
 0x209   : > { %v8653_v52 = vmul.f32 %v7183_v41, %v8642_v9  ;;  %v8657_v54 = vmul.f32 %v7186_v19, %v8642_v9  ;;  %v8659_v11 = vcombine.low %v3848_v7, %v3855_v61  ;;  %v3677_v27 = vcombine.low %v2935_v2, %v2937_v16  ;;  %v9929_v61 = vld [vmem:[#allocation45_spill] sm:$0xff]  ;;  %v9930_v16 = vld [vmem:[#allocation44_spill] sm:$0xff]  ;;  %v9940_v9 = vld [vmem:[#allocation43_spill] sm:$0xff] }
 0x20a   : > { %v4217_v32 = vsel %vm4184_vm5, %v4215_v12, %v9924_v31  ;;  %9925 = vst [vmem:[#allocation39_spill] sm:$0xff] %v8649_v42  ;;  %v8663_v23 = vsel %vm3137_vm3, %v3675_v36, 0.0  ;;  %v3684_v22 = vrot.slane %v3676_v49, %v6804_v8  ;;  %v2952_v43 = vrot.slane %v2938_v48, %v6804_v8 }
 0x20b   : > { %9926 = vst [vmem:[#allocation19_spill] sm:$0xff] %v8653_v52  ;;  %9927 = vst [vmem:[#allocation40_spill] sm:$0xff] %v8657_v54  ;;  %v8671_v63 = vmul.f32 %v7149_v57, %v8663_v23  ;;  %v2953_v39 = vcombine.high %v2945_v24, %v2945_v24  ;;  %v3691_v7 = vrot.slane %v3677_v27, %v6804_v8 }
 0x20c   : > { %v2954_v1 = vcombine.high %v2952_v43, %v2952_v43  ;;  %v3699_v45 = vrot.slane %v2945_v24, %v6804_v8  ;;  %v4309_v2 = vadd.f32 %v4217_v32, %v8617_v25  ;;  %v4351_v12 = vmul.f32 %v7160_v3, %v7604_v30 }
 0x20d   : > { %9928 = vst [vmem:[#allocation13_spill] sm:$0xff] %v8671_v63  ;;  %v3700_v46 = vcombine.low %v2953_v39, %v2952_v43  ;;  %v4555_v48 = vadd.f32 %v9930_v16, %v9929_v61  ;;  %v4590_v36 = vmul.f32 %v9805_v33, %v9911_v55  ;;  %v8682_v49 = vcombine.low %v3684_v22, %v3691_v7 }
 0x20e   : > { %v3701_v31 = vcombine.low %v2954_v1, %v9932_v29  ;;  %v3997_v27 = vsel %vm3148_vm4, %v3699_v45, 0.0  ;;  %v4591_v25 = vmul.f32 %v9805_v33, %v9912_v37 }
 0x20f   : > { %9931 = vst [vmem:[#allocation14_spill] sm:$0xff] %v8682_v49  ;;  %v3708_v24 = vrot.slane %v3700_v46, %v6804_v8  ;;  %v4126_v30 = vmul.f32 %v7149_v57, %v3997_v27  ;;  %v4371_v32 = vmul.f32 %v7160_v3, %v3997_v27  ;;  %v8693_v43 = vmul.f32 %v7183_v41, %v3997_v27 }
 0x210   : > { %v3715_v22 = vrot.slane %v3701_v31, %v6804_v8  ;;  %v4045_v39 = vmul.f32 %v7157_v0, %v8682_v49  ;;  %v8700_v7 = vmul.f32 %v7149_v57, %v8682_v49  ;;  %v8704_v1 = vmul.f32 %v7160_v3, %v8682_v49 }
 0x211   : > { %9933 = vst [vmem:[#allocation36_spill] sm:$0xff] %v8693_v43  ;;  %v4248_v45 = vrot.slane %v4126_v30, 1  ;;  %v4493_v46 = vrot.slane %v4371_v32, 2  ;;  %v8708_v16 = vmul.f32 %v7186_v19, %v3997_v27  ;;  %v8713_v47 = vmul.f32 %v7202_v59, %v3997_v27 }
 0x212   : > { %9934 = vst [vmem:[#allocation42_spill] sm:$0xff] %v8700_v7  ;;  %9935 = vst [vmem:[#allocation45_spill] sm:$0xff] %v8704_v1  ;;  %v3716_v29 = vcombine.low %v3708_v24, %v3715_v22  ;;  %v9712_v31 = vrot.slane %v8700_v7, 1  ;;  %v9711_v51 = vrot.slane %v8704_v1, 2  ;;  %v8717_v54 = vmul.f32 %v7206_v4, %v3997_v27 }
 0x213   : > { %9936 = vst [vmem:[#allocation44_spill] sm:$0xff] %v8708_v16  ;;  %9937 = vst [vmem:[#allocation21_spill] sm:$0xff] %v8713_v47  ;;  %v4460_v30 = vrot.slane %v4351_v12, 2  ;;  %v4623_v32 = vadd.f32 %v4591_v25, %v4555_v48  ;;  %v9941_v12 = vrot.slane %v9940_v9, 2  ;;  %v2271_v49 = vmul.f32 %v8589_v20, %v8216_v26 }
 0x214   : > { %9938 = vst [vmem:[#allocation74_spill] sm:$0xff] %v8717_v54  ;;  %v8721_v61 = vsel %vm3137_vm3, %v3716_v29, 0.0  ;;  %v4249_v24 = vsel %vm4184_vm5, %v9712_v31, %v4248_v45  ;;  %v4494_v22 = vsel %vm4429_vm6, %v9711_v51, %v4493_v46  ;;  %v4665_v45 = vmul.f32 %v7183_v41, %v9912_v37  ;;  %v9943_v51 = vld [vmem:[#allocation7_spill] sm:$0xff] }
 0x215   : > { %9939 = vst [vmem:[#allocation75_spill] sm:$0xff] %v8721_v61  ;;  %v4322_v42 = vadd.f32 %v4249_v24, %v4045_v39  ;;  %v4462_v48 = vsel %vm4429_vm6, %v4460_v30, %v9941_v12  ;;  %v4908_v29 = vmul.f32 %v7186_v19, %v9911_v55  ;;  %v4909_v46 = vmul.f32 %v7186_v19, %v9912_v37  ;;  %v9944_v30 = vld [vmem:[#allocation54_spill] sm:$0xff] }
 0x216   : > { %v4554_v25 = vadd.f32 %v4462_v48, %v4309_v2  ;;  %v4772_v24 = vrot.slane %v4664_v6, 1  ;;  %v5146_v9 = vmul.f32 %v7209_v5, %v9943_v51  ;;  %v5147_v12 = vmul.f32 %v7209_v5, %v9944_v30 }
 0x217   : > { %v8742_v39 = vadd.f32 %v4494_v22, %v4322_v42  ;;  %v4773_v2 = vrot.slane %v4665_v45, 1  ;;  %v5016_v48 = vrot.slane %v4908_v29, 2  ;;  %v5017_v27 = vrot.slane %v4909_v46, 2  ;;  %v9947_v45 = vld [vmem:[#allocation50_spill] sm:$0xff] }
 0x218   : > { %v4622_v31 = vadd.f32 %v4590_v36, %v4554_v25  ;;  %v5220_v52 = vmul.f32 %v7202_v59, %v9943_v51  ;;  %v5221_v1 = vmul.f32 %v7202_v59, %v9944_v30  ;;  %v5464_v42 = vmul.f32 %v7206_v4, %v9943_v51 }
 0x219   : > { %9942 = vst [vmem:[#allocation43_spill] sm:$0xff] %v8742_v39  ;;  %v5465_v22 = vmul.f32 %v7206_v4, %v9944_v30  ;;  %v4774_v6 = vsel %vm4184_vm5, %v4772_v24, %v4773_v2  ;;  %v9945_v39 = vld [vmem:[#allocation49_spill] sm:$0xff]  ;;  %v5018_v25 = vsel %vm4429_vm6, %v5016_v48, %v5017_v27  ;;  %v9948_v29 = vrot.slane %v9947_v45, 2  ;;  %v9949_v48 = vld [vmem:[#allocation8_spill] sm:$0xff] }
 0x21a   : > { %v9946_v7 = vrot.slane %v9945_v39, 1  ;;  %v4866_v63 = vadd.f32 %v4774_v6, %v4622_v31  ;;  %v5328_v16 = vrot.slane %v5220_v52, 1  ;;  %v5329_v43 = vrot.slane %v5221_v1, 1  ;;  %v9951_v52 = vld [vmem:[#allocation2_spill] sm:$0xff] }
 0x21b   : > { %v5020_v46 = vsel %vm4429_vm6, %v5017_v27, %v9948_v29  ;;  %v5572_v54 = vrot.slane %v5464_v42, 2  ;;  %v5573_v47 = vrot.slane %v5465_v22, 2  ;;  %v4051_v39 = vmul.f32 %v7157_v0, %v8497_v21 }
 0x21c   : > { %v4776_v36 = vsel %vm4184_vm5, %v4773_v2, %v9946_v7  ;;  %v5110_v24 = vadd.f32 %v5018_v25, %v4866_v63  ;;  %v5330_v2 = vsel %vm4184_vm5, %v5328_v16, %v5329_v43  ;;  %v9950_v45 = vrot.slane %v9949_v48, 1 }
 0x21d   : > { %v4867_v61 = vadd.f32 %v4776_v36, %v4623_v32  ;;  %v5574_v31 = vsel %vm4429_vm6, %v5572_v54, %v5573_v47  ;;  %v9952_v1 = vrot.slane %v9951_v52, 2  ;;  %v2319_v42 = vadd.f32 %v8599_v18, %v2271_v49  ;;  %v9955_v52 = vld [vmem:[#allocation46_spill] sm:$0xff] }
 0x21e   : > { %v5332_v27 = vsel %vm4184_vm5, %v5329_v43, %v9950_v45  ;;  %v8779_v26 = vmul.f32 %v7149_v57, %v8497_v21  ;;  %v5178_v20 = vadd.f32 %v5146_v9, %v5110_v24  ;;  %v4609_v43 = vmul.f32 %v9805_v33, %v8659_v11 }
 0x21f   : > { %v5111_v7 = vadd.f32 %v5020_v46, %v4867_v61  ;;  %v5576_v32 = vsel %vm4429_vm6, %v5573_v47, %v9952_v1  ;;  %v8783_v61 = vmul.f32 %v7160_v3, %v8497_v21  ;;  %v2360_v54 = vmax.f32 %v2319_v42, 0.0 }
 0x220   : > { %v9723_v16 = vrot.slane %v8779_v26, 1  ;;  %v8790_v47 = vmul.f32 %v7183_v41, %v8659_v11  ;;  %v8794_v18 = vmul.f32 %v7186_v19, %v8659_v11  ;;  %v5422_v49 = vadd.f32 %v5330_v2, %v5178_v20 }
 0x221   : > { %v5179_v63 = vadd.f32 %v5147_v12, %v5111_v7  ;;  %v9722_v12 = vrot.slane %v8783_v61, 2  ;;  %v4034_v22 = vmul.f32 %v7157_v0, %v9911_v55  ;;  %v2401_v6 = vmin.f32 %v2360_v54, 6.0 }
 0x222   : > { %v9953_v36 = vrot.slane %v8483_v28, 1  ;;  %v4818_v29 = vrot.slane %v8790_v47, 1  ;;  %v5062_v46 = vrot.slane %v8794_v18, 2  ;;  %v5666_v24 = vadd.f32 %v5574_v31, %v5422_v49 }
 0x223   : > { %v5423_v9 = vadd.f32 %v5332_v27, %v5179_v63  ;;  %v9954_v48 = vrot.slane %v8487_v14, 2  ;;  %v3098_v27 = vrot.slane %v2401_v6, %v6804_v8  ;;  %v4035_v28 = vmul.f32 %v7157_v0, %v9912_v37  ;;  %v9956_v63 = vld [vmem:[#allocation16_spill] sm:$0xff] }
 0x224   : > { %v4264_v25 = vsel %vm4184_vm5, %v9723_v16, %v9953_v36  ;;  %v4220_v1 = vrot.slane %v9955_v52, 1  ;;  %v4354_v42 = vmul.f32 %v7160_v3, %v9911_v55  ;;  %v5705_v31 = vmul.f32 %v8434_v50, %v5666_v24 }
 0x225   : > { %v5667_v7 = vadd.f32 %v5576_v32, %v5423_v9  ;;  %v4328_v2 = vadd.f32 %v4264_v25, %v4051_v39  ;;  %v4509_v45 = vsel %vm4429_vm6, %v9722_v12, %v9954_v48  ;;  %v4355_v14 = vmul.f32 %v7160_v3, %v9912_v37  ;;  %v9958_v9 = vld [vmem:[#allocation3_spill] sm:$0xff] }
 0x226   : > { %v3863_v20 = vrot.slane %v3098_v27, %v6804_v8  ;;  %v9957_v54 = vrot.slane %v9956_v63, 1  ;;  %v4312_v6 = vadd.f32 %v9958_v9, %v4035_v28  ;;  %v4465_v36 = vrot.slane %v4354_v42, 2 }
 0x227   : > { %v5706_v39 = vmul.f32 %v8434_v50, %v5667_v7  ;;  %v4573_v32 = vadd.f32 %v4509_v45, %v4328_v2  ;;  %v5744_v25 = vadd.f32 %v8446_v60, %v5705_v31  ;;  %v4466_v2 = vrot.slane %v4355_v14, 2 }
 0x228   : > { %v4222_v49 = vsel %vm4184_vm5, %v4220_v1, %v9957_v54  ;;  %v4009_v7 = vsel %vm3148_vm4, %v3863_v20, 0.0  ;;  %v4592_v8 = vmul.f32 %v9805_v33, %v9943_v51  ;;  %v4593_v37 = vmul.f32 %v9805_v33, %v9944_v30 }
 0x229   : > { %v5745_v55 = vadd.f32 %v8446_v60, %v5706_v39  ;;  %v4641_v24 = vadd.f32 %v4609_v43, %v4573_v32  ;;  %v4311_v48 = vadd.f32 %v4222_v49, %v4034_v22  ;;  %v5776_v45 = vmax.f32 %v5744_v25, 0.0  ;;  %v9959_v22 = vld [vmem:[#allocation48_spill] sm:$0xff] }
 0x22a   : > { %v4693_v28 = vmul.f32 %v7183_v41, %v4009_v7  ;;  %v4937_v52 = vmul.f32 %v7186_v19, %v4009_v7  ;;  %v8837_v1 = vmul.f32 %v7202_v59, %v4009_v7  ;;  %v8840_v43 = vmul.f32 %v7206_v4, %v4009_v7 }
 0x22b   : > { %v5777_v27 = vmax.f32 %v5745_v55, 0.0  ;;  %v4467_v10 = vsel %vm4429_vm6, %v4465_v36, %v4466_v2  ;;  %v9960_v42 = vrot.slane %v9959_v22, 2  ;;  %v5808_v39 = vmin.f32 %v5776_v45, 6.0 }
 0x22c   : > { %v4820_v14 = vrot.slane %v4693_v28, 1  ;;  %v5064_v20 = vrot.slane %v4937_v52, 2  ;;  %v5371_v63 = vrot.slane %v8837_v1, 1  ;;  %v5615_v54 = vrot.slane %v8840_v43, 2  ;;  %v10058_v1 = vld [vmem:[#allocation19_spill] sm:$0xff] }
 0x22d   : > { %v4469_v31 = vsel %vm4429_vm6, %v4466_v2, %v9960_v42  ;;  %v5809_v32 = vmin.f32 %v5777_v27, 6.0  ;;  %v4556_v49 = vadd.f32 %v4467_v10, %v4311_v48  ;;  %v4667_v7 = vmul.f32 %v7183_v41, %v9943_v51 }
 0x22e   : > { %v4557_v9 = vadd.f32 %v4469_v31, %v4312_v6  ;;  %v4821_v55 = vsel %vm4184_vm5, %v4818_v29, %v4820_v14  ;;  %v5065_v36 = vsel %vm4429_vm6, %v5062_v46, %v5064_v20  ;;  %v4668_v28 = vmul.f32 %v7183_v41, %v9944_v30  ;;  %v9961_v14 = vld [vmem:[#allocation4_spill] sm:$0xff] }
 0x22f   : > { %v5834_v25 = vpack.c.bf16 %v5809_v32, %v5808_v39  ;;  %v4885_v2 = vadd.f32 %v4821_v55, %v4641_v24  ;;  %v4624_v45 = vadd.f32 %v4592_v8, %v4556_v49  ;;  %v4777_v6 = vrot.slane %v4667_v7, 1 }
 0x230   : > { %v4625_v27 = vadd.f32 %v4593_v37, %v4557_v9  ;;  %v4911_v48 = vmul.f32 %v7186_v19, %v9943_v51  ;;  %v4912_v52 = vmul.f32 %v7186_v19, %v9944_v30  ;;  %v5148_v10 = vmul.f32 %v7209_v5, %v8026_v62 }
 0x231   : > { %6567 = vmatprep.mubr.msk.bf16.mxu1 %vm5852_vm7, %v5834_v25  ;;  %v8865_v22 = vadd.f32 %v5065_v36, %v4885_v2  ;;  %v4778_v24 = vrot.slane %v4668_v28, 1  ;;  %v5149_v8 = vmul.f32 %v7209_v5, %v8084_v34  ;;  %v5223_v37 = vmul.f32 %v7202_v59, %v8026_v62  ;;  %v9963_v2 = vld [vmem:[#allocation5_spill] sm:$0xff] }
 0x232   : > { %v5021_v42 = vrot.slane %v4911_v48, 2  ;;  %v5022_v31 = vrot.slane %v4912_v52, 2  ;;  %v5224_v39 = vmul.f32 %v7202_v59, %v8084_v34  ;;  %v5467_v30 = vmul.f32 %v7206_v4, %v8026_v62 }
 0x233   : > { %v4779_v32 = vsel %vm4184_vm5, %v4777_v6, %v4778_v24  ;;  %v9962_v20 = vrot.slane %v9961_v14, 1  ;;  %v5333_v9 = vrot.slane %v5223_v37, 1  ;;  %v5468_v25 = vmul.f32 %v7206_v4, %v8084_v34 }
 0x234   : > { %v4868_v55 = vadd.f32 %v4779_v32, %v4624_v45  ;;  %v5023_v7 = vsel %vm4429_vm6, %v5021_v42, %v5022_v31  ;;  %v9964_v28 = vrot.slane %v9963_v2, 2  ;;  %v5334_v52 = vrot.slane %v5224_v39, 1 }
 0x235   : > { %v4781_v49 = vsel %vm4184_vm5, %v4778_v24, %v9962_v20  ;;  %v5469_v6 = vmul.f32 %v7206_v4, %v8105_v53  ;;  %v5577_v12 = vrot.slane %v5467_v30, 2  ;;  %v5578_v14 = vrot.slane %v5468_v25, 2  ;;  %v9965_v20 = vld [vmem:[#allocation53_spill] sm:$0xff]  ;;  %v9967_v30 = vld [vmem:[#allocation55_spill] sm:$0xff] }
 0x236   : > { %v4869_v36 = vadd.f32 %v4781_v49, %v4625_v27  ;;  %v5025_v48 = vsel %vm4429_vm6, %v5022_v31, %v9964_v28  ;;  %v5112_v16 = vadd.f32 %v5023_v7, %v4868_v55  ;;  %v4036_v37 = vmul.f32 %v7157_v0, %v9943_v51 }
 0x237   : > { %v4225_v45 = vrot.slane %v9965_v20, 1  ;;  %v5335_v27 = vsel %vm4184_vm5, %v5333_v9, %v5334_v52  ;;  %v9966_v42 = vrot.slane %v8136_v58, 1  ;;  %v5579_v31 = vsel %vm4429_vm6, %v5577_v12, %v5578_v14 }
 0x238   : > { %v5113_v24 = vadd.f32 %v5025_v48, %v4869_v36  ;;  %v5580_v39 = vrot.slane %v5469_v6, 2  ;;  %v5180_v49 = vadd.f32 %v5148_v10, %v5112_v16  ;;  %v9968_v25 = vrot.slane %v9967_v30, 1 }
 0x239   : > { %v5337_v32 = vsel %vm4184_vm5, %v5334_v52, %v9966_v42  ;;  %v4357_v36 = vmul.f32 %v7160_v3, %v9943_v51  ;;  %v4594_v58 = vmul.f32 %v9805_v33, %v8026_v62  ;;  %v4595_v9 = vmul.f32 %v9805_v33, %v8084_v34 }
 0x23a   : > { %v5181_v53 = vadd.f32 %v5149_v8, %v5113_v24  ;;  %v4227_v55 = vsel %vm4184_vm5, %v4225_v45, %v9968_v25  ;;  %v5581_v7 = vsel %vm4429_vm6, %v5578_v14, %v5580_v39  ;;  %v5424_v12 = vadd.f32 %v5335_v27, %v5180_v49  ;;  %v9969_v8 = vld [vmem:[#allocation18_spill] sm:$0xff] }
 0x23b   : > { %v4313_v2 = vadd.f32 %v4227_v55, %v4036_v37  ;;  %v4470_v16 = vrot.slane %v4357_v36, 2  ;;  %v4670_v10 = vmul.f32 %v7183_v41, %v8026_v62  ;;  %v4627_v48 = vadd.f32 %v4595_v9, %v9969_v8  ;;  %v9970_v37 = vld [vmem:[#allocation56_spill] sm:$0xff] }
 0x23c   : > { %v5425_v28 = vadd.f32 %v5337_v32, %v5181_v53  ;;  %v4671_v51 = vmul.f32 %v7183_v41, %v8084_v34  ;;  %v4914_v52 = vmul.f32 %v7186_v19, %v8026_v62  ;;  %v4915_v6 = vmul.f32 %v7186_v19, %v8084_v34 }
 0x23d   : > { %v5668_v14 = vadd.f32 %v5579_v31, %v5424_v12  ;;  %v9971_v20 = vrot.slane %v9970_v37, 2  ;;  %v4782_v27 = vrot.slane %v4670_v10, 1  ;;  %v5150_v25 = vmul.f32 %v7209_v5, %v8278_v13 }
 0x23e   : > { %v5669_v24 = vadd.f32 %v5581_v7, %v5425_v28  ;;  %v4783_v32 = vrot.slane %v4671_v51, 1  ;;  %v5026_v39 = vrot.slane %v4914_v52, 2  ;;  %v5027_v49 = vrot.slane %v4915_v6, 2 }
 0x23f   : > { %v4472_v45 = vsel %vm4429_vm6, %v4470_v16, %v9971_v20  ;;  %v5707_v53 = vmul.f32 %v8434_v50, %v5668_v14  ;;  %v5151_v34 = vmul.f32 %v7209_v5, %v8350_v40  ;;  %v9972_v36 = vrot.slane %v8127_v17, 1  ;;  %v9973_v16 = vld [vmem:[#allocation60_spill] sm:$0xff] }
 0x240   : > { %v4558_v42 = vadd.f32 %v4472_v45, %v4313_v2  ;;  %v5708_v30 = vmul.f32 %v8434_v50, %v5669_v24  ;;  %v4784_v55 = vsel %vm4184_vm5, %v4782_v27, %v4783_v32  ;;  %v5028_v2 = vsel %vm4429_vm6, %v5026_v39, %v5027_v49 }
 0x241   : > { %v4786_v7 = vsel %vm4184_vm5, %v4783_v32, %v9972_v36  ;;  %v5746_v9 = vadd.f32 %v8446_v60, %v5707_v53  ;;  %v9974_v10 = vrot.slane %v9973_v16, 2  ;;  %v5227_v17 = vmul.f32 %v7202_v59, %v8350_v40  ;;  %v9976_v16 = vld [vmem:[#allocation6_spill] sm:$0xff] }
 0x242   : > { %v4626_v31 = vadd.f32 %v4594_v58, %v4558_v42  ;;  %v5747_v12 = vadd.f32 %v8446_v60, %v5708_v30  ;;  %v4871_v28 = vadd.f32 %v4786_v7, %v4627_v48  ;;  %v5226_v58 = vmul.f32 %v7202_v59, %v8278_v13 }
 0x243   : > { %v5030_v8 = vsel %vm4429_vm6, %v5027_v49, %v9974_v10  ;;  %v5470_v52 = vmul.f32 %v7206_v4, %v8278_v13  ;;  %v5778_v6 = vmax.f32 %v5746_v9, 0.0  ;;  %v5471_v48 = vmul.f32 %v7206_v4, %v8350_v40  ;;  %v9977_v10 = vld [vmem:[#allocation61_spill] sm:$0xff] }
 0x244   : > { %v4870_v51 = vadd.f32 %v4784_v55, %v4626_v31  ;;  %v5779_v14 = vmax.f32 %v5747_v12, 0.0  ;;  %v5115_v24 = vadd.f32 %v5030_v8, %v4871_v28  ;;  %v5338_v20 = vrot.slane %v5226_v58, 1  ;;  %v9978_v8 = vld [vmem:[#allocation62_spill] sm:$0xff] }
 0x245   : > { %v5339_v45 = vrot.slane %v5227_v17, 1  ;;  %v5472_v27 = vmul.f32 %v7206_v4, %v8325_v56  ;;  %v5810_v42 = vmin.f32 %v5778_v6, 6.0  ;;  %v5582_v49 = vrot.slane %v5470_v52, 2 }
 0x246   : > { %v5114_v37 = vadd.f32 %v5028_v2, %v4870_v51  ;;  %v5811_v32 = vmin.f32 %v5779_v14, 6.0  ;;  %v5183_v39 = vadd.f32 %v5151_v34, %v5115_v24  ;;  %v9975_v31 = vrot.slane %v8344_v44, 1  ;;  %v9979_v14 = vld [vmem:[#allocation58_spill] sm:$0xff] }
 0x247   : > { %v5340_v30 = vsel %vm4184_vm5, %v5338_v20, %v5339_v45  ;;  %v5583_v36 = vrot.slane %v5471_v48, 2  ;;  %v5585_v2 = vrot.slane %v5472_v27, 2  ;;  %v4038_v12 = vmul.f32 %v7157_v0, %v8026_v62 }
 0x248   : > { %v5182_v53 = vadd.f32 %v5150_v25, %v5114_v37  ;;  %v5342_v55 = vsel %vm4184_vm5, %v5339_v45, %v9975_v31  ;;  %v5835_v7 = vpack.c.bf16 %v5811_v32, %v5810_v42  ;;  %v4230_v34 = vrot.slane %v9976_v16, 1 }
 0x249   : > { %v5427_v9 = vadd.f32 %v5342_v55, %v5183_v39  ;;  %v5584_v56 = vsel %vm4429_vm6, %v5582_v49, %v5583_v36  ;;  %v4360_v25 = vmul.f32 %v7160_v3, %v8026_v62  ;;  %v5586_v44 = vsel %vm4429_vm6, %v5583_v36, %v5585_v2  ;;  %v9981_v39 = vld [vmem:[#allocation59_spill] sm:$0xff] }
 0x24a   : > { %v5426_v28 = vadd.f32 %v5340_v30, %v5182_v53  ;;  %6568 = vmatmul.mubr.msk.bf16.gmra.mxu1 %vm5852_vm7, %v5835_v7  ;;  %v4561_v51 = vadd.f32 %v9978_v8, %v9977_v10  ;;  %v4596_v58 = vmul.f32 %v9805_v33, %v8278_v13  ;;  %v4597_v17 = vmul.f32 %v9805_v33, %v8350_v40 }
 0x24b   : > { %v5671_v6 = vadd.f32 %v5586_v44, %v5427_v9  ;;  %v9980_v24 = vrot.slane %v9979_v14, 1  ;;  %v4475_v62 = vrot.slane %v4360_v25, 2  ;;  %v4673_v45 = vmul.f32 %v7183_v41, %v8278_v13 }
 0x24c   : > { %v5670_v52 = vadd.f32 %v5584_v56, %v5426_v28  ;;  %v4629_v20 = vadd.f32 %v4597_v17, %v4561_v51  ;;  %v4674_v27 = vmul.f32 %v7183_v41, %v8350_v40  ;;  %v9982_v49 = vrot.slane %v9981_v39, 2  ;;  %v9984_v17 = vld [vmem:[#allocation70_spill] sm:$0xff] }
 0x24d   : > { %v4232_v48 = vsel %vm4184_vm5, %v4230_v34, %v9980_v24  ;;  %v5710_v32 = vmul.f32 %v8434_v50, %v5671_v6  ;;  %v4917_v30 = vmul.f32 %v7186_v19, %v8278_v13  ;;  %v4787_v55 = vrot.slane %v4673_v45, 1 }
 0x24e   : > { %v4315_v37 = vadd.f32 %v4232_v48, %v4038_v12  ;;  %v5709_v42 = vmul.f32 %v8434_v50, %v5670_v52  ;;  %v4477_v53 = vsel %vm4429_vm6, %v4475_v62, %v9982_v49  ;;  %v4788_v36 = vrot.slane %v4674_v27, 1 }
 0x24f   : > { %v4918_v7 = vmul.f32 %v7186_v19, %v8350_v40  ;;  %v5749_v2 = vadd.f32 %v8446_v60, %v5710_v32  ;;  %v5031_v12 = vrot.slane %v4917_v30, 2  ;;  %v5152_v50 = vmul.f32 %v7209_v5, %v8479_v38 }
 0x250   : > { %v4560_v31 = vadd.f32 %v4477_v53, %v4315_v37  ;;  %v5748_v9 = vadd.f32 %v8446_v60, %v5709_v42  ;;  %v4789_v56 = vsel %vm4184_vm5, %v4787_v55, %v4788_v36  ;;  %v9983_v16 = vrot.slane %v8335_v15, 1  ;;  %v9986_v37 = vld [vmem:[#allocation34_spill] sm:$0xff] }
 0x251   : > { %v5032_v25 = vrot.slane %v4918_v7, 2  ;;  %v5781_v10 = vmax.f32 %v5749_v2, 0.0  ;;  %v5153_v40 = vmul.f32 %v7209_v5, %v8526_v35  ;;  %v9985_v52 = vrot.slane %v9984_v17, 2  ;;  %v9987_v2 = vld [vmem:[#allocation65_spill] sm:$0xff] }
 0x252   : > { %v4628_v28 = vadd.f32 %v4596_v58, %v4560_v31  ;;  %v4791_v34 = vsel %vm4184_vm5, %v4788_v36, %v9983_v16  ;;  %v5780_v44 = vmax.f32 %v5748_v9, 0.0  ;;  %v5229_v6 = vmul.f32 %v7202_v59, %v8479_v38 }
 0x253   : > { %v4873_v8 = vadd.f32 %v4791_v34, %v4629_v20  ;;  %v5033_v60 = vsel %vm4429_vm6, %v5031_v12, %v5032_v25  ;;  %v5035_v58 = vsel %vm4429_vm6, %v5032_v25, %v9985_v52  ;;  %v5813_v14 = vmin.f32 %v5781_v10, 6.0 }
 0x254   : > { %v4872_v51 = vadd.f32 %v4789_v56, %v4628_v28  ;;  %v5812_v15 = vmin.f32 %v5780_v44, 6.0  ;;  %v5230_v48 = vmul.f32 %v7202_v59, %v8526_v35  ;;  %v5231_v20 = vmul.f32 %v7202_v59, %v9986_v37  ;;  %v9988_v44 = vld [vmem:[#allocation24_spill] sm:$0xff] }
 0x255   : > { %v5117_v24 = vadd.f32 %v5035_v58, %v4873_v8  ;;  %v5343_v45 = vrot.slane %v5229_v6, 1  ;;  %v5473_v27 = vmul.f32 %v7206_v4, %v8479_v38  ;;  %v5474_v49 = vmul.f32 %v7206_v4, %v8526_v35 }
 0x256   : > { %v5116_v62 = vadd.f32 %v5033_v60, %v4872_v51  ;;  %v5836_v42 = vpack.c.bf16 %v5813_v14, %v5812_v15  ;;  %v5344_v39 = vrot.slane %v5230_v48, 1  ;;  %v5346_v30 = vrot.slane %v5231_v20, 1  ;;  %v9991_v51 = vld [vmem:[#allocation71_spill] sm:$0xff]  ;;  %v9027_v48 = vld [vmem:[%s9595_s5] ss:$0 sm:$0xff] }
 0x257   : > { %v5185_v32 = vadd.f32 %v5153_v40, %v5117_v24  ;;  %v5475_v31 = vmul.f32 %v7206_v4, %v9986_v37  ;;  %v5587_v55 = vrot.slane %v5473_v27, 2  ;;  %v5588_v7 = vrot.slane %v5474_v49, 2  ;;  %v9990_v40 = vld [vmem:[#allocation72_spill] sm:$0xff]  ;;  %v9992_v37 = vld [vmem:[#allocation30_spill] sm:$0xff] }
 0x258   : > { %v5184_v53 = vadd.f32 %v5152_v50, %v5116_v62  ;;  %6571 = vmatprep.mubr.msk.bf16.mxu1 %vm5852_vm7, %v5836_v42  ;;  %v5345_v36 = vsel %vm4184_vm5, %v5343_v45, %v5344_v39  ;;  %v4040_v9 = vmul.f32 %v7157_v0, %v8278_v13  ;;  %v4235_v12 = vrot.slane %v9987_v2, 1 }
 0x259   : > { %v5347_v28 = vsel %vm4184_vm5, %v5344_v39, %v5346_v30  ;;  %v5590_v16 = vrot.slane %v5475_v31, 2  ;;  %v4363_v50 = vmul.f32 %v7160_v3, %v8278_v13  ;;  %v5589_v25 = vsel %vm4429_vm6, %v5587_v55, %v5588_v7  ;;  %v9041_v30 = vld [vmem:[%s9596_s6] ss:$0 sm:$0xff] }
 0x25a   : > { %v5428_v56 = vadd.f32 %v5345_v36, %v5184_v53  ;;  %v5429_v34 = vadd.f32 %v5347_v28, %v5185_v32  ;;  %v9989_v10 = vrot.slane %v9988_v44, 1  ;;  %v4563_v60 = vadd.f32 %v9991_v51, %v9990_v40  ;;  %v9994_v28 = vld [vmem:[#allocation14_spill] sm:$0xff] }
 0x25b   : > { %v5591_v17 = vsel %vm4429_vm6, %v5588_v7, %v5590_v16  ;;  %v4480_v6 = vrot.slane %v4363_v50, 2  ;;  %v4598_v14 = vmul.f32 %v9805_v33, %v8479_v38  ;;  %v4599_v13 = vmul.f32 %v9805_v33, %v8526_v35 }
 0x25c   : > { %v4237_v8 = vsel %vm4184_vm5, %v4235_v12, %v9989_v10  ;;  %v5672_v52 = vadd.f32 %v5589_v25, %v5428_v56  ;;  %v5673_v15 = vadd.f32 %v5591_v17, %v5429_v34  ;;  %v4676_v24 = vmul.f32 %v7183_v41, %v8479_v38  ;;  %v9995_v34 = vld [vmem:[#allocation37_spill] sm:$0xff] }
 0x25d   : > { %v4317_v58 = vadd.f32 %v4237_v8, %v4040_v9  ;;  %v9993_v20 = vrot.slane %v9992_v37, 2  ;;  %v4677_v27 = vmul.f32 %v7183_v41, %v8526_v35  ;;  %v4920_v42 = vmul.f32 %v7186_v19, %v8479_v38 }
 0x25e   : > { %v5711_v62 = vmul.f32 %v9027_v48, %v5672_v52  ;;  %v5712_v32 = vmul.f32 %v9027_v48, %v5673_v15  ;;  %v4631_v49 = vadd.f32 %v4599_v13, %v4563_v60  ;;  %v4792_v53 = vrot.slane %v4676_v24, 1 }
 0x25f   : > { %v4482_v45 = vsel %vm4429_vm6, %v4480_v6, %v9993_v20  ;;  %v4793_v55 = vrot.slane %v4677_v27, 1  ;;  %v4921_v36 = vmul.f32 %v7186_v19, %v8526_v35  ;;  %v5036_v7 = vrot.slane %v4920_v42, 2 }
 0x260   : > { %v4562_v39 = vadd.f32 %v4482_v45, %v4317_v58  ;;  %v5750_v31 = vadd.f32 %v9041_v30, %v5711_v62  ;;  %v5751_v9 = vadd.f32 %v9041_v30, %v5712_v32  ;;  %v5154_v12 = vmul.f32 %v7209_v5, %v8663_v23  ;;  %v9997_v58 = vld [vmem:[#allocation73_spill] sm:$0xff] }
 0x261   : > { %v5155_v56 = vmul.f32 %v7209_v5, %v9994_v28  ;;  %v4794_v50 = vsel %vm4184_vm5, %v4792_v53, %v4793_v55  ;;  %v9996_v25 = vrot.slane %v9995_v34, 1  ;;  %v5037_v10 = vrot.slane %v4921_v36, 2  ;;  %v10001_v34 = vld [vmem:[#allocation52_spill] sm:$0xff] }
 0x262   : > { %v4630_v2 = vadd.f32 %v4598_v14, %v4562_v39  ;;  %v5782_v16 = vmax.f32 %v5750_v31, 0.0  ;;  %v5783_v8 = vmax.f32 %v5751_v9, 0.0  ;;  %v5232_v60 = vmul.f32 %v7202_v59, %v8663_v23 }
 0x263   : > { %v4796_v44 = vsel %vm4184_vm5, %v4793_v55, %v9996_v25  ;;  %v5038_v52 = vsel %vm4429_vm6, %v5036_v7, %v5037_v10  ;;  %v9998_v6 = vrot.slane %v9997_v58, 2  ;;  %v5233_v14 = vmul.f32 %v7202_v59, %v9994_v28  ;;  %v9999_v55 = vld [vmem:[#allocation21_spill] sm:$0xff]  ;;  %v10005_v58 = vld [vmem:[#allocation35_spill] sm:$0xff] }
 0x264   : > { %v4874_v40 = vadd.f32 %v4794_v50, %v4630_v2  ;;  %v4875_v51 = vadd.f32 %v4796_v44, %v4631_v49  ;;  %v5814_v17 = vmin.f32 %v5782_v16, 6.0  ;;  %v5815_v13 = vmin.f32 %v5783_v8, 6.0  ;;  %v10002_v44 = vld [vmem:[#allocation10_spill] sm:$0xff] }
 0x265   : > { %v5040_v15 = vsel %vm4429_vm6, %v5037_v10, %v9998_v6  ;;  %v5348_v37 = vrot.slane %v5232_v60, 1  ;;  %v5349_v20 = vrot.slane %v5233_v14, 1  ;;  %v5476_v45 = vmul.f32 %v7206_v4, %v8663_v23  ;;  %v10003_v10 = vld [vmem:[#allocation74_spill] sm:$0xff] }
 0x266   : > { %v5118_v24 = vadd.f32 %v5038_v52, %v4874_v40  ;;  %v5119_v62 = vadd.f32 %v5040_v15, %v4875_v51  ;;  %v5477_v27 = vmul.f32 %v7206_v4, %v9994_v28  ;;  %v4042_v42 = vmul.f32 %v7157_v0, %v8479_v38 }
 0x267   : > { %v5837_v32 = vpack.c.bf16 %v5815_v13, %v5814_v17  ;;  %v4043_v53 = vmul.f32 %v7157_v0, %v8526_v35  ;;  %v5350_v31 = vsel %vm4184_vm5, %v5348_v37, %v5349_v20  ;;  %v10000_v36 = vrot.slane %v9999_v55, 1 }
 0x268   : > { %v5186_v39 = vadd.f32 %v5154_v12, %v5118_v24  ;;  %v5187_v49 = vadd.f32 %v5155_v56, %v5119_v62  ;;  %v5592_v9 = vrot.slane %v5476_v45, 2  ;;  %v5593_v2 = vrot.slane %v5477_v27, 2 }
 0x269   : > { %v5352_v7 = vsel %vm4184_vm5, %v5349_v20, %v10000_v36  ;;  %6572 = vmatmul.mubr.msk.bf16.gmra.mxu1 %vm5852_vm7, %v5837_v32  ;;  %v4240_v25 = vrot.slane %v10001_v34, 1  ;;  %v4320_v12 = vadd.f32 %v10002_v44, %v4043_v53  ;;  %v10004_v8 = vrot.slane %v10003_v10, 2  ;;  %v10007_v32 = vld [vmem:[#allocation38_spill] sm:$0xff] }
 0x26a   : > { %v5430_v16 = vadd.f32 %v5350_v31, %v5186_v39  ;;  %v5431_v50 = vadd.f32 %v5352_v7, %v5187_v49  ;;  %v5594_v56 = vsel %vm4429_vm6, %v5592_v9, %v5593_v2  ;;  %v4366_v51 = vmul.f32 %v7160_v3, %v8479_v38 }
 0x26b   : > { %v5596_v40 = vsel %vm4429_vm6, %v5593_v2, %v10004_v8  ;;  %v4367_v60 = vmul.f32 %v7160_v3, %v8526_v35  ;;  %v10006_v6 = vrot.slane %v10005_v58, 1  ;;  %v4600_v14 = vmul.f32 %v9805_v33, %v8663_v23  ;;  %v10009_v8 = vld [vmem:[#allocation36_spill] sm:$0xff] }
 0x26c   : > { %v5674_v17 = vadd.f32 %v5594_v56, %v5430_v16  ;;  %v5675_v52 = vadd.f32 %v5596_v40, %v5431_v50  ;;  %v4485_v24 = vrot.slane %v4366_v51, 2  ;;  %v4601_v37 = vmul.f32 %v9805_v33, %v9994_v28 }
 0x26d   : > { %v4242_v15 = vsel %vm4184_vm5, %v4240_v25, %v10006_v6  ;;  %v4486_v62 = vrot.slane %v4367_v60, 2  ;;  %v4679_v35 = vmul.f32 %v7183_v41, %v8663_v23  ;;  %v4680_v45 = vmul.f32 %v7183_v41, %v9994_v28  ;;  %v10011_v60 = vld [vmem:[#allocation44_spill] sm:$0xff] }
 0x26e   : > { %v4319_v13 = vadd.f32 %v4242_v15, %v4042_v42  ;;  %v5713_v38 = vmul.f32 %v9027_v48, %v5674_v17  ;;  %v5714_v20 = vmul.f32 %v9027_v48, %v5675_v52  ;;  %v10008_v39 = vrot.slane %v10007_v32, 2 }
 0x26f   : > { %v4487_v27 = vsel %vm4429_vm6, %v4485_v24, %v4486_v62  ;;  %v4923_v49 = vmul.f32 %v7186_v19, %v8663_v23  ;;  %v4924_v53 = vmul.f32 %v7186_v19, %v9994_v28  ;;  %v4797_v9 = vrot.slane %v4679_v35, 1  ;;  %v10014_v24 = vld [vmem:[#allocation27_spill] sm:$0xff] }
 0x270   : > { %v4489_v42 = vsel %vm4429_vm6, %v4486_v62, %v10008_v39  ;;  %v5752_v31 = vadd.f32 %v9041_v30, %v5713_v38  ;;  %v5753_v55 = vadd.f32 %v9041_v30, %v5714_v20  ;;  %v4564_v36 = vadd.f32 %v4487_v27, %v4319_v13  ;;  %v10013_v13 = vld [vmem:[#allocation75_spill] sm:$0xff] }
 0x271   : > { %v4565_v7 = vadd.f32 %v4489_v42, %v4320_v12  ;;  %v4798_v2 = vrot.slane %v4680_v45, 1  ;;  %v5041_v16 = vrot.slane %v4923_v49, 2  ;;  %v5042_v50 = vrot.slane %v4924_v53, 2  ;;  %v10015_v49 = vld [vmem:[#allocation29_spill] sm:$0xff] }
 0x272   : > { %v5784_v34 = vmax.f32 %v5752_v31, 0.0  ;;  %v5785_v25 = vmax.f32 %v5753_v55, 0.0  ;;  %v4632_v44 = vadd.f32 %v4600_v14, %v4564_v36  ;;  %v10010_v40 = vrot.slane %v10009_v8, 1 }
 0x273   : > { %v4633_v56 = vadd.f32 %v4601_v37, %v4565_v7  ;;  %v4799_v10 = vsel %vm4184_vm5, %v4797_v9, %v4798_v2  ;;  %v5043_v51 = vsel %vm4429_vm6, %v5041_v16, %v5042_v50  ;;  %v10012_v17 = vrot.slane %v10011_v60, 2 }
 0x274   : > { %v4801_v28 = vsel %vm4184_vm5, %v4798_v2, %v10010_v40  ;;  %v5816_v52 = vmin.f32 %v5784_v34, 6.0  ;;  %v5817_v58 = vmin.f32 %v5785_v25, 6.0  ;;  %v4876_v6 = vadd.f32 %v4799_v10, %v4632_v44  ;;  %v10016_v2 = vld [vmem:[#allocation31_spill] sm:$0xff]  ;;  %v10018_v10 = vld [vmem:[#allocation13_spill] sm:$0xff] }
 0x275   : > { %v5045_v12 = vsel %vm4429_vm6, %v5042_v50, %v10012_v17  ;;  %v4877_v15 = vadd.f32 %v4801_v28, %v4633_v56  ;;  %v5156_v14 = vmul.f32 %v7209_v5, %v10013_v13  ;;  %v5157_v62 = vmul.f32 %v7209_v5, %v10014_v24 }
 0x276   : > { %v5235_v37 = vmul.f32 %v7202_v59, %v10013_v13  ;;  %v5236_v38 = vmul.f32 %v7202_v59, %v10014_v24  ;;  %v5838_v20 = vpack.c.bf16 %v5817_v58, %v5816_v52  ;;  %v5120_v35 = vadd.f32 %v5043_v51, %v4876_v6  ;;  %v10019_v58 = vld [vmem:[#allocation42_spill] sm:$0xff] }
 0x277   : > { %v5121_v45 = vadd.f32 %v5045_v12, %v4877_v15  ;;  %v5479_v27 = vmul.f32 %v7206_v4, %v10013_v13  ;;  %v5480_v42 = vmul.f32 %v7206_v4, %v10014_v24  ;;  %v5481_v53 = vmul.f32 %v7206_v4, %v10015_v49 }
 0x278   : > { %v5353_v32 = vrot.slane %v5235_v37, 1  ;;  %v5354_v39 = vrot.slane %v5236_v38, 1  ;;  %6575 = vmatprep.mubr.msk.bf16.mxu1 %vm5852_vm7, %v5838_v20  ;;  %v5188_v31 = vadd.f32 %v5156_v14, %v5120_v35  ;;  %v4044_v7 = vmul.f32 %v7157_v0, %v8663_v23  ;;  %v10021_v37 = vld [vmem:[#allocation43_spill] sm:$0xff] }
 0x279   : > { %v5189_v55 = vadd.f32 %v5157_v62, %v5121_v45  ;;  %v5597_v36 = vrot.slane %v5479_v27, 2  ;;  %v10017_v16 = vrot.slane %v10016_v2, 1  ;;  %v5598_v34 = vrot.slane %v5480_v42, 2  ;;  %v10022_v27 = vld [vmem:[#allocation45_spill] sm:$0xff]  ;;  %v10024_v2 = vld [vmem:[#allocation12_spill] sm:$0xff] }
 0x27a   : > { %v5355_v9 = vsel %vm4184_vm5, %v5353_v32, %v5354_v39  ;;  %v5600_v25 = vrot.slane %v5481_v53, 2  ;;  %v4245_v8 = vrot.slane %v10018_v10, 1  ;;  %v4369_v40 = vmul.f32 %v7160_v3, %v8663_v23 }
 0x27b   : > { %v5357_v50 = vsel %vm4184_vm5, %v5354_v39, %v10017_v16  ;;  %v5432_v44 = vadd.f32 %v5355_v9, %v5188_v31  ;;  %v5599_v28 = vsel %vm4429_vm6, %v5597_v36, %v5598_v34  ;;  %v4602_v60 = vmul.f32 %v9805_v33, %v10013_v13 }
 0x27c   : > { %v5433_v56 = vadd.f32 %v5357_v50, %v5189_v55  ;;  %v5601_v51 = vsel %vm4429_vm6, %v5598_v34, %v5600_v25  ;;  %v4603_v17 = vmul.f32 %v9805_v33, %v10014_v24  ;;  %v10020_v6 = vrot.slane %v10019_v58, 1  ;;  %v10025_v25 = vld [vmem:[#allocation28_spill] sm:$0xff] }
 0x27d   : > { %v5676_v12 = vadd.f32 %v5599_v28, %v5432_v44  ;;  %v4490_v14 = vrot.slane %v4369_v40, 2  ;;  %v4682_v38 = vmul.f32 %v7183_v41, %v10013_v13  ;;  %v4683_v20 = vmul.f32 %v7183_v41, %v10014_v24 }
 0x27e   : > { %v5677_v52 = vadd.f32 %v5601_v51, %v5433_v56  ;;  %v4247_v15 = vsel %vm4184_vm5, %v4245_v8, %v10020_v6  ;;  %v4635_v23 = vadd.f32 %v4603_v17, %v10021_v37  ;;  %v10023_v32 = vrot.slane %v10022_v27, 2 }
 0x27f   : > { %v4321_v62 = vadd.f32 %v4247_v15, %v4044_v7  ;;  %v5715_v35 = vmul.f32 %v9027_v48, %v5676_v12  ;;  %v4926_v42 = vmul.f32 %v7186_v19, %v10013_v13  ;;  %v4802_v53 = vrot.slane %v4682_v38, 1 }
 0x280   : > { %v5716_v45 = vmul.f32 %v9027_v48, %v5677_v52  ;;  %v4492_v39 = vsel %vm4429_vm6, %v4490_v14, %v10023_v32  ;;  %v4803_v31 = vrot.slane %v4683_v20, 1  ;;  %v4927_v55 = vmul.f32 %v7186_v19, %v10014_v24  ;;  %v10027_v24 = vld [vmem:[#allocation20_spill] sm:$0xff]  ;;  %v10028_v52 = vld [vmem:[#allocation9_spill] sm:$0xff] }
 0x281   : > { %v4566_v49 = vadd.f32 %v4492_v39, %v4321_v62  ;;  %v5754_v36 = vadd.f32 %v9041_v30, %v5715_v35  ;;  %v5046_v9 = vrot.slane %v4926_v42, 2  ;;  %v5158_v16 = vmul.f32 %v7209_v5, %v10024_v2  ;;  %v10030_v39 = vld [vmem:[#allocation25_spill] sm:$0xff] }
 0x282   : > { %v5755_v7 = vadd.f32 %v9041_v30, %v5716_v45  ;;  %v4804_v34 = vsel %vm4184_vm5, %v4802_v53, %v4803_v31  ;;  %v10026_v44 = vrot.slane %v10025_v25, 1  ;;  %v5047_v10 = vrot.slane %v4927_v55, 2 }
 0x283   : > { %v4634_v50 = vadd.f32 %v4602_v60, %v4566_v49  ;;  %v5786_v8 = vmax.f32 %v5754_v36, 0.0  ;;  %v5159_v51 = vmul.f32 %v7209_v5, %v10027_v24  ;;  %v10029_v58 = vrot.slane %v10028_v52, 2 }
 0x284   : > { %v4806_v56 = vsel %vm4184_vm5, %v4803_v31, %v10026_v44  ;;  %v5787_v40 = vmax.f32 %v5755_v7, 0.0  ;;  %v5048_v12 = vsel %vm4429_vm6, %v5046_v9, %v5047_v10  ;;  %v5238_v6 = vmul.f32 %v7202_v59, %v10024_v2  ;;  %v10031_v7 = vld [vmem:[#allocation64_spill] sm:$0xff] }
 0x285   : > { %v4879_v28 = vadd.f32 %v4806_v56, %v4635_v23  ;;  %v4878_v17 = vadd.f32 %v4804_v34, %v4634_v50  ;;  %v5050_v60 = vsel %vm4429_vm6, %v5047_v10, %v10029_v58  ;;  %v5818_v15 = vmin.f32 %v5786_v8, 6.0 }
 0x286   : > { %v5819_v14 = vmin.f32 %v5787_v40, 6.0  ;;  %v5239_v37 = vmul.f32 %v7202_v59, %v10027_v24  ;;  %v5358_v38 = vrot.slane %v5238_v6, 1  ;;  %v5482_v20 = vmul.f32 %v7206_v4, %v10024_v2  ;;  %v10035_v6 = vld [vmem:[#allocation11_spill] sm:$0xff] }
 0x287   : > { %v5123_v62 = vadd.f32 %v5050_v60, %v4879_v28  ;;  %v5122_v23 = vadd.f32 %v5048_v12, %v4878_v17  ;;  %v5483_v35 = vmul.f32 %v7206_v4, %v10027_v24  ;;  %v5484_v42 = vmul.f32 %v7206_v4, %v10030_v39  ;;  %v10033_v28 = vld [vmem:[#allocation57_spill] sm:$0xff] }
 0x288   : > { %v5839_v45 = vpack.c.bf16 %v5819_v14, %v5818_v15  ;;  %v5359_v32 = vrot.slane %v5239_v37, 1  ;;  %v5602_v53 = vrot.slane %v5482_v20, 2  ;;  %v4046_v55 = vmul.f32 %v7157_v0, %v10013_v13 }
 0x289   : > { %v5191_v27 = vadd.f32 %v5159_v51, %v5123_v62  ;;  %v5190_v49 = vadd.f32 %v5158_v16, %v5122_v23  ;;  %v5603_v31 = vrot.slane %v5483_v35, 2  ;;  %v10032_v9 = vrot.slane %v10031_v7, 1  ;;  %v10034_v51 = vld [vmem:[#allocation15_spill] sm:$0xff]  ;;  %v10037_v35 = vld [vmem:[#allocation17_spill] sm:$0xff] }
 0x28a   : > { %6576 = vmatmul.mubr.msk.bf16.gmra.mxu1 %vm5852_vm7, %v5839_v45  ;;  %v5360_v36 = vsel %vm4184_vm5, %v5358_v38, %v5359_v32  ;;  %v5605_v34 = vrot.slane %v5484_v42, 2  ;;  %v4127_v25 = vmul.f32 %v7149_v57, %v10013_v13  ;;  %v4372_v10 = vmul.f32 %v7160_v3, %v10013_v13 }
 0x28b   : > { %v5362_v50 = vsel %vm4184_vm5, %v5359_v32, %v10032_v9  ;;  %v5434_v44 = vadd.f32 %v5360_v36, %v5190_v49  ;;  %v5604_v16 = vsel %vm4429_vm6, %v5602_v53, %v5603_v31  ;;  %v4569_v17 = vadd.f32 %v10034_v51, %v10033_v28  ;;  %v10042_v28 = vld [vmem:[#allocation63_spill] sm:$0xff] }
 0x28c   : > { %v5435_v56 = vadd.f32 %v5362_v50, %v5191_v27  ;;  %v5606_v8 = vsel %vm4429_vm6, %v5603_v31, %v5605_v34  ;;  %v4250_v40 = vrot.slane %v4127_v25, 1  ;;  %v4604_v12 = vmul.f32 %v9805_v33, %v10024_v2  ;;  %v10039_v50 = vld [vmem:[#allocation23_spill] sm:$0xff] }
 0x28d   : > { %v5678_v52 = vadd.f32 %v5604_v16, %v5434_v44  ;;  %v4495_v60 = vrot.slane %v4372_v10, 2  ;;  %v4605_v57 = vmul.f32 %v9805_v33, %v10027_v24  ;;  %v10036_v15 = vrot.slane %v10035_v6, 1  ;;  %v10041_v44 = vld [vmem:[#allocation33_spill] sm:$0xff] }
 0x28e   : > { %v5679_v58 = vadd.f32 %v5606_v8, %v5435_v56  ;;  %v4685_v13 = vmul.f32 %v7183_v41, %v10024_v2  ;;  %v4686_v62 = vmul.f32 %v7183_v41, %v10027_v24  ;;  %v4929_v37 = vmul.f32 %v7186_v19, %v10024_v2 }
 0x28f   : > { %v4252_v14 = vsel %vm4184_vm5, %v4250_v40, %v10036_v15  ;;  %v5717_v23 = vmul.f32 %v9027_v48, %v5678_v52  ;;  %v10038_v45 = vrot.slane %v10037_v35, 2  ;;  %v4637_v32 = vadd.f32 %v4605_v57, %v4569_v17 }
 0x290   : > { %v5718_v38 = vmul.f32 %v9027_v48, %v5679_v58  ;;  %v4323_v20 = vadd.f32 %v4252_v14, %v4046_v55  ;;  %v4807_v39 = vrot.slane %v4685_v13, 1  ;;  %v4808_v42 = vrot.slane %v4686_v62, 1  ;;  %v10044_v14 = vld [vmem:[#allocation22_spill] sm:$0xff] }
 0x291   : > { %v4497_v27 = vsel %vm4429_vm6, %v4495_v60, %v10038_v45  ;;  %v4930_v49 = vmul.f32 %v7186_v19, %v10027_v24  ;;  %v5756_v53 = vadd.f32 %v9041_v30, %v5717_v23  ;;  %v5051_v7 = vrot.slane %v4929_v37, 2 }
 0x292   : > { %v5757_v31 = vadd.f32 %v9041_v30, %v5718_v38  ;;  %v4568_v36 = vadd.f32 %v4497_v27, %v4323_v20  ;;  %v4809_v9 = vsel %vm4184_vm5, %v4807_v39, %v4808_v42  ;;  %v10040_v55 = vrot.slane %v10039_v50, 1 }
 0x293   : > { %v5052_v25 = vrot.slane %v4930_v49, 2  ;;  %v5160_v56 = vmul.f32 %v7209_v5, %v10041_v44  ;;  %v5788_v16 = vmax.f32 %v5756_v53, 0.0  ;;  %v10043_v51 = vrot.slane %v10042_v28, 2 }
 0x294   : > { %v4811_v34 = vsel %vm4184_vm5, %v4808_v42, %v10040_v55  ;;  %v5789_v10 = vmax.f32 %v5757_v31, 0.0  ;;  %v4636_v8 = vadd.f32 %v4604_v12, %v4568_v36  ;;  %v5161_v52 = vmul.f32 %v7209_v5, %v8497_v21  ;;  %v10045_v31 = vld [vmem:[#allocation26_spill] sm:$0xff] }
 0x295   : > { %v4881_v24 = vadd.f32 %v4811_v34, %v4637_v32  ;;  %v5053_v40 = vsel %vm4429_vm6, %v5051_v7, %v5052_v25  ;;  %v5055_v17 = vsel %vm4429_vm6, %v5052_v25, %v10043_v51  ;;  %v5241_v58 = vmul.f32 %v7202_v59, %v10041_v44  ;;  %v10048_v51 = vld [vmem:[#allocation69_spill] sm:$0xff] }
 0x296   : > { %v5820_v60 = vmin.f32 %v5788_v16, 6.0  ;;  %v5821_v57 = vmin.f32 %v5789_v10, 6.0  ;;  %v4880_v6 = vadd.f32 %v4809_v9, %v4636_v8  ;;  %v5242_v12 = vmul.f32 %v7202_v59, %v8497_v21  ;;  %v10046_v10 = vld [vmem:[#allocation66_spill] sm:$0xff] }
 0x297   : > { %v5125_v15 = vadd.f32 %v5055_v17, %v4881_v24  ;;  %v5243_v13 = vmul.f32 %v7202_v59, %v10044_v14  ;;  %v5363_v62 = vrot.slane %v5241_v58, 1  ;;  %v5485_v37 = vmul.f32 %v7206_v4, %v10041_v44  ;;  %v10049_v17 = vld [vmem:[#allocation68_spill] sm:$0xff] }
 0x298   : > { %v5840_v23 = vpack.c.bf16 %v5821_v57, %v5820_v60  ;;  %v5124_v38 = vadd.f32 %v5053_v40, %v4880_v6  ;;  %v5486_v35 = vmul.f32 %v7206_v4, %v8497_v21  ;;  %v5364_v45 = vrot.slane %v5242_v12, 1  ;;  %v10050_v6 = vld [vmem:[#allocation67_spill] sm:$0xff] }
 0x299   : > { %v5193_v20 = vadd.f32 %v5161_v52, %v5125_v15  ;;  %v5366_v27 = vrot.slane %v5243_v13, 1  ;;  %v5487_v32 = vmul.f32 %v7206_v4, %v10044_v14  ;;  %v5607_v39 = vrot.slane %v5485_v37, 2  ;;  %v9277_v37 = vpop.f32.mrf.mxu1 }
 0x29a   : > { %6579 = vmatprep.mubr.msk.bf16.mxu1 %vm5852_vm7, %v5840_v23  ;;  %v5192_v42 = vadd.f32 %v5160_v56, %v5124_v38  ;;  %v5608_v49 = vrot.slane %v5486_v35, 2  ;;  %v4048_v53 = vmul.f32 %v7157_v0, %v10024_v2  ;;  %v4255_v36 = vrot.slane %v10045_v31, 1 }
 0x29b   : > { %v5365_v7 = vsel %vm4184_vm5, %v5363_v62, %v5364_v45  ;;  %v5367_v9 = vsel %vm4184_vm5, %v5364_v45, %v5366_v27  ;;  %v5610_v50 = vrot.slane %v5487_v32, 2  ;;  %v4375_v55 = vmul.f32 %v7160_v3, %v10024_v2 }
 0x29c   : > { %v5436_v34 = vadd.f32 %v5365_v7, %v5192_v42  ;;  %v5437_v25 = vadd.f32 %v5367_v9, %v5193_v20  ;;  %v5609_v16 = vsel %vm4429_vm6, %v5607_v39, %v5608_v49  ;;  %v10047_v56 = vrot.slane %v10046_v10, 1 }
 0x29d   : > { %v5611_v24 = vsel %vm4429_vm6, %v5608_v49, %v5610_v50  ;;  %v4500_v28 = vrot.slane %v4375_v55, 2  ;;  %v4571_v52 = vadd.f32 %v10049_v17, %v10048_v51  ;;  %v4606_v2 = vmul.f32 %v9805_v33, %v10041_v44  ;;  %v10052_v49 = vld [vmem:[#allocation47_spill] sm:$0xff] }
 0x29e   : > { %v4257_v8 = vsel %vm4184_vm5, %v4255_v36, %v10047_v56  ;;  %v5680_v58 = vadd.f32 %v5609_v16, %v5436_v34  ;;  %v5681_v60 = vadd.f32 %v5611_v24, %v5437_v25  ;;  %v4607_v57 = vmul.f32 %v9805_v33, %v8497_v21  ;;  %v10053_v36 = vld [vmem:[#allocation51_spill] sm:$0xff]  ;;  %v10055_v56 = vld [vmem:[#allocation32_spill] sm:$0xff] }
 0x29f   : > { %v4325_v40 = vadd.f32 %v4257_v8, %v4048_v53  ;;  %v10051_v15 = vrot.slane %v10050_v6, 2  ;;  %v4688_v14 = vmul.f32 %v7183_v41, %v10041_v44  ;;  %v4689_v13 = vmul.f32 %v7183_v41, %v8497_v21 }
 0x2a0   : > { %v4932_v62 = vmul.f32 %v7186_v19, %v10041_v44  ;;  %v5719_v23 = vmul.f32 %v9027_v48, %v5680_v58  ;;  %v5720_v38 = vmul.f32 %v9027_v48, %v5681_v60  ;;  %v4639_v20 = vadd.f32 %v4607_v57, %v4571_v52 }
 0x2a1   : > { %v4502_v12 = vsel %vm4429_vm6, %v4500_v28, %v10051_v15  ;;  %v4812_v35 = vrot.slane %v4688_v14, 1  ;;  %v4813_v45 = vrot.slane %v4689_v13, 1  ;;  %v4933_v27 = vmul.f32 %v7186_v19, %v8497_v21  ;;  %v9293_v19 = vpop.f32.mrf.mxu1 }
 0x2a2   : > { %v4570_v33 = vadd.f32 %v4502_v12, %v4325_v40  ;;  %v5056_v32 = vrot.slane %v4932_v62, 2  ;;  %v5758_v39 = vadd.f32 %v9041_v30, %v5719_v23  ;;  %v5759_v41 = vadd.f32 %v9041_v30, %v5720_v38 }
 0x2a3   : > { %v5162_v53 = vmul.f32 %v7209_v5, %v10052_v49  ;;  %v4814_v31 = vsel %vm4184_vm5, %v4812_v35, %v4813_v45  ;;  %v10054_v7 = vrot.slane %v10053_v36, 1  ;;  %v5057_v50 = vrot.slane %v4933_v27, 2  ;;  %v9307_v15 = vpop.f32.mrf.mxu1 }
 0x2a4   : > { %v4638_v42 = vadd.f32 %v4606_v2, %v4570_v33  ;;  %v5163_v55 = vmul.f32 %v7209_v5, %v8659_v11  ;;  %v5790_v21 = vmax.f32 %v5758_v39, 0.0  ;;  %v5791_v34 = vmax.f32 %v5759_v41, 0.0 }
 0x2a5   : > { %v4816_v9 = vsel %vm4184_vm5, %v4813_v45, %v10054_v7  ;;  %v5058_v10 = vsel %vm4429_vm6, %v5056_v32, %v5057_v50  ;;  %v10056_v8 = vrot.slane %v10055_v56, 2  ;;  %v5244_v40 = vmul.f32 %v7202_v59, %v10052_v49  ;;  %v10057_v45 = vld [vmem:[#allocation41_spill] sm:$0xff]  ;;  %v5938_v43 = vpop.f32.mrf.mxu1 }
 0x2a6   : > { %v4882_v25 = vadd.f32 %v4814_v31, %v4638_v42  ;;  %v4883_v16 = vadd.f32 %v4816_v9, %v4639_v20  ;;  %v5245_v28 = vmul.f32 %v7202_v59, %v8659_v11  ;;  %v5822_v51 = vmin.f32 %v5790_v21, 6.0  ;;  %v10060_v42 = vld [vmem:[#allocation40_spill] sm:$0xff]  ;;  %v9351_v9 = vld [vmem:[%s9599_s9] ss:$0 sm:$0xff] }
 0x2a7   : > { %v5060_v24 = vsel %vm4429_vm6, %v5057_v50, %v10056_v8  ;;  %v5823_v17 = vmin.f32 %v5791_v34, 6.0  ;;  %v5368_v60 = vrot.slane %v5244_v40, 1  ;;  %v5488_v57 = vmul.f32 %v7206_v4, %v10052_v49  ;;  %v6646_v8 = vld [vmem:[%s6801_s20 + $0x30] sm:$0xff]  ;;  %v10064_v40 = vld [vmem:[#allocation39_spill] sm:$0xff] }
 0x2a8   : > { %v5126_v52 = vadd.f32 %v5058_v10, %v4882_v25  ;;  %v5127_v58 = vadd.f32 %v5060_v24, %v4883_v16  ;;  %v5369_v2 = vrot.slane %v5245_v28, 1  ;;  %v5489_v6 = vmul.f32 %v7206_v4, %v8659_v11 }
 0x2a9   : > { %v5841_v12 = vpack.c.bf16 %v5823_v17, %v5822_v51  ;;  %v4050_v62 = vmul.f32 %v7157_v0, %v10041_v44  ;;  %v5612_v33 = vrot.slane %v5488_v57, 2  ;;  %v4260_v27 = vrot.slane %v10057_v45, 1  ;;  %v6647_v51 = vld [vmem:[%s6801_s20 + $0x38] sm:$0xff] }
 0x2aa   : > { %v5194_v14 = vadd.f32 %v5162_v53, %v5126_v52  ;;  %v5195_v13 = vadd.f32 %v5163_v55, %v5127_v58  ;;  %v5370_v23 = vsel %vm4184_vm5, %v5368_v60, %v5369_v2  ;;  %v5372_v38 = vsel %vm4184_vm5, %v5369_v2, %v5371_v63  ;;  %v6648_v2 = vld [vmem:[%s6801_s20 + $0x18] sm:$0xff] }
 0x2ab   : > { %v5613_v20 = vrot.slane %v5489_v6, 2  ;;  %6580 = vmatmul.mubr.msk.bf16.gmra.mxu1 %vm5852_vm7, %v5841_v12  ;;  %v4378_v32 = vmul.f32 %v7160_v3, %v10041_v44  ;;  %v10059_v63 = vrot.slane %v10058_v1, 1  ;;  %v10061_v49 = vrot.slane %v10060_v42, 2  ;;  %v9336_v3 = vld [vmem:[%s9598_s8] ss:$0 sm:$0xff] }
 0x2ac   : > { %v5438_v35 = vadd.f32 %v5370_v23, %v5194_v14  ;;  %v5439_v11 = vadd.f32 %v5372_v38, %v5195_v13  ;;  %v10062_v47 = vrot.slane %v8779_v26, 1  ;;  %v5164_v18 = vmul.f32 0.0, %v7209_v5  ;;  %v6561_v26 = vpop.f32.mrf.mxu1  ;;  %v6649_v6 = vld [vmem:[%s6801_s20 + $0x20] sm:$0xff] }
 0x2ad   : > { %v5614_v39 = vsel %vm4429_vm6, %v5612_v33, %v5613_v20  ;;  %v5616_v0 = vsel %vm4429_vm6, %v5613_v20, %v5615_v54  ;;  %v4819_v41 = vsel %vm4184_vm5, %v10059_v63, %v4818_v29  ;;  %v5063_v53 = vsel %vm4429_vm6, %v10061_v49, %v5062_v46 }
 0x2ae   : > { %v5682_v44 = vadd.f32 %v5614_v39, %v5438_v35  ;;  %v5683_v54 = vadd.f32 %v5616_v0, %v5439_v11  ;;  %v4262_v31 = vsel %vm4184_vm5, %v4260_v27, %v10062_v47  ;;  %v4505_v36 = vrot.slane %v4378_v32, 2  ;;  %v5951_v52 = vpop.f32.mrf.mxu1  ;;  %v6650_v0 = vld [vmem:[%s6801_s20 + $0x40] sm:$0x3] }
 0x2af   : > { %v4327_v29 = vadd.f32 %v4262_v31, %v4050_v62  ;;  %v9343_v7 = vmul.f32 0.0, %v7202_v59  ;;  %v9346_v46 = vmul.f32 0.0, %v7206_v4  ;;  %v10063_v5 = vrot.slane %v8783_v61, 2  ;;  %v6652_v31 = vld [vmem:[%s6801_s20 + $0x60] sm:$0xff] }
 0x2b0   : > { %v5721_v50 = vmul.f32 %v9027_v48, %v5682_v44  ;;  %v5722_v55 = vmul.f32 %v9027_v48, %v5683_v54  ;;  %v6071_v21 = vmul.f32 %v9277_v37, %v9336_v3  ;;  %v5197_v34 = vadd.f32 %v5164_v18, %v8865_v22  ;;  %v6562_v32 = vpop.f32.mrf.mxu1 }
 0x2b1   : > { %v4507_v59 = vsel %vm4429_vm6, %v4505_v36, %v10063_v5  ;;  %v5373_v25 = vrot.slane %v9343_v7, 1  ;;  %v5617_v16 = vrot.slane %v9346_v46, 2  ;;  %v6145_v24 = vrot.slane %v6646_v8, 1 }
 0x2b2   : > { %v4572_v4 = vadd.f32 %v4507_v59, %v4327_v29  ;;  %v5760_v10 = vadd.f32 %v9041_v30, %v5721_v50  ;;  %v5761_v56 = vadd.f32 %v9041_v30, %v5722_v55  ;;  %v6110_v61 = vadd.f32 %v9351_v9, %v6071_v21  ;;  %v5954_v46 = vpop.f32.mrf.mxu1  ;;  %v6653_v50 = vld [vmem:[%s6801_s20 + $0x68] sm:$0xff] }
 0x2b3   : > { %v5441_v28 = vadd.f32 %v5373_v25, %v5197_v34  ;;  %v6146_v22 = vrot.slane %v6647_v51, 1  ;;  %v6069_v17 = vmul.f32 %v9336_v3, %v9293_v19  ;;  %v6140_v57 = vrot.slane %v6648_v2, 1  ;;  %v6654_v59 = vld [vmem:[%s6801_s20 + $0x48] sm:$0xff] }
 0x2b4   : > { %v4640_v37 = vadd.f32 %v10064_v40, %v4572_v4  ;;  %v5792_v58 = vmax.f32 %v5760_v10, 0.0  ;;  %v5793_v60 = vmax.f32 %v5761_v56, 0.0  ;;  %v6141_v12 = vrot.slane %v6649_v6, 1  ;;  %v6655_v10 = vld [vmem:[%s6801_s20 + $0x50] sm:$0xff] }
 0x2b5   : > { %v5685_v13 = vadd.f32 %v5617_v16, %v5441_v28  ;;  %v6147_v62 = vsel %vm4184_vm5, %v6145_v24, %v6146_v22  ;;  %v6108_v19 = vadd.f32 %v9351_v9, %v6069_v17  ;;  %v6072_v27 = vmul.f32 %v9307_v15, %v9336_v3  ;;  %v6656_v24 = vld [vmem:[%s6801_s20 + $0x70] sm:$0x3] }
 0x2b6   : > { %v4884_v14 = vadd.f32 %v4819_v41, %v4640_v37  ;;  %v5824_v23 = vmin.f32 %v5792_v58, 6.0  ;;  %v5825_v38 = vmin.f32 %v5793_v60, 6.0  ;;  %v6254_v33 = vadd.f32 %v6147_v62, %v6110_v61  ;;  %v6651_v41 = vld [vmem:[%s6801_s20 + $0x28] sm:$0x3]  ;;  %v6657_v60 = vld [vmem:[%s6801_s20 + $0x58] sm:$0x3] }
 0x2b7   : > { %v6142_v20 = vsel %vm4184_vm5, %v6140_v57, %v6141_v12  ;;  %v5724_v11 = vmul.f32 %v9027_v48, %v5685_v13  ;;  %v6148_v1 = vrot.slane %v6650_v0, 1  ;;  %v6070_v63 = vmul.f32 %v9336_v3, %v5938_v43 }
 0x2b8   : > { %v5128_v35 = vadd.f32 %v5063_v53, %v4884_v14  ;;  %v6252_v45 = vadd.f32 %v6142_v20, %v6108_v19  ;;  %v5842_v39 = vpack.c.bf16 %v5825_v38, %v5824_v23  ;;  %6286 = vst.msk [vmem:[%s9377_s25 + $0x10] sm:$0xff] %vm1958_vm2, %v6254_v33  ;;  %v6143_v42 = vrot.slane %v6651_v41, 1  ;;  %v6659_v38 = vld [vmem:[%s6801_s20 + $0x98] sm:$0xff] }
 0x2b9   : > { %v5763_v53 = vadd.f32 %v9041_v30, %v5724_v11  ;;  %v6111_v44 = vadd.f32 %v9351_v9, %v6072_v27  ;;  %v6075_v15 = vmul.f32 %v6561_v26, %v9336_v3  ;;  %v6149_v54 = vsel %vm4184_vm5, %v6146_v22, %v6148_v1  ;;  %v6662_v1 = vld [vmem:[%s6801_s20 + $0xa0] sm:$0x3] }
 0x2ba   : > { %v5196_v49 = vadd.f32 %v5164_v18, %v5128_v35  ;;  %6284 = vst.msk [vmem:[%s9377_s25] sm:$0xff] %vm1958_vm2, %v6252_v45  ;;  %6583 = vmatprep.mubr.msk.bf16.mxu1 %vm5852_vm7, %v5842_v39  ;;  %v6109_v47 = vadd.f32 %v9351_v9, %v6070_v63  ;;  %v6144_v43 = vsel %vm4184_vm5, %v6141_v12, %v6143_v42  ;;  %v6155_v36 = vrot.slane %v6652_v31, 1  ;;  %v6660_v35 = vld [vmem:[%s6801_s20 + $0x78] sm:$0xff]  ;;  %v6661_v45 = vld [vmem:[%s6801_s20 + $0x80] sm:$0xff] }
 0x2bb   : > { %v6255_v18 = vadd.f32 %v6149_v54, %v6111_v44  ;;  %v6114_v7 = vadd.f32 %v9351_v9, %v6075_v15  ;;  %v6156_v55 = vrot.slane %v6653_v50, 1  ;;  %v6073_v5 = vmul.f32 %v9336_v3, %v5951_v52  ;;  %v6663_v44 = vld [vmem:[%s6801_s20 + $0x88] sm:$0x3] }
 0x2bc   : > { %v5440_v29 = vadd.f32 %v5373_v25, %v5196_v49  ;;  %v6253_v26 = vadd.f32 %v6144_v43, %v6109_v47  ;;  %v6150_v21 = vrot.slane %v6654_v59, 1  ;;  %v5795_v34 = vmax.f32 %v5763_v53, 0.0 }
 0x2bd   : > { %6287 = vst.msk [vmem:[%s9377_s25 + $0x18] sm:$0xff] %vm1958_vm2, %v6255_v18  ;;  %v6151_v25 = vrot.slane %v6655_v10, 1  ;;  %v6076_v56 = vmul.f32 %v6562_v32, %v9336_v3  ;;  %v6157_v61 = vsel %vm4184_vm5, %v6155_v36, %v6156_v55  ;;  %v6112_v8 = vadd.f32 %v9351_v9, %v6073_v5  ;;  %v6664_v5 = vld [vmem:[%s6801_s20 + $0xc0] sm:$0xff]  ;;  %v6666_v10 = vld [vmem:[%s6801_s20 + $0xa8] sm:$0xff] }
 0x2be   : > { %v5684_v4 = vadd.f32 %v5617_v16, %v5440_v29  ;;  %6285 = vst.msk [vmem:[%s9377_s25 + $0x8] sm:$0xff] %vm1958_vm2, %v6253_v26  ;;  %v6158_v40 = vrot.slane %v6656_v24, 1  ;;  %v6074_v16 = vmul.f32 %v9336_v3, %v5954_v46  ;;  %v6258_v28 = vadd.f32 %v6157_v61, %v6114_v7 }
 0x2bf   : > { %v6152_v51 = vsel %vm4184_vm5, %v6150_v21, %v6151_v25  ;;  %v6115_v22 = vadd.f32 %v9351_v9, %v6076_v56  ;;  %v6153_v2 = vrot.slane %v6657_v60, 1  ;;  %v5827_v14 = vmin.f32 %v5795_v34, 6.0  ;;  %v6665_v21 = vld [vmem:[%s6801_s20 + $0xc8] sm:$0xff]  ;;  %v6667_v56 = vld [vmem:[%s6801_s20 + $0xb0] sm:$0xff] }
 0x2c0   : > { %v5723_v37 = vmul.f32 %v9027_v48, %v5684_v4  ;;  %v6256_v17 = vadd.f32 %v6152_v51, %v6112_v8  ;;  %v6159_v52 = vsel %vm4184_vm5, %v6156_v55, %v6158_v40  ;;  %v6113_v58 = vadd.f32 %v9351_v9, %v6074_v16  ;;  %6290 = vst.msk [vmem:[%s9377_s25 + $0x30] sm:$0xff] %vm1958_vm2, %v6258_v28  ;;  %v6668_v16 = vld [vmem:[%s6801_s20 + $0xd0] sm:$0x3] }
 0x2c1   : > { %v6259_v48 = vadd.f32 %v6159_v52, %v6115_v22  ;;  %v6154_v6 = vsel %vm4184_vm5, %v6151_v25, %v6153_v2  ;;  %v6166_v33 = vrot.slane %v6659_v38, 1  ;;  %v6160_v11 = vrot.slane %v6660_v35, 1  ;;  %v6669_v52 = vld [vmem:[%s6801_s20 + $0xb8] sm:$0x3]  ;;  %v6670_v38 = vld [vmem:[%s6801_s20 + $0xf0] sm:$0xff] }
 0x2c2   : > { %v5762_v57 = vadd.f32 %v9041_v30, %v5723_v37  ;;  %6288 = vst.msk [vmem:[%s9377_s25 + $0x20] sm:$0xff] %vm1958_vm2, %v6256_v17  ;;  %v6257_v13 = vadd.f32 %v6154_v6, %v6113_v58  ;;  %v6658_v30 = vld [vmem:[%s6801_s20 + $0x90] sm:$0xff]  ;;  %v6161_v27 = vrot.slane %v6661_v45, 1  ;;  %v6168_v63 = vrot.slane %v6662_v1, 1  ;;  %v6672_v45 = vld [vmem:[%s6801_s20 + $0xd8] sm:$0xff] }
 0x2c3   : > { %6291 = vst.msk [vmem:[%s9377_s25 + $0x38] sm:$0xff] %vm1958_vm2, %v6259_v48  ;;  %v6165_v23 = vrot.slane %v6658_v30, 1  ;;  %v6163_v15 = vrot.slane %v6663_v44, 1  ;;  %v6175_v59 = vrot.slane %v6664_v5, 1  ;;  %v6176_v4 = vrot.slane %v6665_v21, 1  ;;  %v6676_v21 = vld [vmem:[%s6801_s20 + $0x120] sm:$0xff] }
 0x2c4   : > { %v5794_v12 = vmax.f32 %v5762_v57, 0.0  ;;  %6289 = vst.msk [vmem:[%s9377_s25 + $0x28] sm:$0xff] %vm1958_vm2, %v6257_v13  ;;  %v6162_v49 = vsel %vm4184_vm5, %v6160_v11, %v6161_v27  ;;  %v6169_v31 = vsel %vm4184_vm5, %v6166_v33, %v6168_v63  ;;  %v6170_v25 = vrot.slane %v6666_v10, 1 }
 0x2c5   : > { %v6167_v39 = vsel %vm4184_vm5, %v6165_v23, %v6166_v33  ;;  %v6164_v46 = vsel %vm4184_vm5, %v6161_v27, %v6163_v15  ;;  %v6171_v61 = vrot.slane %v6667_v56, 1  ;;  %v6177_v24 = vsel %vm4184_vm5, %v6175_v59, %v6176_v4  ;;  %v6678_v56 = vld [vmem:[%s6801_s20 + $0x108] sm:$0xff] }
 0x2c6   : > { %v5826_v62 = vmin.f32 %v5794_v12, 6.0  ;;  %v6565_v20 = vpop.f32.mrf.mxu1  ;;  %v6178_v37 = vrot.slane %v6668_v16, 1  ;;  %v6173_v58 = vrot.slane %v6669_v52, 1  ;;  %v6185_v33 = vrot.slane %v6670_v38, 1 }
 0x2c7   : > { %v6079_v32 = vmul.f32 %v6565_v20, %v9336_v3  ;;  %v6172_v22 = vsel %vm4184_vm5, %v6170_v25, %v6171_v61  ;;  %v6671_v20 = vld [vmem:[%s6801_s20 + $0xf8] sm:$0xff]  ;;  %v6180_v27 = vrot.slane %v6672_v45, 1 }
 0x2c8   : > { %v5843_v19 = vpack.c.bf16 %v5827_v14, %v5826_v62  ;;  %v5967_v0 = vpop.f32.mrf.mxu1  ;;  %v6179_v48 = vsel %vm4184_vm5, %v6176_v4, %v6178_v37  ;;  %v6174_v62 = vsel %vm4184_vm5, %v6171_v61, %v6173_v58  ;;  %v6186_v35 = vrot.slane %v6671_v20, 1  ;;  %v6682_v20 = vld [vmem:[%s6801_s20 + $0x150] sm:$0xff] }
 0x2c9   : > { %v6118_v41 = vadd.f32 %v9351_v9, %v6079_v32  ;;  %v6077_v42 = vmul.f32 %v9336_v3, %v5967_v0  ;;  %v6673_v32 = vld [vmem:[%s6801_s20 + $0xe0] sm:$0xff]  ;;  %v6195_v4 = vrot.slane %v6676_v21, 1  ;;  %v6190_v61 = vrot.slane %v6678_v56, 1 }
 0x2ca   : > { %6584 = vmatmul.mubr.msk.bf16.gmra.mxu1 %vm5852_vm7, %v5843_v19  ;;  %v6566_v53 = vpop.f32.mrf.mxu1  ;;  %v6187_v1 = vsel %vm4184_vm5, %v6185_v33, %v6186_v35 }
 0x2cb   : > { %v6262_v54 = vadd.f32 %v6167_v39, %v6118_v41  ;;  %v6116_v47 = vadd.f32 %v9351_v9, %v6077_v42  ;;  %v6080_v43 = vmul.f32 %v6566_v53, %v9336_v3  ;;  %v6181_v39 = vrot.slane %v6673_v32, 1  ;;  %v6674_v41 = vld [vmem:[%s6801_s20 + $0x100] sm:$0x3]  ;;  %v6684_v32 = vld [vmem:[%s6801_s20 + $0x138] sm:$0xff] }
 0x2cc   : > { %v5970_v36 = vpop.f32.mrf.mxu1  ;;  %v6188_v42 = vrot.slane %v6674_v41, 1 }
 0x2cd   : > { %6294 = vst.msk [vmem:[%s9377_s25 + $0x50] sm:$0xff] %vm1958_vm2, %v6262_v54  ;;  %v6260_v29 = vadd.f32 %v6162_v49, %v6116_v47  ;;  %v6119_v18 = vadd.f32 %v9351_v9, %v6080_v43  ;;  %v6078_v7 = vmul.f32 %v9336_v3, %v5970_v36  ;;  %v6182_v44 = vsel %vm4184_vm5, %v6180_v27, %v6181_v39  ;;  %v6675_v54 = vld [vmem:[%s6801_s20 + $0xe8] sm:$0x3] }
 0x2ce   : > { %v6183_v47 = vrot.slane %v6675_v54, 1 }
 0x2cf   : > { %6292 = vst.msk [vmem:[%s9377_s25 + $0x40] sm:$0xff] %vm1958_vm2, %v6260_v29  ;;  %v6263_v26 = vadd.f32 %v6169_v31, %v6119_v18  ;;  %v6117_v50 = vadd.f32 %v9351_v9, %v6078_v7  ;;  %v6189_v29 = vsel %vm4184_vm5, %v6186_v35, %v6188_v42  ;;  %v6205_v35 = vrot.slane %v6682_v20, 1 }
 0x2d1   : > { %6295 = vst.msk [vmem:[%s9377_s25 + $0x58] sm:$0xff] %vm1958_vm2, %v6263_v26  ;;  %v6261_v55 = vadd.f32 %v6164_v46, %v6117_v50  ;;  %v6184_v50 = vsel %vm4184_vm5, %v6181_v39, %v6183_v47  ;;  %v6200_v39 = vrot.slane %v6684_v32, 1 }
 0x2d3   : > { %6293 = vst.msk [vmem:[%s9377_s25 + $0x48] sm:$0xff] %vm1958_vm2, %v6261_v55 }
 0x30a   : > { %v6569_v34 = vpop.f32.mrf.mxu1 }
 0x30b   : > { %v6083_v8 = vmul.f32 %v6569_v34, %v9336_v3  ;;  %v6677_v34 = vld [vmem:[%s6801_s20 + $0x128] sm:$0xff] }
 0x30c   : > { %v5983_v40 = vpop.f32.mrf.mxu1  ;;  %v6196_v10 = vrot.slane %v6677_v34, 1  ;;  %v6688_v34 = vld [vmem:[%s6801_s20 + $0x180] sm:$0xff] }
 0x30d   : > { %v6122_v28 = vadd.f32 %v9351_v9, %v6083_v8  ;;  %v6081_v51 = vmul.f32 %v9336_v3, %v5983_v40  ;;  %v6679_v8 = vld [vmem:[%s6801_s20 + $0x110] sm:$0xff] }
 0x30e   : > { %v6570_v17 = vpop.f32.mrf.mxu1  ;;  %v6197_v16 = vsel %vm4184_vm5, %v6195_v4, %v6196_v10 }
 0x30f   : > { %v6266_v60 = vadd.f32 %v6177_v24, %v6122_v28  ;;  %v6120_v2 = vadd.f32 %v9351_v9, %v6081_v51  ;;  %v6084_v57 = vmul.f32 %v6570_v17, %v9336_v3  ;;  %v6191_v24 = vrot.slane %v6679_v8, 1  ;;  %v6680_v28 = vld [vmem:[%s6801_s20 + $0x130] sm:$0x3]  ;;  %v6690_v8 = vld [vmem:[%s6801_s20 + $0x168] sm:$0xff] }
 0x310   : > { %v5986_v6 = vpop.f32.mrf.mxu1  ;;  %v6198_v51 = vrot.slane %v6680_v28, 1 }
 0x311   : > { %6298 = vst.msk [vmem:[%s9377_s25 + $0x70] sm:$0xff] %vm1958_vm2, %v6266_v60  ;;  %v6264_v12 = vadd.f32 %v6172_v22, %v6120_v2  ;;  %v6123_v14 = vadd.f32 %v9351_v9, %v6084_v57  ;;  %v6082_v13 = vmul.f32 %v9336_v3, %v5986_v6  ;;  %v6192_v52 = vsel %vm4184_vm5, %v6190_v61, %v6191_v24  ;;  %v6681_v60 = vld [vmem:[%s6801_s20 + $0x118] sm:$0x3] }
 0x312   : > { %v6193_v2 = vrot.slane %v6681_v60, 1 }
 0x313   : > { %6296 = vst.msk [vmem:[%s9377_s25 + $0x60] sm:$0xff] %vm1958_vm2, %v6264_v12  ;;  %v6267_v19 = vadd.f32 %v6179_v48, %v6123_v14  ;;  %v6121_v30 = vadd.f32 %v9351_v9, %v6082_v13  ;;  %v6199_v12 = vsel %vm4184_vm5, %v6196_v10, %v6198_v51  ;;  %v6215_v10 = vrot.slane %v6688_v34, 1 }
 0x315   : > { %6299 = vst.msk [vmem:[%s9377_s25 + $0x78] sm:$0xff] %vm1958_vm2, %v6267_v19  ;;  %v6265_v23 = vadd.f32 %v6174_v62, %v6121_v30  ;;  %v6194_v30 = vsel %vm4184_vm5, %v6191_v24, %v6193_v2  ;;  %v6210_v24 = vrot.slane %v6690_v8, 1 }
 0x317   : > { %6297 = vst.msk [vmem:[%s9377_s25 + $0x68] sm:$0xff] %vm1958_vm2, %v6265_v23 }
 0x329   : > { %v6573_v11 = vpop.f32.mrf.mxu1 }
 0x32a   : > { %v6087_v0 = vmul.f32 %v6573_v11, %v9336_v3  ;;  %v6683_v11 = vld [vmem:[%s6801_s20 + $0x158] sm:$0xff] }
 0x32b   : > { %v5999_v63 = vpop.f32.mrf.mxu1  ;;  %v6206_v45 = vrot.slane %v6683_v11, 1 }
 0x32c   : > { %v6126_v49 = vadd.f32 %v9351_v9, %v6087_v0  ;;  %v6085_v53 = vmul.f32 %v9336_v3, %v5999_v63  ;;  %v6685_v0 = vld [vmem:[%s6801_s20 + $0x140] sm:$0xff] }
 0x32d   : > { %v6574_v15 = vpop.f32.mrf.mxu1  ;;  %v6207_v41 = vsel %vm4184_vm5, %v6205_v35, %v6206_v45 }
 0x32e   : > { %v6270_v43 = vadd.f32 %v6187_v1, %v6126_v49  ;;  %v6124_v31 = vadd.f32 %v9351_v9, %v6085_v53  ;;  %v6088_v36 = vmul.f32 %v6574_v15, %v9336_v3  ;;  %v6201_v1 = vrot.slane %v6685_v0, 1  ;;  %v6686_v49 = vld [vmem:[%s6801_s20 + $0x160] sm:$0x3] }
 0x32f   : > { %v6002_v18 = vpop.f32.mrf.mxu1  ;;  %v6208_v53 = vrot.slane %v6686_v49, 1 }
 0x330   : > { %6302 = vst.msk [vmem:[%s9377_s25 + $0x90] sm:$0xff] %vm1958_vm2, %v6270_v43  ;;  %v6268_v7 = vadd.f32 %v6182_v44, %v6124_v31  ;;  %v6127_v46 = vadd.f32 %v9351_v9, %v6088_v36  ;;  %v6086_v26 = vmul.f32 %v9336_v3, %v6002_v18  ;;  %v6202_v54 = vsel %vm4184_vm5, %v6200_v39, %v6201_v1  ;;  %v6687_v43 = vld [vmem:[%s6801_s20 + $0x148] sm:$0x3] }
 0x331   : > { %v6203_v31 = vrot.slane %v6687_v43, 1 }
 0x332   : > { %6300 = vst.msk [vmem:[%s9377_s25 + $0x80] sm:$0xff] %vm1958_vm2, %v6268_v7  ;;  %v6271_v55 = vadd.f32 %v6189_v29, %v6127_v46  ;;  %v6125_v5 = vadd.f32 %v9351_v9, %v6086_v26  ;;  %v6209_v7 = vsel %vm4184_vm5, %v6206_v45, %v6208_v53 }
 0x334   : > { %6303 = vst.msk [vmem:[%s9377_s25 + $0x98] sm:$0xff] %vm1958_vm2, %v6271_v55  ;;  %v6269_v59 = vadd.f32 %v6184_v50, %v6125_v5  ;;  %v6204_v5 = vsel %vm4184_vm5, %v6201_v1, %v6203_v31 }
 0x336   : > { %6301 = vst.msk [vmem:[%s9377_s25 + $0x88] sm:$0xff] %vm1958_vm2, %v6269_v59 }
 0x34a   : > { %v6577_v25 = vpop.f32.mrf.mxu1 }
 0x34b   : > { %v6091_v40 = vmul.f32 %v6577_v25, %v9336_v3  ;;  %v6689_v25 = vld [vmem:[%s6801_s20 + $0x188] sm:$0xff] }
 0x34c   : > { %v6015_v37 = vpop.f32.mrf.mxu1  ;;  %v6216_v56 = vrot.slane %v6689_v25, 1 }
 0x34d   : > { %v6130_v22 = vadd.f32 %v9351_v9, %v6091_v40  ;;  %v6089_v17 = vmul.f32 %v9336_v3, %v6015_v37  ;;  %v6691_v40 = vld [vmem:[%s6801_s20 + $0x170] sm:$0xff] }
 0x34e   : > { %v6578_v58 = vpop.f32.mrf.mxu1  ;;  %v6217_v28 = vsel %vm4184_vm5, %v6215_v10, %v6216_v56 }
 0x34f   : > { %v6274_v57 = vadd.f32 %v6197_v16, %v6130_v22  ;;  %v6128_v48 = vadd.f32 %v9351_v9, %v6089_v17  ;;  %v6092_v6 = vmul.f32 %v6578_v58, %v9336_v3  ;;  %v6211_v16 = vrot.slane %v6691_v40, 1  ;;  %v6692_v22 = vld [vmem:[%s6801_s20 + $0x190] sm:$0x3] }
 0x350   : > { %v6018_v14 = vpop.f32.mrf.mxu1  ;;  %v6218_v17 = vrot.slane %v6692_v22, 1 }
 0x351   : > { %6306 = vst.msk [vmem:[%s9377_s25 + $0xb0] sm:$0xff] %vm1958_vm2, %v6274_v57  ;;  %v6272_v13 = vadd.f32 %v6192_v52, %v6128_v48  ;;  %v6131_v62 = vadd.f32 %v9351_v9, %v6092_v6  ;;  %v6090_v19 = vmul.f32 %v9336_v3, %v6018_v14  ;;  %v6212_v60 = vsel %vm4184_vm5, %v6210_v24, %v6211_v16  ;;  %v6693_v57 = vld [vmem:[%s6801_s20 + $0x178] sm:$0x3] }
 0x352   : > { %v6213_v48 = vrot.slane %v6693_v57, 1 }
 0x353   : > { %6304 = vst.msk [vmem:[%s9377_s25 + $0xa0] sm:$0xff] %vm1958_vm2, %v6272_v13  ;;  %v6275_v23 = vadd.f32 %v6199_v12, %v6131_v62  ;;  %v6129_v38 = vadd.f32 %v9351_v9, %v6090_v19  ;;  %v6219_v13 = vsel %vm4184_vm5, %v6216_v56, %v6218_v17 }
 0x355   : > { %6307 = vst.msk [vmem:[%s9377_s25 + $0xb8] sm:$0xff] %vm1958_vm2, %v6275_v23  ;;  %v6273_v33 = vadd.f32 %v6194_v30, %v6129_v38  ;;  %v6214_v38 = vsel %vm4184_vm5, %v6211_v16, %v6213_v48 }
 0x357   : > { %6305 = vst.msk [vmem:[%s9377_s25 + $0xa8] sm:$0xff] %vm1958_vm2, %v6273_v33 }
 0x36b   : > { %v6581_v27 = vpop.f32.mrf.mxu1 }
 0x36c   : > { %v6095_v63 = vmul.f32 %v6581_v27, %v9336_v3 }
 0x36d   : > { %v6031_v42 = vpop.f32.mrf.mxu1 }
 0x36e   : > { %v6134_v44 = vadd.f32 %v9351_v9, %v6095_v63  ;;  %v6093_v15 = vmul.f32 %v9336_v3, %v6031_v42 }
 0x36f   : > { %v6582_v47 = vpop.f32.mrf.mxu1 }
 0x370   : > { %v6278_v36 = vadd.f32 %v6207_v41, %v6134_v44  ;;  %v6132_v29 = vadd.f32 %v9351_v9, %v6093_v15  ;;  %v6096_v18 = vmul.f32 %v6582_v47, %v9336_v3 }
 0x371   : > { %v6034_v46 = vpop.f32.mrf.mxu1 }
 0x372   : > { %6310 = vst.msk [vmem:[%s9377_s25 + $0xd0] sm:$0xff] %vm1958_vm2, %v6278_v36  ;;  %v6276_v26 = vadd.f32 %v6202_v54, %v6132_v29  ;;  %v6135_v50 = vadd.f32 %v9351_v9, %v6096_v18  ;;  %v6094_v55 = vmul.f32 %v9336_v3, %v6034_v46 }
 0x374   : > { %6308 = vst.msk [vmem:[%s9377_s25 + $0xc0] sm:$0xff] %vm1958_vm2, %v6276_v26  ;;  %v6279_v59 = vadd.f32 %v6209_v7, %v6135_v50  ;;  %v6133_v21 = vadd.f32 %v9351_v9, %v6094_v55 }
 0x376   : > { %6311 = vst.msk [vmem:[%s9377_s25 + $0xd8] sm:$0xff] %vm1958_vm2, %v6279_v59  ;;  %v6277_v4 = vadd.f32 %v6204_v5, %v6133_v21 }
 0x378   : > { %6309 = vst.msk [vmem:[%s9377_s25 + $0xc8] sm:$0xff] %vm1958_vm2, %v6277_v4 }
 0x38a   : > { %v6585_v61 = vpop.f32.mrf.mxu1 }
 0x38b   : > { %v6099_v37 = vmul.f32 %v6585_v61, %v9336_v3 }
 0x38c   : > { %v6047_v51 = vpop.f32.mrf.mxu1 }
 0x38d   : > { %v6138_v52 = vadd.f32 %v9351_v9, %v6099_v37  ;;  %v6097_v58 = vmul.f32 %v9336_v3, %v6047_v51 }
 0x38e   : > { %v6586_v2 = vpop.f32.mrf.mxu1 }
 0x38f   : > { %v6282_v6 = vadd.f32 %v6217_v28, %v6138_v52  ;;  %v6136_v12 = vadd.f32 %v9351_v9, %v6097_v58  ;;  %v6100_v14 = vmul.f32 %v6586_v2, %v9336_v3 }
 0x390   : > { %v6050_v62 = vpop.f32.mrf.mxu1 }
 0x391   : > { %6314 = vst.msk [vmem:[%s9377_s25 + $0xf0] sm:$0xff] %vm1958_vm2, %v6282_v6  ;;  %v6280_v19 = vadd.f32 %v6212_v60, %v6136_v12  ;;  %v6139_v30 = vadd.f32 %v9351_v9, %v6100_v14  ;;  %v6098_v23 = vmul.f32 %v9336_v3, %v6050_v62 }
 0x393   : > { %6312 = vst.msk [vmem:[%s9377_s25 + $0xe0] sm:$0xff] %vm1958_vm2, %v6280_v19  ;;  %v6283_v33 = vadd.f32 %v6219_v13, %v6139_v30  ;;  %v6137_v20 = vadd.f32 %v9351_v9, %v6098_v23 }
 0x395   : > { %6315 = vst.msk [vmem:[%s9377_s25 + $0xf8] sm:$0xff] %vm1958_vm2, %v6283_v33  ;;  %v6281_v35 = vadd.f32 %v6214_v38, %v6137_v20 }
 0x397   : > { %6313 = vst.msk [vmem:[%s9377_s25 + $0xe8] sm:$0xff] %vm1958_vm2, %v6281_v35 }
 0x398 PF: > { %s20_s13 = sadd.s32 1, %s6716_s13  }
 0x399   : > { %p17_p4 = scmp.ge.s32.totalorder %s20_s13, 4  }
 0x39b   :  { %19 = sbr.rel (!%p17_p4) target bundleno = 1 (0x1), region = 90 }

</bundles_post_ra>
